<compile_context>
chip_gen: v5e
topology: v5e:2x2
jax: 0.10.0
libtpu: 0.0.40
codegen_flags: <defaults>
</compile_context>

<pallas_src>
import jax
import jax.numpy as jnp
from jax.experimental import pallas as pl
from jax.experimental.pallas import tpu as pltpu

LEAKY_SLOPE = 0.1   # YOLO-style LeakyReLU negative slope
BN_EPS = 1e-3       # YoloBody._initialize_weights sets BatchNorm2d.eps = 0.001
_LEFT = 8           # sublane-aligned left margin inside the padded VMEM buffers

# Synthetic YOLO-tiny-style layer list + save list (the torch module takes these
# externally).  f > 0 marks a route node (concat with saved feature of layer f).
LAYERS = [
    dict(type="conv",   f=-1, cin=4,  cout=8,  k=3, s=1),   # 0: (N,16,16, 8)
    dict(type="conv",   f=-1, cin=8,  cout=16, k=3, s=2),   # 1: (N, 8, 8,16)
    dict(type="conv",   f=-1, cin=16, cout=16, k=1, s=1),   # 2: (N, 8, 8,16)  <- saved
    dict(type="conv",   f=-1, cin=16, cout=32, k=3, s=1),   # 3: (N, 8, 8,32)
    dict(type="concat", f=2),                                # 4: cat(out, y[0]) -> 48 ch
    dict(type="conv",   f=-1, cin=48, cout=32, k=1, s=1),   # 5: (N, 8, 8,32)
]
SAVE_LIST = [2]


# ----------------------------------------------------------------------------
# Static shape plan (all python ints, resolved at trace time)
# ----------------------------------------------------------------------------
def _build_plan(H, W):
    plan, scratch_shapes = [], []
    sorted_save = sorted(SAVE_LIST)
    h, w, c = H, W, LAYERS[0]["cin"]
    saved = {}
    conv_idx = 0
    for i, m in enumerate(LAYERS):
        if m["type"] == "concat":
            sh, sw, sc = saved[m["f"]]
            assert (sh, sw) == (h, w), "route spatial mismatch"
            c += sc
            plan.append(dict(kind="concat", y_idx=sorted_save.index(m["f"])))
        else:
            k, s, cin, cout = m["k"], m["s"], m["cin"], m["cout"]
            assert cin == c and h % s == 0 and w % s == 0
            oh, ow = h // s, w // s
            pad_idx = im_idx = None
            if k > 1:
                p = k // 2
                pad_idx = len(scratch_shapes)
                scratch_shapes.append(
                    pltpu.VMEM((h + 2 * p, _LEFT + w + p, cin), jnp.float32))
                im_idx = len(scratch_shapes)
                scratch_shapes.append(pltpu.VMEM((oh, ow, k * k * cin), jnp.float32))
            plan.append(dict(kind="conv", k=k, s=s, cin=cin, cout=cout,
                             in_h=h, in_w=w, out_h=oh, out_w=ow,
                             pad_idx=pad_idx, im_idx=im_idx, conv_idx=conv_idx))
            conv_idx += 1
            h, w, c = oh, ow, cout
        if i in SAVE_LIST:
            saved[i] = (h, w, c)
    return plan, scratch_shapes, (h, w, c), conv_idx


# ----------------------------------------------------------------------------
# In-kernel fused Conv2d(BN-folded) + LeakyReLU on one image
# ----------------------------------------------------------------------------
def _leaky(x):
    return jnp.maximum(x, x * LEAKY_SLOPE)   # LeakyReLU(0.1), pure VPU select


def _conv_bn_lrelu(parts, w_ref, b_ref, pad_ref, im_ref, *, k, s, cin, cout,
                   in_h, in_w, out_h, out_w):
    """Conv2d(k, stride s, 'same' pad, BN folded) + LeakyReLU.

    `parts` is a list of (in_h, in_w, c_j) f32 arrays whose channel counts sum to
    `cin`; a multi-part input is an un-materialized route/concat node."""
    assert sum(int(p.shape[-1]) for p in parts) == cin
    M = out_h * out_w
    if k == 1:
        assert s == 1
        # 1x1 conv: plain matmul; a concat input becomes split matmuls (exact).
        acc = jnp.zeros((M, cout), jnp.float32)
        off = 0
        for part in parts:
            cj = part.shape[-1]
            acc = acc + jnp.dot(part.reshape(M, cj), w_ref[off:off + cj, :],
                                preferred_element_type=jnp.float32)
            off += cj
    else:
        p = k // 2
        # zero-pad in VMEM; interior sits at sublane-aligned column _LEFT.
        pad_ref[...] = jnp.zeros(pad_ref.shape, jnp.float32)
        off = 0
        for part in parts:
            cj = part.shape[-1]
            pad_ref[p:p + in_h, _LEFT:_LEFT + in_w, off:off + cj] = part
            off += cj
        # im2col: one (M, k*k*cin) LHS -> a single MXU matmul for the whole layer.
        for kh in range(k):
            for kw in range(k):
                t = kh * k + kw
                col0 = _LEFT - p + kw
                if s == 1:
                    patch = pad_ref[kh:kh + out_h, col0:col0 + out_w, :]
                else:
                    # strided conv: read only the needed input positions
                    patch = pad_ref[pl.ds(kh, out_h, s), pl.ds(col0, out_w, s), :]
                im_ref[:, :, t * cin:(t + 1) * cin] = patch
        acc = jnp.dot(im_ref[...].reshape(M, k * k * cin), w_ref[...],
                      preferred_element_type=jnp.float32)
    acc = _leaky(acc + b_ref[...])            # folded BN bias, (1, cout) broadcast
    return acc.reshape(out_h, out_w, cout)


def _make_kernel(plan, n_conv):
    def kernel(*refs):
        x_ref = refs[0]
        wb = refs[1:1 + 2 * n_conv]
        o_ref = refs[1 + 2 * n_conv]
        scratch = refs[2 + 2 * n_conv:]

        out_parts = [x_ref[...].astype(jnp.float32)]   # activations never leave VMEM
        y = []
        for i, step in enumerate(plan):
            if step["kind"] == "concat":
                # torch.cat([out, y[idx]], dim=1): kept as a lazy part list; the next
                # conv consumes it as split matmuls, no materialized concat needed.
                out_parts = out_parts + [y[step["y_idx"]]]
            else:
                ci = step["conv_idx"]
                pad_ref = None if step["pad_idx"] is None else scratch[step["pad_idx"]]
                im_ref = None if step["im_idx"] is None else scratch[step["im_idx"]]
                out_parts = [_conv_bn_lrelu(
                    out_parts, wb[2 * ci], wb[2 * ci + 1], pad_ref, im_ref,
                    k=step["k"], s=step["s"], cin=step["cin"], cout=step["cout"],
                    in_h=step["in_h"], in_w=step["in_w"],
                    out_h=step["out_h"], out_w=step["out_w"])]
            if i in SAVE_LIST:
                # TODO(synk): saving a raw route output would require materializing the
                # concat; not needed by this layer list.
                assert len(out_parts) == 1
                y.append(out_parts[0])
        o_ref[...] = out_parts[0].astype(o_ref.dtype)
    return kernel


# ----------------------------------------------------------------------------
# Public wrapper: one fused pallas_call for the whole body (NCHW in/out)
# ----------------------------------------------------------------------------
def yolo_body_forward(x_nchw, params):
    """Port of YoloBody.forward; NCHW in/out like PyTorch, NHWC inside the kernel."""
    N, Cin, H, W = x_nchw.shape
    assert Cin == LAYERS[0]["cin"]
    plan, scratch_shapes, (oh, ow, oc), n_conv = _build_plan(H, W)
    x = jnp.transpose(x_nchw, (0, 2, 3, 1))          # NCHW -> NHWC (C on lanes)

    flat_wb = []
    in_specs = [pl.BlockSpec((None, H, W, Cin), lambda n: (n, 0, 0, 0))]
    for pr in params:
        if pr is None:
            continue
        flat_wb += [pr["w"], pr["b"]]
        in_specs.append(pl.BlockSpec(pr["w"].shape, lambda n: (0, 0)))
        in_specs.append(pl.BlockSpec(pr["b"].shape, lambda n: (0, 0)))

    out = pl.pallas_call(
        _make_kernel(plan, n_conv),
        out_shape=jax.ShapeDtypeStruct((N, oh, ow, oc), x.dtype),
        grid=(N,),
        in_specs=in_specs,
        out_specs=pl.BlockSpec((None, oh, ow, oc), lambda n: (n, 0, 0, 0)),
        scratch_shapes=scratch_shapes,
        compiler_params=pltpu.CompilerParams(
            dimension_semantics=("parallel",)),      # batch split across TCs on v7x
    )(x, *flat_wb)
    return jnp.transpose(out, (0, 3, 1, 2))           # NHWC -> NCHW


# ----------------------------------------------------------------------------
# Deterministic synthetic parameters (Conv weight + eval-mode BN folded in)
# ----------------------------------------------------------------------------
def make_conv_params(key, cin, cout, k):
    kw_key, g_key, b_key, m_key, v_key = jax.random.split(key, 5)
    w = 0.1 * jax.random.normal(kw_key, (cout, cin, k, k), jnp.float32)  # torch (O,I,KH,KW)
    gamma = 1.0 + 0.1 * jax.random.normal(g_key, (cout,), jnp.float32)
    beta = 0.1 * jax.random.normal(b_key, (cout,), jnp.float32)
    mean = 0.1 * jax.random.normal(m_key, (cout,), jnp.float32)
    var = 1.0 + jnp.abs(jax.random.normal(v_key, (cout,), jnp.float32))
    scale = gamma / jnp.sqrt(var + BN_EPS)             # fold eval-mode BN into the conv
    w_folded = w * scale[:, None, None, None]
    b_folded = beta - mean * scale
    # im2col row order (kh, kw, cin): (O,I,KH,KW) -> (KH,KW,I,O) -> (k*k*cin, cout)
    w_im2col = jnp.transpose(w_folded, (2, 3, 1, 0)).reshape(k * k * cin, cout)
    return {"w": w_im2col, "b": b_folded.reshape(1, cout)}


def init_params(key):
    params = []
    for layer in LAYERS:
        if layer["type"] == "conv":
            key, sub = jax.random.split(key)
            params.append(make_conv_params(sub, layer["cin"], layer["cout"], layer["k"]))
        else:
            params.append(None)
    return params


# ----------------------------------------------------------------------------
# Pure-JAX/XLA reference (mirrors YoloBody.forward with a real concat)
# ----------------------------------------------------------------------------
def yolo_body_reference(x_nchw, params):
    out = jnp.transpose(x_nchw, (0, 2, 3, 1))
    y = []
    sorted_save = sorted(SAVE_LIST)
    for i, m in enumerate(LAYERS):
        if m["type"] == "concat":
            out = jnp.concatenate([out, y[sorted_save.index(m["f"])]], axis=-1)
        else:
            pr, k, s = params[i], m["k"], m["s"]
            w_hwio = pr["w"].reshape(k, k, m["cin"], m["cout"])
            p = k // 2
            out = jax.lax.conv_general_dilated(
                out, w_hwio, window_strides=(s, s), padding=((p, p), (p, p)),
                dimension_numbers=("NHWC", "HWIO", "NHWC"),
                precision=jax.lax.Precision.HIGHEST)
            out = out + pr["b"].reshape(1, 1, 1, -1)
            out = jnp.maximum(out, out * LEAKY_SLOPE)
        if i in SAVE_LIST:
            y.append(out)
    return jnp.transpose(out, (0, 3, 1, 2))


if __name__ == "__main__":
    key = jax.random.PRNGKey(0)
    pkey, xkey = jax.random.split(key)
    params = init_params(pkey)

    x = jax.random.normal(xkey, (2, 4, 16, 16), jnp.float32)   # NCHW, like PyTorch
    fwd = jax.jit(lambda xx: yolo_body_forward(xx, params))
    out = jax.block_until_ready(fwd(x))

    assert out.shape == (2, 32, 8, 8), out.shape
    assert out.dtype == jnp.float32
    assert bool(jnp.all(jnp.isfinite(out)))

    # correctness check against the XLA reference (loose tol: precision-mode immune,
    # still catches any structural/indexing/weight-layout bug)
    ref = yolo_body_reference(x, params)
    max_err = float(jnp.max(jnp.abs(out - ref)))
    assert max_err < 5e-2, f"mismatch vs XLA reference: {max_err}"

    print("KERNEL_OK")
</pallas_src>

<mosaic_0001>
module attributes {stable_mosaic.version = 11 : i64} {
  func.func @kernel(%arg0: i32, %arg1: memref<1x16x16x4xf32, #tpu.memory_space<vmem>>, %arg2: memref<36x8xf32, #tpu.memory_space<vmem>>, %arg3: memref<1x8xf32, #tpu.memory_space<vmem>>, %arg4: memref<72x16xf32, #tpu.memory_space<vmem>>, %arg5: memref<1x16xf32, #tpu.memory_space<vmem>>, %arg6: memref<16x16xf32, #tpu.memory_space<vmem>>, %arg7: memref<1x16xf32, #tpu.memory_space<vmem>>, %arg8: memref<144x32xf32, #tpu.memory_space<vmem>>, %arg9: memref<1x32xf32, #tpu.memory_space<vmem>>, %arg10: memref<48x32xf32, #tpu.memory_space<vmem>>, %arg11: memref<1x32xf32, #tpu.memory_space<vmem>>, %arg12: memref<1x8x8x32xf32, #tpu.memory_space<vmem>>, %arg13: memref<18x25x4xf32, #tpu.memory_space<vmem>>, %arg14: memref<16x16x36xf32, #tpu.memory_space<vmem>>, %arg15: memref<18x25x8xf32, #tpu.memory_space<vmem>>, %arg16: memref<8x8x72xf32, #tpu.memory_space<vmem>>, %arg17: memref<10x17x16xf32, #tpu.memory_space<vmem>>, %arg18: memref<8x8x144xf32, #tpu.memory_space<vmem>>) attributes {dimension_semantics = [#tpu.dimension_semantics<parallel>], iteration_bounds = array<i64: 2>, scalar_prefetch = 0 : i64, scratch_operands = 6 : i64, tpu.core_type = #tpu.core_type<tc>, window_params = [{transform_indices = @transform_0, window_bounds = array<i64: 1, 16, 16, 4>}, {pipeline_mode = #tpu.pipeline_mode<synchronous>, transform_indices = @transform_1, window_bounds = array<i64: 36, 8>}, {pipeline_mode = #tpu.pipeline_mode<synchronous>, transform_indices = @transform_2, window_bounds = array<i64: 1, 8>}, {pipeline_mode = #tpu.pipeline_mode<synchronous>, transform_indices = @transform_3, window_bounds = array<i64: 72, 16>}, {pipeline_mode = #tpu.pipeline_mode<synchronous>, transform_indices = @transform_4, window_bounds = array<i64: 1, 16>}, {pipeline_mode = #tpu.pipeline_mode<synchronous>, transform_indices = @transform_5, window_bounds = array<i64: 16, 16>}, {pipeline_mode = #tpu.pipeline_mode<synchronous>, transform_indices = @transform_6, window_bounds = array<i64: 1, 16>}, {pipeline_mode = #tpu.pipeline_mode<synchronous>, transform_indices = @transform_7, window_bounds = array<i64: 144, 32>}, {pipeline_mode = #tpu.pipeline_mode<synchronous>, transform_indices = @transform_8, window_bounds = array<i64: 1, 32>}, {pipeline_mode = #tpu.pipeline_mode<synchronous>, transform_indices = @transform_9, window_bounds = array<i64: 48, 32>}, {pipeline_mode = #tpu.pipeline_mode<synchronous>, transform_indices = @transform_10, window_bounds = array<i64: 1, 32>}, {transform_indices = @transform_11, window_bounds = array<i64: 1, 8, 8, 32>}]} {
    %c0 = arith.constant 0 : index
    %c0_0 = arith.constant 0 : index
    %c0_1 = arith.constant 0 : index
    %c0_2 = arith.constant 0 : index
    %0 = vector.load %arg1[%c0, %c0_0, %c0_1, %c0_2] : memref<1x16x16x4xf32, #tpu.memory_space<vmem>>, vector<1x16x16x4xf32>
    %1 = vector.shape_cast %0 : vector<1x16x16x4xf32> to vector<16x16x4xf32>
    %cst = arith.constant 0.000000e+00 : f32
    %2 = vector.broadcast %cst : f32 to vector<18x25x4xf32>
    %c0_3 = arith.constant 0 : index
    %c0_4 = arith.constant 0 : index
    %c0_5 = arith.constant 0 : index
    %3 = vector.load %arg13[%c0_3, %c0_4, %c0_5] : memref<18x25x4xf32, #tpu.memory_space<vmem>>, vector<18x25x4xf32>
    tpu.vector_store %arg13[%c0_3, %c0_4, %c0_5], %2 {strides = array<i32>} : memref<18x25x4xf32, #tpu.memory_space<vmem>>, vector<18x25x4xf32>,
    %c1 = arith.constant 1 : index
    %c8 = arith.constant 8 : index
    %c0_6 = arith.constant 0 : index
    %4 = vector.load %arg13[%c1, %c8, %c0_6] : memref<18x25x4xf32, #tpu.memory_space<vmem>>, vector<16x16x4xf32>
    tpu.vector_store %arg13[%c1, %c8, %c0_6], %1 {strides = array<i32>} : memref<18x25x4xf32, #tpu.memory_space<vmem>>, vector<16x16x4xf32>,
    %c0_7 = arith.constant 0 : index
    %c7 = arith.constant 7 : index
    %c0_8 = arith.constant 0 : index
    %5 = vector.load %arg13[%c0_7, %c7, %c0_8] : memref<18x25x4xf32, #tpu.memory_space<vmem>>, vector<16x16x4xf32>
    %c0_9 = arith.constant 0 : index
    %c0_10 = arith.constant 0 : index
    %c0_11 = arith.constant 0 : index
    %6 = vector.load %arg14[%c0_9, %c0_10, %c0_11] : memref<16x16x36xf32, #tpu.memory_space<vmem>>, vector<16x16x4xf32>
    tpu.vector_store %arg14[%c0_9, %c0_10, %c0_11], %5 {strides = array<i32>} : memref<16x16x36xf32, #tpu.memory_space<vmem>>, vector<16x16x4xf32>,
    %c0_12 = arith.constant 0 : index
    %c8_13 = arith.constant 8 : index
    %c0_14 = arith.constant 0 : index
    %7 = vector.load %arg13[%c0_12, %c8_13, %c0_14] : memref<18x25x4xf32, #tpu.memory_space<vmem>>, vector<16x16x4xf32>
    %c0_15 = arith.constant 0 : index
    %c0_16 = arith.constant 0 : index
    %c4 = arith.constant 4 : index
    %8 = vector.load %arg14[%c0_15, %c0_16, %c4] : memref<16x16x36xf32, #tpu.memory_space<vmem>>, vector<16x16x4xf32>
    tpu.vector_store %arg14[%c0_15, %c0_16, %c4], %7 {strides = array<i32>} : memref<16x16x36xf32, #tpu.memory_space<vmem>>, vector<16x16x4xf32>,
    %c0_17 = arith.constant 0 : index
    %c9 = arith.constant 9 : index
    %c0_18 = arith.constant 0 : index
    %9 = vector.load %arg13[%c0_17, %c9, %c0_18] : memref<18x25x4xf32, #tpu.memory_space<vmem>>, vector<16x16x4xf32>
    %c0_19 = arith.constant 0 : index
    %c0_20 = arith.constant 0 : index
    %c8_21 = arith.constant 8 : index
    %10 = vector.load %arg14[%c0_19, %c0_20, %c8_21] : memref<16x16x36xf32, #tpu.memory_space<vmem>>, vector<16x16x4xf32>
    tpu.vector_store %arg14[%c0_19, %c0_20, %c8_21], %9 {strides = array<i32>} : memref<16x16x36xf32, #tpu.memory_space<vmem>>, vector<16x16x4xf32>,
    %c1_22 = arith.constant 1 : index
    %c7_23 = arith.constant 7 : index
    %c0_24 = arith.constant 0 : index
    %11 = vector.load %arg13[%c1_22, %c7_23, %c0_24] : memref<18x25x4xf32, #tpu.memory_space<vmem>>, vector<16x16x4xf32>
    %c0_25 = arith.constant 0 : index
    %c0_26 = arith.constant 0 : index
    %c12 = arith.constant 12 : index
    %12 = vector.load %arg14[%c0_25, %c0_26, %c12] : memref<16x16x36xf32, #tpu.memory_space<vmem>>, vector<16x16x4xf32>
    tpu.vector_store %arg14[%c0_25, %c0_26, %c12], %11 {strides = array<i32>} : memref<16x16x36xf32, #tpu.memory_space<vmem>>, vector<16x16x4xf32>,
    %c1_27 = arith.constant 1 : index
    %c8_28 = arith.constant 8 : index
    %c0_29 = arith.constant 0 : index
    %13 = vector.load %arg13[%c1_27, %c8_28, %c0_29] : memref<18x25x4xf32, #tpu.memory_space<vmem>>, vector<16x16x4xf32>
    %c0_30 = arith.constant 0 : index
    %c0_31 = arith.constant 0 : index
    %c16 = arith.constant 16 : index
    %14 = vector.load %arg14[%c0_30, %c0_31, %c16] : memref<16x16x36xf32, #tpu.memory_space<vmem>>, vector<16x16x4xf32>
    tpu.vector_store %arg14[%c0_30, %c0_31, %c16], %13 {strides = array<i32>} : memref<16x16x36xf32, #tpu.memory_space<vmem>>, vector<16x16x4xf32>,
    %c1_32 = arith.constant 1 : index
    %c9_33 = arith.constant 9 : index
    %c0_34 = arith.constant 0 : index
    %15 = vector.load %arg13[%c1_32, %c9_33, %c0_34] : memref<18x25x4xf32, #tpu.memory_space<vmem>>, vector<16x16x4xf32>
    %c0_35 = arith.constant 0 : index
    %c0_36 = arith.constant 0 : index
    %c20 = arith.constant 20 : index
    %16 = vector.load %arg14[%c0_35, %c0_36, %c20] : memref<16x16x36xf32, #tpu.memory_space<vmem>>, vector<16x16x4xf32>
    tpu.vector_store %arg14[%c0_35, %c0_36, %c20], %15 {strides = array<i32>} : memref<16x16x36xf32, #tpu.memory_space<vmem>>, vector<16x16x4xf32>,
    %c2 = arith.constant 2 : index
    %c7_37 = arith.constant 7 : index
    %c0_38 = arith.constant 0 : index
    %17 = vector.load %arg13[%c2, %c7_37, %c0_38] : memref<18x25x4xf32, #tpu.memory_space<vmem>>, vector<16x16x4xf32>
    %c0_39 = arith.constant 0 : index
    %c0_40 = arith.constant 0 : index
    %c24 = arith.constant 24 : index
    %18 = vector.load %arg14[%c0_39, %c0_40, %c24] : memref<16x16x36xf32, #tpu.memory_space<vmem>>, vector<16x16x4xf32>
    tpu.vector_store %arg14[%c0_39, %c0_40, %c24], %17 {strides = array<i32>} : memref<16x16x36xf32, #tpu.memory_space<vmem>>, vector<16x16x4xf32>,
    %c2_41 = arith.constant 2 : index
    %c8_42 = arith.constant 8 : index
    %c0_43 = arith.constant 0 : index
    %19 = vector.load %arg13[%c2_41, %c8_42, %c0_43] : memref<18x25x4xf32, #tpu.memory_space<vmem>>, vector<16x16x4xf32>
    %c0_44 = arith.constant 0 : index
    %c0_45 = arith.constant 0 : index
    %c28 = arith.constant 28 : index
    %20 = vector.load %arg14[%c0_44, %c0_45, %c28] : memref<16x16x36xf32, #tpu.memory_space<vmem>>, vector<16x16x4xf32>
    tpu.vector_store %arg14[%c0_44, %c0_45, %c28], %19 {strides = array<i32>} : memref<16x16x36xf32, #tpu.memory_space<vmem>>, vector<16x16x4xf32>,
    %c2_46 = arith.constant 2 : index
    %c9_47 = arith.constant 9 : index
    %c0_48 = arith.constant 0 : index
    %21 = vector.load %arg13[%c2_46, %c9_47, %c0_48] : memref<18x25x4xf32, #tpu.memory_space<vmem>>, vector<16x16x4xf32>
    %c0_49 = arith.constant 0 : index
    %c0_50 = arith.constant 0 : index
    %c32 = arith.constant 32 : index
    %22 = vector.load %arg14[%c0_49, %c0_50, %c32] : memref<16x16x36xf32, #tpu.memory_space<vmem>>, vector<16x16x4xf32>
    tpu.vector_store %arg14[%c0_49, %c0_50, %c32], %21 {strides = array<i32>} : memref<16x16x36xf32, #tpu.memory_space<vmem>>, vector<16x16x4xf32>,
    %c0_51 = arith.constant 0 : index
    %c0_52 = arith.constant 0 : index
    %c0_53 = arith.constant 0 : index
    %23 = vector.load %arg14[%c0_51, %c0_52, %c0_53] : memref<16x16x36xf32, #tpu.memory_space<vmem>>, vector<16x16x36xf32>
    %24 = vector.shape_cast %23 : vector<16x16x36xf32> to vector<256x36xf32>
    %c0_54 = arith.constant 0 : index
    %c0_55 = arith.constant 0 : index
    %25 = vector.load %arg2[%c0_54, %c0_55] : memref<36x8xf32, #tpu.memory_space<vmem>>, vector<36x8xf32>
    %cst_56 = arith.constant dense<0.000000e+00> : vector<256x8xf32>
    %26 = tpu.matmul %24, %25, %cst_56 {dimension_numbers = #tpu.dot_dimension_numbers<[1], [0], [0], [1], [0, 0, 1, 1], [], []>} : vector<256x36xf32>, vector<36x8xf32>, vector<256x8xf32> -> vector<256x8xf32>
    %c0_57 = arith.constant 0 : index
    %c0_58 = arith.constant 0 : index
    %27 = vector.load %arg3[%c0_57, %c0_58] : memref<1x8xf32, #tpu.memory_space<vmem>>, vector<1x8xf32>
    %28 = vector.broadcast %27 : vector<1x8xf32> to vector<256x8xf32>
    %29 = arith.addf %26, %28 : vector<256x8xf32>
    %cst_59 = arith.constant 1.000000e-01 : f32
    %30 = vector.broadcast %cst_59 : f32 to vector<256x8xf32>
    %31 = arith.mulf %29, %30 : vector<256x8xf32>
    %32 = arith.maximumf %29, %31 : vector<256x8xf32>
    %33 = vector.shape_cast %32 : vector<256x8xf32> to vector<16x16x8xf32>
    %cst_60 = arith.constant 0.000000e+00 : f32
    %34 = vector.broadcast %cst_60 : f32 to vector<18x25x8xf32>
    %c0_61 = arith.constant 0 : index
    %c0_62 = arith.constant 0 : index
    %c0_63 = arith.constant 0 : index
    %35 = vector.load %arg15[%c0_61, %c0_62, %c0_63] : memref<18x25x8xf32, #tpu.memory_space<vmem>>, vector<18x25x8xf32>
    tpu.vector_store %arg15[%c0_61, %c0_62, %c0_63], %34 {strides = array<i32>} : memref<18x25x8xf32, #tpu.memory_space<vmem>>, vector<18x25x8xf32>,
    %c1_64 = arith.constant 1 : index
    %c8_65 = arith.constant 8 : index
    %c0_66 = arith.constant 0 : index
    %36 = vector.load %arg15[%c1_64, %c8_65, %c0_66] : memref<18x25x8xf32, #tpu.memory_space<vmem>>, vector<16x16x8xf32>
    tpu.vector_store %arg15[%c1_64, %c8_65, %c0_66], %33 {strides = array<i32>} : memref<18x25x8xf32, #tpu.memory_space<vmem>>, vector<16x16x8xf32>,
    %c0_67 = arith.constant 0 : index
    %c7_68 = arith.constant 7 : index
    %c0_69 = arith.constant 0 : index
    %37 = tpu.strided_load %arg15[%c0_67, %c7_68, %c0_69] {strides = array<i32: 2, 2, 1>} : memref<18x25x8xf32, #tpu.memory_space<vmem>>, vector<8x8x8xf32>
    %c0_70 = arith.constant 0 : index
    %c0_71 = arith.constant 0 : index
    %c0_72 = arith.constant 0 : index
    %38 = vector.load %arg16[%c0_70, %c0_71, %c0_72] : memref<8x8x72xf32, #tpu.memory_space<vmem>>, vector<8x8x8xf32>
    tpu.vector_store %arg16[%c0_70, %c0_71, %c0_72], %37 {strides = array<i32>} : memref<8x8x72xf32, #tpu.memory_space<vmem>>, vector<8x8x8xf32>,
    %c0_73 = arith.constant 0 : index
    %c8_74 = arith.constant 8 : index
    %c0_75 = arith.constant 0 : index
    %39 = tpu.strided_load %arg15[%c0_73, %c8_74, %c0_75] {strides = array<i32: 2, 2, 1>} : memref<18x25x8xf32, #tpu.memory_space<vmem>>, vector<8x8x8xf32>
    %c0_76 = arith.constant 0 : index
    %c0_77 = arith.constant 0 : index
    %c8_78 = arith.constant 8 : index
    %40 = vector.load %arg16[%c0_76, %c0_77, %c8_78] : memref<8x8x72xf32, #tpu.memory_space<vmem>>, vector<8x8x8xf32>
    tpu.vector_store %arg16[%c0_76, %c0_77, %c8_78], %39 {strides = array<i32>} : memref<8x8x72xf32, #tpu.memory_space<vmem>>, vector<8x8x8xf32>,
    %c0_79 = arith.constant 0 : index
    %c9_80 = arith.constant 9 : index
    %c0_81 = arith.constant 0 : index
    %41 = tpu.strided_load %arg15[%c0_79, %c9_80, %c0_81] {strides = array<i32: 2, 2, 1>} : memref<18x25x8xf32, #tpu.memory_space<vmem>>, vector<8x8x8xf32>
    %c0_82 = arith.constant 0 : index
    %c0_83 = arith.constant 0 : index
    %c16_84 = arith.constant 16 : index
    %42 = vector.load %arg16[%c0_82, %c0_83, %c16_84] : memref<8x8x72xf32, #tpu.memory_space<vmem>>, vector<8x8x8xf32>
    tpu.vector_store %arg16[%c0_82, %c0_83, %c16_84], %41 {strides = array<i32>} : memref<8x8x72xf32, #tpu.memory_space<vmem>>, vector<8x8x8xf32>,
    %c1_85 = arith.constant 1 : index
    %c7_86 = arith.constant 7 : index
    %c0_87 = arith.constant 0 : index
    %43 = tpu.strided_load %arg15[%c1_85, %c7_86, %c0_87] {strides = array<i32: 2, 2, 1>} : memref<18x25x8xf32, #tpu.memory_space<vmem>>, vector<8x8x8xf32>
    %c0_88 = arith.constant 0 : index
    %c0_89 = arith.constant 0 : index
    %c24_90 = arith.constant 24 : index
    %44 = vector.load %arg16[%c0_88, %c0_89, %c24_90] : memref<8x8x72xf32, #tpu.memory_space<vmem>>, vector<8x8x8xf32>
    tpu.vector_store %arg16[%c0_88, %c0_89, %c24_90], %43 {strides = array<i32>} : memref<8x8x72xf32, #tpu.memory_space<vmem>>, vector<8x8x8xf32>,
    %c1_91 = arith.constant 1 : index
    %c8_92 = arith.constant 8 : index
    %c0_93 = arith.constant 0 : index
    %45 = tpu.strided_load %arg15[%c1_91, %c8_92, %c0_93] {strides = array<i32: 2, 2, 1>} : memref<18x25x8xf32, #tpu.memory_space<vmem>>, vector<8x8x8xf32>
    %c0_94 = arith.constant 0 : index
    %c0_95 = arith.constant 0 : index
    %c32_96 = arith.constant 32 : index
    %46 = vector.load %arg16[%c0_94, %c0_95, %c32_96] : memref<8x8x72xf32, #tpu.memory_space<vmem>>, vector<8x8x8xf32>
    tpu.vector_store %arg16[%c0_94, %c0_95, %c32_96], %45 {strides = array<i32>} : memref<8x8x72xf32, #tpu.memory_space<vmem>>, vector<8x8x8xf32>,
    %c1_97 = arith.constant 1 : index
    %c9_98 = arith.constant 9 : index
    %c0_99 = arith.constant 0 : index
    %47 = tpu.strided_load %arg15[%c1_97, %c9_98, %c0_99] {strides = array<i32: 2, 2, 1>} : memref<18x25x8xf32, #tpu.memory_space<vmem>>, vector<8x8x8xf32>
    %c0_100 = arith.constant 0 : index
    %c0_101 = arith.constant 0 : index
    %c40 = arith.constant 40 : index
    %48 = vector.load %arg16[%c0_100, %c0_101, %c40] : memref<8x8x72xf32, #tpu.memory_space<vmem>>, vector<8x8x8xf32>
    tpu.vector_store %arg16[%c0_100, %c0_101, %c40], %47 {strides = array<i32>} : memref<8x8x72xf32, #tpu.memory_space<vmem>>, vector<8x8x8xf32>,
    %c2_102 = arith.constant 2 : index
    %c7_103 = arith.constant 7 : index
    %c0_104 = arith.constant 0 : index
    %49 = tpu.strided_load %arg15[%c2_102, %c7_103, %c0_104] {strides = array<i32: 2, 2, 1>} : memref<18x25x8xf32, #tpu.memory_space<vmem>>, vector<8x8x8xf32>
    %c0_105 = arith.constant 0 : index
    %c0_106 = arith.constant 0 : index
    %c48 = arith.constant 48 : index
    %50 = vector.load %arg16[%c0_105, %c0_106, %c48] : memref<8x8x72xf32, #tpu.memory_space<vmem>>, vector<8x8x8xf32>
    tpu.vector_store %arg16[%c0_105, %c0_106, %c48], %49 {strides = array<i32>} : memref<8x8x72xf32, #tpu.memory_space<vmem>>, vector<8x8x8xf32>,
    %c2_107 = arith.constant 2 : index
    %c8_108 = arith.constant 8 : index
    %c0_109 = arith.constant 0 : index
    %51 = tpu.strided_load %arg15[%c2_107, %c8_108, %c0_109] {strides = array<i32: 2, 2, 1>} : memref<18x25x8xf32, #tpu.memory_space<vmem>>, vector<8x8x8xf32>
    %c0_110 = arith.constant 0 : index
    %c0_111 = arith.constant 0 : index
    %c56 = arith.constant 56 : index
    %52 = vector.load %arg16[%c0_110, %c0_111, %c56] : memref<8x8x72xf32, #tpu.memory_space<vmem>>, vector<8x8x8xf32>
    tpu.vector_store %arg16[%c0_110, %c0_111, %c56], %51 {strides = array<i32>} : memref<8x8x72xf32, #tpu.memory_space<vmem>>, vector<8x8x8xf32>,
    %c2_112 = arith.constant 2 : index
    %c9_113 = arith.constant 9 : index
    %c0_114 = arith.constant 0 : index
    %53 = tpu.strided_load %arg15[%c2_112, %c9_113, %c0_114] {strides = array<i32: 2, 2, 1>} : memref<18x25x8xf32, #tpu.memory_space<vmem>>, vector<8x8x8xf32>
    %c0_115 = arith.constant 0 : index
    %c0_116 = arith.constant 0 : index
    %c64 = arith.constant 64 : index
    %54 = vector.load %arg16[%c0_115, %c0_116, %c64] : memref<8x8x72xf32, #tpu.memory_space<vmem>>, vector<8x8x8xf32>
    tpu.vector_store %arg16[%c0_115, %c0_116, %c64], %53 {strides = array<i32>} : memref<8x8x72xf32, #tpu.memory_space<vmem>>, vector<8x8x8xf32>,
    %c0_117 = arith.constant 0 : index
    %c0_118 = arith.constant 0 : index
    %c0_119 = arith.constant 0 : index
    %55 = vector.load %arg16[%c0_117, %c0_118, %c0_119] : memref<8x8x72xf32, #tpu.memory_space<vmem>>, vector<8x8x72xf32>
    %56 = vector.shape_cast %55 : vector<8x8x72xf32> to vector<64x72xf32>
    %c0_120 = arith.constant 0 : index
    %c0_121 = arith.constant 0 : index
    %57 = vector.load %arg4[%c0_120, %c0_121] : memref<72x16xf32, #tpu.memory_space<vmem>>, vector<72x16xf32>
    %cst_122 = arith.constant dense<0.000000e+00> : vector<64x16xf32>
    %58 = tpu.matmul %56, %57, %cst_122 {dimension_numbers = #tpu.dot_dimension_numbers<[1], [0], [0], [1], [0, 0, 1, 1], [], []>} : vector<64x72xf32>, vector<72x16xf32>, vector<64x16xf32> -> vector<64x16xf32>
    %c0_123 = arith.constant 0 : index
    %c0_124 = arith.constant 0 : index
    %59 = vector.load %arg5[%c0_123, %c0_124] : memref<1x16xf32, #tpu.memory_space<vmem>>, vector<1x16xf32>
    %60 = vector.broadcast %59 : vector<1x16xf32> to vector<64x16xf32>
    %61 = arith.addf %58, %60 : vector<64x16xf32>
    %cst_125 = arith.constant 1.000000e-01 : f32
    %62 = vector.broadcast %cst_125 : f32 to vector<64x16xf32>
    %63 = arith.mulf %61, %62 : vector<64x16xf32>
    %64 = arith.maximumf %61, %63 : vector<64x16xf32>
    %65 = vector.shape_cast %64 : vector<64x16xf32> to vector<8x8x16xf32>
    %cst_126 = arith.constant 0.000000e+00 : f32
    %66 = vector.broadcast %cst_126 : f32 to vector<64x16xf32>
    %67 = vector.shape_cast %65 : vector<8x8x16xf32> to vector<64x16xf32>
    %c0_127 = arith.constant 0 : index
    %c0_128 = arith.constant 0 : index
    %68 = vector.load %arg6[%c0_127, %c0_128] : memref<16x16xf32, #tpu.memory_space<vmem>>, vector<16x16xf32>
    %cst_129 = arith.constant dense<0.000000e+00> : vector<64x16xf32>
    %69 = tpu.matmul %67, %68, %cst_129 {dimension_numbers = #tpu.dot_dimension_numbers<[1], [0], [0], [1], [0, 0, 1, 1], [], []>} : vector<64x16xf32>, vector<16x16xf32>, vector<64x16xf32> -> vector<64x16xf32>
    %70 = arith.addf %66, %69 : vector<64x16xf32>
    %c0_130 = arith.constant 0 : index
    %c0_131 = arith.constant 0 : index
    %71 = vector.load %arg7[%c0_130, %c0_131] : memref<1x16xf32, #tpu.memory_space<vmem>>, vector<1x16xf32>
    %72 = vector.broadcast %71 : vector<1x16xf32> to vector<64x16xf32>
    %73 = arith.addf %70, %72 : vector<64x16xf32>
    %cst_132 = arith.constant 1.000000e-01 : f32
    %74 = vector.broadcast %cst_132 : f32 to vector<64x16xf32>
    %75 = arith.mulf %73, %74 : vector<64x16xf32>
    %76 = arith.maximumf %73, %75 : vector<64x16xf32>
    %77 = vector.shape_cast %76 : vector<64x16xf32> to vector<8x8x16xf32>
    %cst_133 = arith.constant 0.000000e+00 : f32
    %78 = vector.broadcast %cst_133 : f32 to vector<10x17x16xf32>
    %c0_134 = arith.constant 0 : index
    %c0_135 = arith.constant 0 : index
    %c0_136 = arith.constant 0 : index
    %79 = vector.load %arg17[%c0_134, %c0_135, %c0_136] : memref<10x17x16xf32, #tpu.memory_space<vmem>>, vector<10x17x16xf32>
    tpu.vector_store %arg17[%c0_134, %c0_135, %c0_136], %78 {strides = array<i32>} : memref<10x17x16xf32, #tpu.memory_space<vmem>>, vector<10x17x16xf32>,
    %c1_137 = arith.constant 1 : index
    %c8_138 = arith.constant 8 : index
    %c0_139 = arith.constant 0 : index
    %80 = vector.load %arg17[%c1_137, %c8_138, %c0_139] : memref<10x17x16xf32, #tpu.memory_space<vmem>>, vector<8x8x16xf32>
    tpu.vector_store %arg17[%c1_137, %c8_138, %c0_139], %77 {strides = array<i32>} : memref<10x17x16xf32, #tpu.memory_space<vmem>>, vector<8x8x16xf32>,
    %c0_140 = arith.constant 0 : index
    %c7_141 = arith.constant 7 : index
    %c0_142 = arith.constant 0 : index
    %81 = vector.load %arg17[%c0_140, %c7_141, %c0_142] : memref<10x17x16xf32, #tpu.memory_space<vmem>>, vector<8x8x16xf32>
    %c0_143 = arith.constant 0 : index
    %c0_144 = arith.constant 0 : index
    %c0_145 = arith.constant 0 : index
    %82 = vector.load %arg18[%c0_143, %c0_144, %c0_145] : memref<8x8x144xf32, #tpu.memory_space<vmem>>, vector<8x8x16xf32>
    tpu.vector_store %arg18[%c0_143, %c0_144, %c0_145], %81 {strides = array<i32>} : memref<8x8x144xf32, #tpu.memory_space<vmem>>, vector<8x8x16xf32>,
    %c0_146 = arith.constant 0 : index
    %c8_147 = arith.constant 8 : index
    %c0_148 = arith.constant 0 : index
    %83 = vector.load %arg17[%c0_146, %c8_147, %c0_148] : memref<10x17x16xf32, #tpu.memory_space<vmem>>, vector<8x8x16xf32>
    %c0_149 = arith.constant 0 : index
    %c0_150 = arith.constant 0 : index
    %c16_151 = arith.constant 16 : index
    %84 = vector.load %arg18[%c0_149, %c0_150, %c16_151] : memref<8x8x144xf32, #tpu.memory_space<vmem>>, vector<8x8x16xf32>
    tpu.vector_store %arg18[%c0_149, %c0_150, %c16_151], %83 {strides = array<i32>} : memref<8x8x144xf32, #tpu.memory_space<vmem>>, vector<8x8x16xf32>,
    %c0_152 = arith.constant 0 : index
    %c9_153 = arith.constant 9 : index
    %c0_154 = arith.constant 0 : index
    %85 = vector.load %arg17[%c0_152, %c9_153, %c0_154] : memref<10x17x16xf32, #tpu.memory_space<vmem>>, vector<8x8x16xf32>
    %c0_155 = arith.constant 0 : index
    %c0_156 = arith.constant 0 : index
    %c32_157 = arith.constant 32 : index
    %86 = vector.load %arg18[%c0_155, %c0_156, %c32_157] : memref<8x8x144xf32, #tpu.memory_space<vmem>>, vector<8x8x16xf32>
    tpu.vector_store %arg18[%c0_155, %c0_156, %c32_157], %85 {strides = array<i32>} : memref<8x8x144xf32, #tpu.memory_space<vmem>>, vector<8x8x16xf32>,
    %c1_158 = arith.constant 1 : index
    %c7_159 = arith.constant 7 : index
    %c0_160 = arith.constant 0 : index
    %87 = vector.load %arg17[%c1_158, %c7_159, %c0_160] : memref<10x17x16xf32, #tpu.memory_space<vmem>>, vector<8x8x16xf32>
    %c0_161 = arith.constant 0 : index
    %c0_162 = arith.constant 0 : index
    %c48_163 = arith.constant 48 : index
    %88 = vector.load %arg18[%c0_161, %c0_162, %c48_163] : memref<8x8x144xf32, #tpu.memory_space<vmem>>, vector<8x8x16xf32>
    tpu.vector_store %arg18[%c0_161, %c0_162, %c48_163], %87 {strides = array<i32>} : memref<8x8x144xf32, #tpu.memory_space<vmem>>, vector<8x8x16xf32>,
    %c1_164 = arith.constant 1 : index
    %c8_165 = arith.constant 8 : index
    %c0_166 = arith.constant 0 : index
    %89 = vector.load %arg17[%c1_164, %c8_165, %c0_166] : memref<10x17x16xf32, #tpu.memory_space<vmem>>, vector<8x8x16xf32>
    %c0_167 = arith.constant 0 : index
    %c0_168 = arith.constant 0 : index
    %c64_169 = arith.constant 64 : index
    %90 = vector.load %arg18[%c0_167, %c0_168, %c64_169] : memref<8x8x144xf32, #tpu.memory_space<vmem>>, vector<8x8x16xf32>
    tpu.vector_store %arg18[%c0_167, %c0_168, %c64_169], %89 {strides = array<i32>} : memref<8x8x144xf32, #tpu.memory_space<vmem>>, vector<8x8x16xf32>,
    %c1_170 = arith.constant 1 : index
    %c9_171 = arith.constant 9 : index
    %c0_172 = arith.constant 0 : index
    %91 = vector.load %arg17[%c1_170, %c9_171, %c0_172] : memref<10x17x16xf32, #tpu.memory_space<vmem>>, vector<8x8x16xf32>
    %c0_173 = arith.constant 0 : index
    %c0_174 = arith.constant 0 : index
    %c80 = arith.constant 80 : index
    %92 = vector.load %arg18[%c0_173, %c0_174, %c80] : memref<8x8x144xf32, #tpu.memory_space<vmem>>, vector<8x8x16xf32>
    tpu.vector_store %arg18[%c0_173, %c0_174, %c80], %91 {strides = array<i32>} : memref<8x8x144xf32, #tpu.memory_space<vmem>>, vector<8x8x16xf32>,
    %c2_175 = arith.constant 2 : index
    %c7_176 = arith.constant 7 : index
    %c0_177 = arith.constant 0 : index
    %93 = vector.load %arg17[%c2_175, %c7_176, %c0_177] : memref<10x17x16xf32, #tpu.memory_space<vmem>>, vector<8x8x16xf32>
    %c0_178 = arith.constant 0 : index
    %c0_179 = arith.constant 0 : index
    %c96 = arith.constant 96 : index
    %94 = vector.load %arg18[%c0_178, %c0_179, %c96] : memref<8x8x144xf32, #tpu.memory_space<vmem>>, vector<8x8x16xf32>
    tpu.vector_store %arg18[%c0_178, %c0_179, %c96], %93 {strides = array<i32>} : memref<8x8x144xf32, #tpu.memory_space<vmem>>, vector<8x8x16xf32>,
    %c2_180 = arith.constant 2 : index
    %c8_181 = arith.constant 8 : index
    %c0_182 = arith.constant 0 : index
    %95 = vector.load %arg17[%c2_180, %c8_181, %c0_182] : memref<10x17x16xf32, #tpu.memory_space<vmem>>, vector<8x8x16xf32>
    %c0_183 = arith.constant 0 : index
    %c0_184 = arith.constant 0 : index
    %c112 = arith.constant 112 : index
    %96 = vector.load %arg18[%c0_183, %c0_184, %c112] : memref<8x8x144xf32, #tpu.memory_space<vmem>>, vector<8x8x16xf32>
    tpu.vector_store %arg18[%c0_183, %c0_184, %c112], %95 {strides = array<i32>} : memref<8x8x144xf32, #tpu.memory_space<vmem>>, vector<8x8x16xf32>,
    %c2_185 = arith.constant 2 : index
    %c9_186 = arith.constant 9 : index
    %c0_187 = arith.constant 0 : index
    %97 = vector.load %arg17[%c2_185, %c9_186, %c0_187] : memref<10x17x16xf32, #tpu.memory_space<vmem>>, vector<8x8x16xf32>
    %c0_188 = arith.constant 0 : index
    %c0_189 = arith.constant 0 : index
    %c128 = arith.constant 128 : index
    %98 = vector.load %arg18[%c0_188, %c0_189, %c128] : memref<8x8x144xf32, #tpu.memory_space<vmem>>, vector<8x8x16xf32>
    tpu.vector_store %arg18[%c0_188, %c0_189, %c128], %97 {strides = array<i32>} : memref<8x8x144xf32, #tpu.memory_space<vmem>>, vector<8x8x16xf32>,
    %c0_190 = arith.constant 0 : index
    %c0_191 = arith.constant 0 : index
    %c0_192 = arith.constant 0 : index
    %99 = vector.load %arg18[%c0_190, %c0_191, %c0_192] : memref<8x8x144xf32, #tpu.memory_space<vmem>>, vector<8x8x144xf32>
    %100 = vector.shape_cast %99 : vector<8x8x144xf32> to vector<64x144xf32>
    %c0_193 = arith.constant 0 : index
    %c0_194 = arith.constant 0 : index
    %101 = vector.load %arg8[%c0_193, %c0_194] : memref<144x32xf32, #tpu.memory_space<vmem>>, vector<144x32xf32>
    %cst_195 = arith.constant dense<0.000000e+00> : vector<64x32xf32>
    %102 = tpu.matmul %100, %101, %cst_195 {dimension_numbers = #tpu.dot_dimension_numbers<[1], [0], [0], [1], [0, 0, 1, 1], [], []>} : vector<64x144xf32>, vector<144x32xf32>, vector<64x32xf32> -> vector<64x32xf32>
    %c0_196 = arith.constant 0 : index
    %c0_197 = arith.constant 0 : index
    %103 = vector.load %arg9[%c0_196, %c0_197] : memref<1x32xf32, #tpu.memory_space<vmem>>, vector<1x32xf32>
    %104 = vector.broadcast %103 : vector<1x32xf32> to vector<64x32xf32>
    %105 = arith.addf %102, %104 : vector<64x32xf32>
    %cst_198 = arith.constant 1.000000e-01 : f32
    %106 = vector.broadcast %cst_198 : f32 to vector<64x32xf32>
    %107 = arith.mulf %105, %106 : vector<64x32xf32>
    %108 = arith.maximumf %105, %107 : vector<64x32xf32>
    %109 = vector.shape_cast %108 : vector<64x32xf32> to vector<8x8x32xf32>
    %cst_199 = arith.constant 0.000000e+00 : f32
    %110 = vector.broadcast %cst_199 : f32 to vector<64x32xf32>
    %111 = vector.shape_cast %109 : vector<8x8x32xf32> to vector<64x32xf32>
    %c0_200 = arith.constant 0 : index
    %c0_201 = arith.constant 0 : index
    %112 = vector.load %arg10[%c0_200, %c0_201] : memref<48x32xf32, #tpu.memory_space<vmem>>, vector<32x32xf32>
    %cst_202 = arith.constant dense<0.000000e+00> : vector<64x32xf32>
    %113 = tpu.matmul %111, %112, %cst_202 {dimension_numbers = #tpu.dot_dimension_numbers<[1], [0], [0], [1], [0, 0, 1, 1], [], []>} : vector<64x32xf32>, vector<32x32xf32>, vector<64x32xf32> -> vector<64x32xf32>
    %114 = arith.addf %110, %113 : vector<64x32xf32>
    %115 = vector.shape_cast %77 : vector<8x8x16xf32> to vector<64x16xf32>
    %c32_203 = arith.constant 32 : index
    %c0_204 = arith.constant 0 : index
    %116 = vector.load %arg10[%c32_203, %c0_204] : memref<48x32xf32, #tpu.memory_space<vmem>>, vector<16x32xf32>
    %cst_205 = arith.constant dense<0.000000e+00> : vector<64x32xf32>
    %117 = tpu.matmul %115, %116, %cst_205 {dimension_numbers = #tpu.dot_dimension_numbers<[1], [0], [0], [1], [0, 0, 1, 1], [], []>} : vector<64x16xf32>, vector<16x32xf32>, vector<64x32xf32> -> vector<64x32xf32>
    %118 = arith.addf %114, %117 : vector<64x32xf32>
    %c0_206 = arith.constant 0 : index
    %c0_207 = arith.constant 0 : index
    %119 = vector.load %arg11[%c0_206, %c0_207] : memref<1x32xf32, #tpu.memory_space<vmem>>, vector<1x32xf32>
    %120 = vector.broadcast %119 : vector<1x32xf32> to vector<64x32xf32>
    %121 = arith.addf %118, %120 : vector<64x32xf32>
    %cst_208 = arith.constant 1.000000e-01 : f32
    %122 = vector.broadcast %cst_208 : f32 to vector<64x32xf32>
    %123 = arith.mulf %121, %122 : vector<64x32xf32>
    %124 = arith.maximumf %121, %123 : vector<64x32xf32>
    %125 = vector.shape_cast %124 : vector<64x32xf32> to vector<8x8x32xf32>
    %c0_209 = arith.constant 0 : index
    %c0_210 = arith.constant 0 : index
    %c0_211 = arith.constant 0 : index
    %c0_212 = arith.constant 0 : index
    %126 = vector.load %arg12[%c0_209, %c0_210, %c0_211, %c0_212] : memref<1x8x8x32xf32, #tpu.memory_space<vmem>>, vector<1x8x8x32xf32>
    %127 = vector.shape_cast %126 : vector<1x8x8x32xf32> to vector<8x8x32xf32>
    %128 = vector.shape_cast %125 : vector<8x8x32xf32> to vector<1x8x8x32xf32>
    tpu.vector_store %arg12[%c0_209, %c0_210, %c0_211, %c0_212], %128 {strides = array<i32>} : memref<1x8x8x32xf32, #tpu.memory_space<vmem>>, vector<1x8x8x32xf32>,
    return
  }
  func.func @transform_0(%arg0: i32) -> (i32, i32, i32, i32) {
    %c0_i32 = arith.constant 0 : i32
    %c0_i32_0 = arith.constant 0 : i32
    %c0_i32_1 = arith.constant 0 : i32
    %c0_i32_2 = arith.constant 0 : i32
    return %arg0, %c0_i32, %c0_i32_0, %c0_i32_1 : i32, i32, i32, i32
  }
  func.func @transform_1(%arg0: i32) -> (i32, i32) {
    %c0_i32 = arith.constant 0 : i32
    %c0_i32_0 = arith.constant 0 : i32
    %c0_i32_1 = arith.constant 0 : i32
    return %c0_i32, %c0_i32_0 : i32, i32
  }
  func.func @transform_2(%arg0: i32) -> (i32, i32) {
    %c0_i32 = arith.constant 0 : i32
    %c0_i32_0 = arith.constant 0 : i32
    %c0_i32_1 = arith.constant 0 : i32
    return %c0_i32, %c0_i32_0 : i32, i32
  }
  func.func @transform_3(%arg0: i32) -> (i32, i32) {
    %c0_i32 = arith.constant 0 : i32
    %c0_i32_0 = arith.constant 0 : i32
    %c0_i32_1 = arith.constant 0 : i32
    return %c0_i32, %c0_i32_0 : i32, i32
  }
  func.func @transform_4(%arg0: i32) -> (i32, i32) {
    %c0_i32 = arith.constant 0 : i32
    %c0_i32_0 = arith.constant 0 : i32
    %c0_i32_1 = arith.constant 0 : i32
    return %c0_i32, %c0_i32_0 : i32, i32
  }
  func.func @transform_5(%arg0: i32) -> (i32, i32) {
    %c0_i32 = arith.constant 0 : i32
    %c0_i32_0 = arith.constant 0 : i32
    %c0_i32_1 = arith.constant 0 : i32
    return %c0_i32, %c0_i32_0 : i32, i32
  }
  func.func @transform_6(%arg0: i32) -> (i32, i32) {
    %c0_i32 = arith.constant 0 : i32
    %c0_i32_0 = arith.constant 0 : i32
    %c0_i32_1 = arith.constant 0 : i32
    return %c0_i32, %c0_i32_0 : i32, i32
  }
  func.func @transform_7(%arg0: i32) -> (i32, i32) {
    %c0_i32 = arith.constant 0 : i32
    %c0_i32_0 = arith.constant 0 : i32
    %c0_i32_1 = arith.constant 0 : i32
    return %c0_i32, %c0_i32_0 : i32, i32
  }
  func.func @transform_8(%arg0: i32) -> (i32, i32) {
    %c0_i32 = arith.constant 0 : i32
    %c0_i32_0 = arith.constant 0 : i32
    %c0_i32_1 = arith.constant 0 : i32
    return %c0_i32, %c0_i32_0 : i32, i32
  }
  func.func @transform_9(%arg0: i32) -> (i32, i32) {
    %c0_i32 = arith.constant 0 : i32
    %c0_i32_0 = arith.constant 0 : i32
    %c0_i32_1 = arith.constant 0 : i32
    return %c0_i32, %c0_i32_0 : i32, i32
  }
  func.func @transform_10(%arg0: i32) -> (i32, i32) {
    %c0_i32 = arith.constant 0 : i32
    %c0_i32_0 = arith.constant 0 : i32
    %c0_i32_1 = arith.constant 0 : i32
    return %c0_i32, %c0_i32_0 : i32, i32
  }
  func.func @transform_11(%arg0: i32) -> (i32, i32, i32, i32) {
    %c0_i32 = arith.constant 0 : i32
    %c0_i32_0 = arith.constant 0 : i32
    %c0_i32_1 = arith.constant 0 : i32
    %c0_i32_2 = arith.constant 0 : i32
    return %arg0, %c0_i32, %c0_i32_0, %c0_i32_1 : i32, i32, i32, i32
  }
}

</mosaic_0001>

<bundles_post_ra>
// kernel: _lambda_.1
= control target key start
LH: loop header
LB: loop body
LE: loop exit
PB: predicated region body
PF: predicated region fallthrough
CT: control target
= control target key end

     0   :  { %s6466_s0 = inlined_call_operand.vmem [shape: f32[2,16,16,4], index: 0, kind: input, shape index: {}]   ;;  %s6467_s1 = inlined_call_operand.vmem [shape: f32[36,8], index: 1, kind: input, shape index: {}]   ;;  %s6468_s2 = inlined_call_operand.vmem [shape: f32[1,8], index: 2, kind: input, shape index: {}]   ;;  %s6469_s3 = inlined_call_operand.vmem [shape: f32[72,16], index: 3, kind: input, shape index: {}]   ;;  %s6470_s4 = inlined_call_operand.vmem [shape: f32[1,16], index: 4, kind: input, shape index: {}]   ;;  %s6471_s5 = inlined_call_operand.vmem [shape: f32[16,16], index: 5, kind: input, shape index: {}]   ;;  %s6472_s6 = inlined_call_operand.vmem [shape: f32[1,16], index: 6, kind: input, shape index: {}]   ;;  %s6473_s7 = inlined_call_operand.vmem [shape: f32[144,32], index: 7, kind: input, shape index: {}]   ;;  %s6474_s8 = inlined_call_operand.vmem [shape: f32[1,32], index: 8, kind: input, shape index: {}]   ;;  %s6475_s9 = inlined_call_operand.vmem [shape: f32[48,32], index: 9, kind: input, shape index: {}]   ;;  %s6476_s10 = inlined_call_operand.vmem [shape: f32[1,32], index: 10, kind: input, shape index: {}]   ;;  %s6477_s11 = inlined_call_operand.hbm [shape: f32[2,8,8,32], index: 11, kind: output, shape index: {}]  }
   0x1   :  { %6505 = sst [smem:[#allocation11_spill]] %s6466_s0 }
   0x2   :  { %6506 = sst [smem:[#allocation12_spill]] %s6467_s1 }
   0x3   :  { %6507 = sst [smem:[#allocation13_spill]] %s6468_s2 }
   0x4   :  { %6508 = sst [smem:[#allocation14_spill]] %s6469_s3 }
   0x5   :  { %6509 = sst [smem:[#allocation15_spill]] %s6470_s4 }
   0x6   :  { %16 = vsyncpa [#allocation9], 0 }
   0x7   :  { %18 = vsyncpa [#allocation9 + $0x1], 0  ;;  %s4412_s17 = smov 0   ;;  %s4414_s18 = smov 0  }
   0x8   :  { %s4416_s19 = smov 0   ;;  %s4418_s20 = smov 0  }
   0x9 LB: > { %s4433_s21 = sadd.s32 4294967295, %s4333_s20   ;;  %s4106_s22 = sadd.s32 4294967294, %s4333_s20   ;;  %s4333_s20 = sphi %s4418_s20, %s6534_s20   ;;  %s4329_s19 = sphi %s4416_s19, %s6533_s19   ;;  %s4325_s18 = sphi %s4414_s18, %s6532_s18   ;;  %s4321_s17 = sphi %s4412_s17, %s6531_s17  }
   0xa   : > { %s4437_s23 = sadd.s32 1, %s4333_s20   ;;  %s267_s24 = sadd.s32 1, %s4329_s19 }
   0xb   : > { %s264_s25 = ssub.s32 %s4333_s20, %s4437_s23  ;;  %p277_p0 = scmp.ne.s32.totalorder %s4329_s19, %s4325_s18 }
   0xc   : > { %p265_p1 = scmp.eq.s32.totalorder %s264_s25, 0  ;;  %p278_p2 = scmp.eq.s32.totalorder %s4433_s21, 1 }
   0xd   : > { %p283_p3 = scmp.ne.s32.totalorder %s4325_s18, %s4321_s17  ;;  %p284_p4 = scmp.eq.s32.totalorder %s4106_s22, 1 }
   0xe   : > { %s4448_s26 = scalar_select %p265_p1, %s4329_s19, %s267_s24  }
   0xf   : > { %p4450_p5 = por %p278_p2, %p277_p0  ;;  %p4454_p6 = por %p284_p4, %p283_p3 }
  0x10   : > { %p4109_p7 = scmp.ge.s32.totalorder %s4333_s20, 1  ;;  %p340_p8 = scmp.lt.s32.totalorder %s4333_s20, 3 }
  0x12   : > { %p341_p9 = pnand %p4109_p7, %p340_p8 }
  0x13   : > { %s6478_s29 = smov (!%p341_p9), 4   ;;  %p380_p10 = scmp.lt.s32.totalorder (!%p341_p9), %s4433_s21, 1 }
  0x14   : > { %344 = sbr.rel (%p341_p9) target bundleno = 1860 (0x744), region = 64  ;;  %s6512_s0 = sld [smem:[#allocation11_spill]] (!%p341_p9) }
  0x15   : > { %s6485_s16 = smov (!%p341_p9), 16   ;;  %s6483_s22 = smov (!%p341_p9), 12  }
  0x16   : > { %s6481_s24 = smov (!%p341_p9), 8   ;;  %s4340_s25 = smov (!%p341_p9), 28  }
  0x17   : > { %s6491_s13 = smov (!%p341_p9), 32   ;;  %s6513_s1 = sld [smem:[#allocation12_spill]] (!%p341_p9) }
  0x18   : > { %s6517_s14 = smov (!%p341_p9), 20   ;;  %s6518_s2 = sld [smem:[#allocation13_spill]] (!%p341_p9) }
  0x19   : > { %vm417_vm0 = vcmask 31744   ;;  %v4335_v0 = vmov 0.0   ;;  %s381_s30 = scalar_select %p380_p10, %s4433_s21, 1  ;;  %vm421_vm1 = vcmask 24576   ;;  %vm748_vm2 = vcmask 64544  }
  0x1a   : > { %419 = vst.msk [vmem:[#allocation2 + $0x8] sm:$0xff] %vm417_vm0, %v4335_v0  ;;  %vm2271_vm3 = vcmask 1043456   ;;  %vm941_vm4 = vcmask 97344   ;;  %vm1134_vm5 = vcmask 130144   ;;  %vm1327_vm6 = vcmask 162944   ;;  %s6520_s3 = sld [smem:[#allocation14_spill]] }
  0x1b   : > { %418 = vst.msk [vmem:[#allocation2] sm:$0xff] %vm417_vm0, %v4335_v0  ;;  %s4191_s12 = sshll.u32 %s381_s30, 8  ;;  %s6489_s30 = smov 24   ;;  %vm1520_vm7 = vcmask 195744   ;;  %vm1714_vm8 = vcmask 228544   ;;  %vm1907_vm9 = vcmask 261344  }
  0x1c   : > { %420 = vst.msk [vmem:[#allocation2 + $0x10] sm:$0xff] %vm417_vm0, %v4335_v0  ;;  %s4565_s15 = scalar_lea.vmem %s6512_s0, %s4191_s12  ;;  %s6479_s12 = smov 20   ;;  %vm2100_vm10 = vcmask 294144   ;;  %vm2174_vm11 = vcmask 293888   ;;  %vm2452_vm12 = vcmask 64512   ;;  %vm2631_vm13 = vcmask 130112  }
  0x1d   : > { %423 = vst.msk [vmem:[#allocation2 + $0x20] sm:$0xff] %vm417_vm0, %v4335_v0  ;;  %v387_v3 = vld [vmem:[%s4565_s15 + $0x10] sm:$0xff]  ;;  %v385_v4 = vld [vmem:[%s4565_s15] sm:$0xff]  ;;  %v388_v5 = vld [vmem:[%s4565_s15 + $0x18] sm:$0xff]  ;;  %vm2688_vm14 = vcmask 195712   ;;  %vm2745_vm15 = vcmask 261312  }
  0x1e   : > { %424 = vst.msk [vmem:[#allocation2 + $0x28] sm:$0xff] %vm417_vm0, %v4335_v0  ;;  %v386_v6 = vld [vmem:[%s4565_s15 + $0x8] sm:$0xff]  ;;  %v389_v7 = vld [vmem:[%s4565_s15 + $0x20] sm:$0xff]  ;;  %v391_v8 = vld [vmem:[%s4565_s15 + $0x30] sm:$0xff]  ;;  %s6527_s4 = sld [smem:[#allocation15_spill]]  ;;  %s377_s0 = sand.u32 1, %s4325_s18  }
  0x1f   : > { %425 = vst.msk [vmem:[#allocation2 + $0x30] sm:$0xff] %vm417_vm0, %v4335_v0  ;;  %v390_v9 = vld [vmem:[%s4565_s15 + $0x28] sm:$0xff]  ;;  %v392_v10 = vld [vmem:[%s4565_s15 + $0x38] sm:$0xff]  ;;  %v393_v12 = vld [vmem:[%s4565_s15 + $0x40] sm:$0xff] }
  0x20   : > { %427 = vst.msk [vmem:[#allocation2 + $0x40] sm:$0xff] %vm417_vm0, %v4335_v0  ;;  %v394_v11 = vld [vmem:[%s4565_s15 + $0x48] sm:$0xff]  ;;  %v395_v14 = vld [vmem:[%s4565_s15 + $0x50] sm:$0xff]  ;;  %v397_v16 = vld [vmem:[%s4565_s15 + $0x60] sm:$0xff] }
  0x21   : > { %v588_v1 = vld [vmem:[#allocation2 + $0x8] sm:$0xff]  ;;  %428 = vst.msk [vmem:[#allocation2 + $0x48] sm:$0xff] %vm417_vm0, %v4335_v0  ;;  %v396_v17 = vld [vmem:[%s4565_s15 + $0x58] sm:$0xff]  ;;  %v399_v21 = vld [vmem:[%s4565_s15 + $0x70] sm:$0xff] }
  0x22   : > { %652 = vrot.lane.b32.xlu0 %v588_v1, %s6478_s29  ;;  %429 = vst.msk [vmem:[#allocation2 + $0x50] sm:$0xff] %vm417_vm0, %v4335_v0  ;;  %v398_v18 = vld [vmem:[%s4565_s15 + $0x68] sm:$0xff]  ;;  %v400_v20 = vld [vmem:[%s4565_s15 + $0x78] sm:$0xff]  ;;  %v401_v23 = vld [vmem:[%s4565_s15 + $0x80] sm:$0xff] }
  0x23   : > { %431 = vst.msk [vmem:[#allocation2 + $0x60] sm:$0xff] %vm417_vm0, %v4335_v0  ;;  %v589_v2 = vld [vmem:[#allocation2 + $0x10] sm:$0xff]  ;;  %v402_v26 = vld [vmem:[%s4565_s15 + $0x88] sm:$0xff]  ;;  %v404_v28 = vld [vmem:[%s4565_s15 + $0x98] sm:$0xff] }
  0x24   : > { %432 = vst.msk [vmem:[#allocation2 + $0x68] sm:$0xff] %vm417_vm0, %v4335_v0  ;;  %v403_v25 = vld [vmem:[%s4565_s15 + $0x90] sm:$0xff]  ;;  %v406_v31 = vld [vmem:[%s4565_s15 + $0xa8] sm:$0xff]  ;;  %v405_v32 = vld [vmem:[%s4565_s15 + $0xa0] sm:$0xff] }
  0x25   : > { %433 = vst.msk [vmem:[#allocation2 + $0x70] sm:$0xff] %vm417_vm0, %v4335_v0  ;;  %v407_v34 = vld [vmem:[%s4565_s15 + $0xb0] sm:$0xff]  ;;  %v409_v37 = vld [vmem:[%s4565_s15 + $0xc0] sm:$0xff]  ;;  %v408_v38 = vld [vmem:[%s4565_s15 + $0xb8] sm:$0xff] }
  0x26   : > { %435 = vst.msk [vmem:[#allocation2 + $0x80] sm:$0xff] %vm417_vm0, %v4335_v0  ;;  %v410_v40 = vld [vmem:[%s4565_s15 + $0xc8] sm:$0xff]  ;;  %v412_v43 = vld [vmem:[%s4565_s15 + $0xd8] sm:$0xff]  ;;  %v411_v44 = vld [vmem:[%s4565_s15 + $0xd0] sm:$0xff] }
  0x27   : > { %436 = vst.msk [vmem:[#allocation2 + $0x88] sm:$0xff] %vm417_vm0, %v4335_v0  ;;  %v413_v46 = vld [vmem:[%s4565_s15 + $0xe0] sm:$0xff] }
  0x28   : > { %437 = vst.msk [vmem:[#allocation2 + $0x90] sm:$0xff] %vm417_vm0, %v4335_v0 }
  0x29   : > { %439 = vst.msk [vmem:[#allocation2 + $0xa0] sm:$0xff] %vm417_vm0, %v4335_v0 }
  0x2a   : > { %440 = vst.msk [vmem:[#allocation2 + $0xa8] sm:$0xff] %vm417_vm0, %v4335_v0  ;;  %654 = vrot.lane.b32.xlu0 %v589_v2, %s6478_s29 }
  0x2b   : > { %441 = vst.msk [vmem:[#allocation2 + $0xb0] sm:$0xff] %vm417_vm0, %v4335_v0 }
  0x2c   : > { %443 = vst.msk [vmem:[#allocation2 + $0xc0] sm:$0xff] %vm417_vm0, %v4335_v0 }
  0x2d   : > { %444 = vst.msk [vmem:[#allocation2 + $0xc8] sm:$0xff] %vm417_vm0, %v4335_v0 }
  0x2e   : > { %445 = vst.msk [vmem:[#allocation2 + $0xd0] sm:$0xff] %vm417_vm0, %v4335_v0 }
  0x2f   : > { %447 = vst.msk [vmem:[#allocation2 + $0xe0] sm:$0xff] %vm417_vm0, %v4335_v0 }
  0x30   : > { %448 = vst.msk [vmem:[#allocation2 + $0xe8] sm:$0xff] %vm417_vm0, %v4335_v0 }
  0x31   : > { %449 = vst.msk [vmem:[#allocation2 + $0xf0] sm:$0xff] %vm417_vm0, %v4335_v0 }
  0x32   : > { %451 = vst.msk [vmem:[#allocation2 + $0x100] sm:$0xff] %vm417_vm0, %v4335_v0 }
  0x33   : > { %452 = vst.msk [vmem:[#allocation2 + $0x108] sm:$0xff] %vm417_vm0, %v4335_v0 }
  0x34   : > { %453 = vst.msk [vmem:[#allocation2 + $0x110] sm:$0xff] %vm417_vm0, %v4335_v0 }
  0x35   : > { %455 = vst.msk [vmem:[#allocation2 + $0x120] sm:$0xff] %vm417_vm0, %v4335_v0 }
  0x36   : > { %456 = vst.msk [vmem:[#allocation2 + $0x128] sm:$0xff] %vm417_vm0, %v4335_v0 }
  0x37   : > { %457 = vst.msk [vmem:[#allocation2 + $0x130] sm:$0xff] %vm417_vm0, %v4335_v0 }
  0x38   : > { %459 = vst.msk [vmem:[#allocation2 + $0x140] sm:$0xff] %vm417_vm0, %v4335_v0 }
  0x39   : > { %460 = vst.msk [vmem:[#allocation2 + $0x148] sm:$0xff] %vm417_vm0, %v4335_v0 }
  0x3a   : > { %461 = vst.msk [vmem:[#allocation2 + $0x150] sm:$0xff] %vm417_vm0, %v4335_v0 }
  0x3b   : > { %463 = vst.msk [vmem:[#allocation2 + $0x160] sm:$0xff] %vm417_vm0, %v4335_v0 }
  0x3c   : > { %464 = vst.msk [vmem:[#allocation2 + $0x168] sm:$0xff] %vm417_vm0, %v4335_v0 }
  0x3d   : > { %465 = vst.msk [vmem:[#allocation2 + $0x170] sm:$0xff] %vm417_vm0, %v4335_v0 }
  0x3e   : > { %467 = vst.msk [vmem:[#allocation2 + $0x180] sm:$0xff] %vm417_vm0, %v4335_v0 }
  0x3f   : > { %468 = vst.msk [vmem:[#allocation2 + $0x188] sm:$0xff] %vm417_vm0, %v4335_v0 }
  0x40   : > { %469 = vst.msk [vmem:[#allocation2 + $0x190] sm:$0xff] %vm417_vm0, %v4335_v0 }
  0x41   : > { %471 = vst.msk [vmem:[#allocation2 + $0x1a0] sm:$0xff] %vm417_vm0, %v4335_v0 }
  0x42   : > { %472 = vst.msk [vmem:[#allocation2 + $0x1a8] sm:$0xff] %vm417_vm0, %v4335_v0 }
  0x43   : > { %473 = vst.msk [vmem:[#allocation2 + $0x1b0] sm:$0xff] %vm417_vm0, %v4335_v0 }
  0x44   : > { %475 = vst.msk [vmem:[#allocation2 + $0x1c0] sm:$0xff] %vm417_vm0, %v4335_v0 }
  0x45   : > { %476 = vst.msk [vmem:[#allocation2 + $0x1c8] sm:$0xff] %vm417_vm0, %v4335_v0 }
  0x46   : > { %477 = vst.msk [vmem:[#allocation2 + $0x1d0] sm:$0xff] %vm417_vm0, %v4335_v0 }
  0x47   : > { %479 = vst.msk [vmem:[#allocation2 + $0x1e0] sm:$0xff] %vm417_vm0, %v4335_v0 }
  0x48   : > { %480 = vst.msk [vmem:[#allocation2 + $0x1e8] sm:$0xff] %vm417_vm0, %v4335_v0 }
  0x49   : > { %481 = vst.msk [vmem:[#allocation2 + $0x1f0] sm:$0xff] %vm417_vm0, %v4335_v0 }
  0x4a   : > { %483 = vst.msk [vmem:[#allocation2 + $0x200] sm:$0xff] %vm417_vm0, %v4335_v0 }
  0x4b   : > { %484 = vst.msk [vmem:[#allocation2 + $0x208] sm:$0xff] %vm417_vm0, %v4335_v0 }
  0x4c   : > { %485 = vst.msk [vmem:[#allocation2 + $0x210] sm:$0xff] %vm417_vm0, %v4335_v0 }
  0x4d   : > { %487 = vst.msk [vmem:[#allocation2 + $0x220] sm:$0xff] %vm417_vm0, %v4335_v0 }
  0x4e   : > { %488 = vst.msk [vmem:[#allocation2 + $0x228] sm:$0xff] %vm417_vm0, %v4335_v0 }
  0x4f   : > { %489 = vst.msk [vmem:[#allocation2 + $0x230] sm:$0xff] %vm417_vm0, %v4335_v0 }
  0x50   : > { %494 = vst.msk [vmem:[#allocation2 + $0x48] sm:$0xff] %vm417_vm0, %v387_v3  ;;  %v524_v3 = vld [vmem:[#allocation2 + $0x7] sm:$0xff] }
  0x51   : > { %492 = vst.msk [vmem:[#allocation2 + $0x28] sm:$0xff] %vm417_vm0, %v385_v4  ;;  %v781_v4 = vld [vmem:[#allocation2 + $0x9] sm:$0xff] }
  0x52   : > { %495 = vst.msk [vmem:[#allocation2 + $0x50] sm:$0xff] %vm417_vm0, %v388_v5 }
  0x53   : > { %493 = vst.msk [vmem:[#allocation2 + $0x30] sm:$0xff] %vm417_vm0, %v386_v6 }
  0x54   : > { %496 = vst.msk [vmem:[#allocation2 + $0x68] sm:$0xff] %vm417_vm0, %v389_v7 }
  0x55   : > { %498 = vst.msk [vmem:[#allocation2 + $0x88] sm:$0xff] %vm417_vm0, %v391_v8  ;;  %v525_v8 = vld [vmem:[#allocation2 + $0xf] sm:$0xff] }
  0x56   : > { %497 = vst.msk [vmem:[#allocation2 + $0x70] sm:$0xff] %vm417_vm0, %v390_v9 }
  0x57   : > { %v4594_v13 = vld [vmem:[#allocation2 + $0x48] sm:$0xff]  ;;  %499 = vst.msk [vmem:[#allocation2 + $0x90] sm:$0xff] %vm417_vm0, %v392_v10 }
  0x58   : > { %660 = vrot.lane.b32.xlu2 %v4594_v13, %s6478_s29  ;;  %v4600_v15 = vld [vmem:[#allocation2 + $0x28] sm:$0xff]  ;;  %501 = vst.msk [vmem:[#allocation2 + $0xb0] sm:$0xff] %vm417_vm0, %v394_v11 }
  0x59   : > { %656 = vrot.lane.b32.xlu1 %v4600_v15, %s6478_s29  ;;  %500 = vst.msk [vmem:[#allocation2 + $0xa8] sm:$0xff] %vm417_vm0, %v393_v12  ;;  %v4618_v22 = vld [vmem:[#allocation2 + $0x50] sm:$0xff]  ;;  %v974_v50 = vld [vmem:[#allocation2 + $0x27] sm:$0xff] }
  0x5a   : > { %502 = vst.msk [vmem:[#allocation2 + $0xc8] sm:$0xff] %vm417_vm0, %v395_v14  ;;  %v4622_v24 = vld [vmem:[#allocation2 + $0x30] sm:$0xff]  ;;  %v4701_v54 = vld [vmem:[#allocation2 + $0x47] sm:$0xff] }
  0x5b   : > { %v4610_v19 = vld [vmem:[#allocation2 + $0x68] sm:$0xff]  ;;  %504 = vst.msk [vmem:[#allocation2 + $0xe8] sm:$0xff] %vm417_vm0, %v397_v16 }
  0x5c   : > { %664 = vrot.lane.b32.xlu0 %v4610_v19, %s6478_s29  ;;  %503 = vst.msk [vmem:[#allocation2 + $0xd0] sm:$0xff] %vm417_vm0, %v396_v17  ;;  %v4641_v29 = vld [vmem:[#allocation2 + $0x88] sm:$0xff] }
  0x5d   : > { %505 = vst.msk [vmem:[#allocation2 + $0xf0] sm:$0xff] %vm417_vm0, %v398_v18  ;;  %v4643_v30 = vld [vmem:[#allocation2 + $0x70] sm:$0xff]  ;;  %v4748_v63 = vld [vmem:[#allocation2 + $0x87] sm:$0xff] }
  0x5e   : > { %507 = vst.msk [vmem:[#allocation2 + $0x110] sm:$0xff] %vm417_vm0, %v400_v20  ;;  %v4633_v27 = vld [vmem:[#allocation2 + $0x90] sm:$0xff]  ;;  %v4782_v12 = vld [vmem:[#allocation2 + $0x67] sm:$0xff] }
  0x5f   : > { %506 = vst.msk [vmem:[#allocation2 + $0x108] sm:$0xff] %vm417_vm0, %v399_v21  ;;  %v4659_v35 = vld [vmem:[#allocation2 + $0xb0] sm:$0xff] }
  0x60   : > { %662 = vrot.lane.b32.xlu2 %v4618_v22, %s6478_s29  ;;  %508 = vst.msk [vmem:[#allocation2 + $0x128] sm:$0xff] %vm417_vm0, %v401_v23  ;;  %v4661_v36 = vld [vmem:[#allocation2 + $0xa8] sm:$0xff] }
  0x61   : > { %658 = vrot.lane.b32.xlu1 %v4622_v24, %s6478_s29  ;;  %510 = vst.msk [vmem:[#allocation2 + $0x148] sm:$0xff] %vm417_vm0, %v403_v25  ;;  %v4651_v33 = vld [vmem:[#allocation2 + $0xc8] sm:$0xff] }
  0x62   : > { %509 = vst.msk [vmem:[#allocation2 + $0x130] sm:$0xff] %vm417_vm0, %v402_v26  ;;  %v4677_v41 = vld [vmem:[#allocation2 + $0xe8] sm:$0xff] }
  0x63   : > { %511 = vst.msk [vmem:[#allocation2 + $0x150] sm:$0xff] %vm417_vm0, %v404_v28  ;;  %v4679_v42 = vld [vmem:[#allocation2 + $0xd0] sm:$0xff]  ;;  %v4776_v10 = vld [vmem:[#allocation2 + $0xe7] sm:$0xff] }
  0x64   : > { %670 = vrot.lane.b32.xlu0 %v4633_v27, %s6478_s29  ;;  %513 = vst.msk [vmem:[#allocation2 + $0x170] sm:$0xff] %vm417_vm0, %v406_v31  ;;  %v4669_v39 = vld [vmem:[#allocation2 + $0xf0] sm:$0xff]  ;;  %v4810_v26 = vld [vmem:[#allocation2 + $0xa7] sm:$0xff] }
  0x65   : > { %512 = vst.msk [vmem:[#allocation2 + $0x168] sm:$0xff] %vm417_vm0, %v405_v32  ;;  %v605_v47 = vld [vmem:[#allocation2 + $0x110] sm:$0xff]  ;;  %v4816_v28 = vld [vmem:[#allocation2 + $0xc7] sm:$0xff] }
  0x66   : > { %514 = vst.msk [vmem:[#allocation2 + $0x188] sm:$0xff] %vm417_vm0, %v407_v34  ;;  %v4692_v48 = vld [vmem:[#allocation2 + $0x108] sm:$0xff] }
  0x67   : > { %516 = vst.msk [vmem:[#allocation2 + $0x1a8] sm:$0xff] %vm417_vm0, %v409_v37  ;;  %v606_v45 = vld [vmem:[#allocation2 + $0x128] sm:$0xff] }
  0x68   : > { %668 = vrot.lane.b32.xlu2 %v4641_v29, %s6478_s29  ;;  %515 = vst.msk [vmem:[#allocation2 + $0x190] sm:$0xff] %vm417_vm0, %v408_v38  ;;  %v608_v51 = vld [vmem:[#allocation2 + $0x148] sm:$0xff] }
  0x69   : > { %666 = vrot.lane.b32.xlu1 %v4643_v30, %s6478_s29  ;;  %517 = vst.msk [vmem:[#allocation2 + $0x1b0] sm:$0xff] %vm417_vm0, %v410_v40  ;;  %v607_v52 = vld [vmem:[#allocation2 + $0x130] sm:$0xff]  ;;  %v544_v23 = vld [vmem:[#allocation2 + $0x147] sm:$0xff] }
  0x6a   : > { %519 = vst.msk [vmem:[#allocation2 + $0x1d0] sm:$0xff] %vm417_vm0, %v412_v43  ;;  %v609_v49 = vld [vmem:[#allocation2 + $0x150] sm:$0xff] }
  0x6b   : > { %518 = vst.msk [vmem:[#allocation2 + $0x1c8] sm:$0xff] %vm417_vm0, %v411_v44  ;;  %v611_v55 = vld [vmem:[#allocation2 + $0x170] sm:$0xff] }
  0x6c   : > { %676 = vrot.lane.b32.xlu0 %v4651_v33, %s6478_s29  ;;  %520 = vst.msk [vmem:[#allocation2 + $0x1e8] sm:$0xff] %vm417_vm0, %v413_v46  ;;  %v610_v56 = vld [vmem:[#allocation2 + $0x168] sm:$0xff] }
  0x6d   : > { %558 = vst.msk [vmem:[#allocation3 + $0x10] sm:$0xff] %vm417_vm0, %v974_v50  ;;  %v612_v53 = vld [vmem:[#allocation2 + $0x188] sm:$0xff] }
  0x6e   : > { %560 = vst.msk [vmem:[#allocation3 + $0x20] sm:$0xff] %vm417_vm0, %v4701_v54  ;;  %v614_v58 = vld [vmem:[#allocation2 + $0x1a8] sm:$0xff] }
  0x6f   : > { %422 = vst.msk [vmem:[#allocation2 + $0x18] sm:$0x1] %vm421_vm1, %v4335_v0  ;;  %v613_v59 = vld [vmem:[#allocation2 + $0x190] sm:$0xff]  ;;  %v550_v44 = vld [vmem:[#allocation2 + $0x1a7] sm:$0xff] }
  0x70   : > { %674 = vrot.lane.b32.xlu2 %v4659_v35, %s6478_s29  ;;  %v615_v57 = vld [vmem:[#allocation2 + $0x1b0] sm:$0xff]  ;;  %426 = vst.msk [vmem:[#allocation2 + $0x38] sm:$0x1] %vm421_vm1, %v4335_v0  ;;  %v4847_v46 = vld [vmem:[#allocation2 + $0x107] sm:$0xff] }
  0x71   : > { %672 = vrot.lane.b32.xlu1 %v4661_v36, %s6478_s29  ;;  %430 = vst.msk [vmem:[#allocation2 + $0x58] sm:$0x1] %vm421_vm1, %v4335_v0  ;;  %v617_v61 = vld [vmem:[#allocation2 + $0x1d0] sm:$0xff] }
  0x72   : > { %434 = vst.msk [vmem:[#allocation2 + $0x78] sm:$0x1] %vm421_vm1, %v4335_v0  ;;  %v616_v62 = vld [vmem:[#allocation2 + $0x1c8] sm:$0xff] }
  0x73   : > { %438 = vst.msk [vmem:[#allocation2 + $0x98] sm:$0x1] %vm421_vm1, %v4335_v0  ;;  %v618_v60 = vld [vmem:[#allocation2 + $0x1e8] sm:$0xff] }
  0x74   : > { %682 = vrot.lane.b32.xlu0 %v4669_v39, %s6478_s29  ;;  %442 = vst.msk [vmem:[#allocation2 + $0xb8] sm:$0x1] %vm421_vm1, %v4335_v0  ;;  %v4752_v1 = vld [vmem:[#allocation2 + $0x4f] sm:$0xff] }
  0x75   : > { %446 = vst.msk [vmem:[#allocation2 + $0xd8] sm:$0x1] %vm421_vm1, %v4335_v0  ;;  %v975_v5 = vld [vmem:[#allocation2 + $0x2f] sm:$0xff] }
  0x76   : > { %450 = vst.msk [vmem:[#allocation2 + $0xf8] sm:$0x1] %vm421_vm1, %v4335_v0  ;;  %v4765_v6 = vld [vmem:[#allocation2 + $0xaf] sm:$0xff] }
  0x77   : > { %454 = vst.msk [vmem:[#allocation2 + $0x118] sm:$0x1] %vm421_vm1, %v4335_v0  ;;  %v1360_v9 = vld [vmem:[#allocation2 + $0x29] sm:$0xff]  ;;  %v782_v14 = vld [vmem:[#allocation2 + $0x11] sm:$0xff] }
  0x78   : > { %680 = vrot.lane.b32.xlu2 %v4677_v41, %s6478_s29  ;;  %458 = vst.msk [vmem:[#allocation2 + $0x138] sm:$0x1] %vm421_vm1, %v4335_v0  ;;  %v4791_v16 = vld [vmem:[#allocation2 + $0x10f] sm:$0xff] }
  0x79   : > { %678 = vrot.lane.b32.xlu1 %v4679_v42, %s6478_s29  ;;  %462 = vst.msk [vmem:[#allocation2 + $0x158] sm:$0x1] %vm421_vm1, %v4335_v0  ;;  %v4795_v18 = vld [vmem:[#allocation2 + $0x6f] sm:$0xff] }
  0x7a   : > { %466 = vst.msk [vmem:[#allocation2 + $0x178] sm:$0x1] %vm421_vm1, %v4335_v0  ;;  %v4802_v20 = vld [vmem:[#allocation2 + $0x8f] sm:$0xff] }
  0x7b   : > { %470 = vst.msk [vmem:[#allocation2 + $0x198] sm:$0x1] %vm421_vm1, %v4335_v0  ;;  %v1361_v21 = vld [vmem:[#allocation2 + $0x31] sm:$0xff]  ;;  %v4844_v43 = vld [vmem:[#allocation2 + $0x69] sm:$0xff] }
  0x7c   : > { %688 = vrot.lane.b32.xlu0 %v606_v45, %s6478_s29  ;;  %474 = vst.msk [vmem:[#allocation2 + $0x1b8] sm:$0x1] %vm421_vm1, %v4335_v0  ;;  %v4818_v31 = vld [vmem:[#allocation2 + $0x51] sm:$0xff] }
  0x7d   : > { %478 = vst.msk [vmem:[#allocation2 + $0x1d8] sm:$0x1] %vm421_vm1, %v4335_v0  ;;  %v4827_v34 = vld [vmem:[#allocation2 + $0xcf] sm:$0xff] }
  0x7e   : > { %482 = vst.msk [vmem:[#allocation2 + $0x1f8] sm:$0x1] %vm421_vm1, %v4335_v0  ;;  %v4833_v38 = vld [vmem:[#allocation2 + $0xef] sm:$0xff] }
  0x7f   : > { %486 = vst.msk [vmem:[#allocation2 + $0x218] sm:$0x1] %vm421_vm1, %v4335_v0 }
  0x80   : > { %686 = vrot.lane.b32.xlu2 %v605_v47, %s6478_s29  ;;  %490 = vst.msk [vmem:[#allocation2 + $0x238] sm:$0x1] %vm421_vm1, %v4335_v0  ;;  %vm2859_vm1 = vcmask 392512  }
  0x81   : > { %684 = vrot.lane.b32.xlu1 %v4692_v48, %s6478_s29  ;;  %561 = vst.msk [vmem:[#allocation3 + $0x28] sm:$0xff] %vm417_vm0, %v4752_v1 }
  0x82   : > { %564 = vst.msk [vmem:[#allocation3 + $0x40] sm:$0xff] %vm417_vm0, %v4748_v63 }
  0x83   : > { %556 = vst.msk [vmem:[#allocation3] sm:$0xff] %vm417_vm0, %v524_v3 }
  0x84   : > { %694 = vrot.lane.b32.xlu0 %v609_v49, %s6478_s29  ;;  %559 = vst.msk [vmem:[#allocation3 + $0x18] sm:$0xff] %vm417_vm0, %v975_v5 }
  0x85   : > { %567 = vst.msk [vmem:[#allocation3 + $0x58] sm:$0xff] %vm417_vm0, %v4765_v6 }
  0x86   : > { %557 = vst.msk [vmem:[#allocation3 + $0x8] sm:$0xff] %vm417_vm0, %v525_v8  ;;  %v554_v8 = vld [vmem:[#allocation2 + $0x1e7] sm:$0xff] }
  0x87   : > { %570 = vst.msk [vmem:[#allocation3 + $0x70] sm:$0xff] %vm417_vm0, %v4776_v10 }
  0x88   : > { %692 = vrot.lane.b32.xlu2 %v608_v51, %s6478_s29  ;;  %562 = vst.msk [vmem:[#allocation3 + $0x30] sm:$0xff] %vm417_vm0, %v4782_v12 }
  0x89   : > { %690 = vrot.lane.b32.xlu1 %v607_v52, %s6478_s29  ;;  %573 = vst.msk [vmem:[#allocation3 + $0x88] sm:$0xff] %vm417_vm0, %v4791_v16  ;;  %v4865_v52 = vld [vmem:[#allocation2 + $0x12f] sm:$0xff] }
  0x8a   : > { %563 = vst.msk [vmem:[#allocation3 + $0x38] sm:$0xff] %vm417_vm0, %v4795_v18 }
  0x8b   : > { %565 = vst.msk [vmem:[#allocation3 + $0x48] sm:$0xff] %vm417_vm0, %v4802_v20 }
  0x8c   : > { %700 = vrot.lane.b32.xlu0 %v612_v53, %s6478_s29  ;;  %576 = vst.msk [vmem:[#allocation3 + $0xa0] sm:$0xff] %vm417_vm0, %v544_v23  ;;  %v4938_v23 = vld [vmem:[#allocation2 + $0x91] sm:$0xff] }
  0x8d   : > { %566 = vst.msk [vmem:[#allocation3 + $0x50] sm:$0xff] %vm417_vm0, %v4810_v26 }
  0x8e   : > { %568 = vst.msk [vmem:[#allocation3 + $0x60] sm:$0xff] %vm417_vm0, %v4816_v28 }
  0x8f   : > { %569 = vst.msk [vmem:[#allocation3 + $0x68] sm:$0xff] %vm417_vm0, %v4827_v34 }
  0x90   : > { %698 = vrot.lane.b32.xlu2 %v611_v55, %s6478_s29  ;;  %571 = vst.msk [vmem:[#allocation3 + $0x78] sm:$0xff] %vm417_vm0, %v4833_v38 }
  0x91   : > { %696 = vrot.lane.b32.xlu1 %v610_v56, %s6478_s29  ;;  %582 = vst.msk [vmem:[#allocation3 + $0xd0] sm:$0xff] %vm417_vm0, %v550_v44 }
  0x92   : > { %572 = vst.msk [vmem:[#allocation3 + $0x80] sm:$0xff] %vm417_vm0, %v4847_v46 }
  0x93   : > { %575 = vst.msk [vmem:[#allocation3 + $0x98] sm:$0xff] %vm417_vm0, %v4865_v52 }
  0x94   : > { %706 = vrot.lane.b32.xlu0 %v615_v57, %s6478_s29  ;;  %v653_v2 = vpop.permute.xlu0 %652  ;;  %v546_v57 = vld [vmem:[#allocation2 + $0x167] sm:$0xff]  ;;  %586 = vst.msk [vmem:[#allocation3 + $0xf0] sm:$0xff] %vm417_vm0, %v554_v8 }
  0x95   : > { %749 = vst.msk [vmem:[#allocation3] sm:$0xff] %vm748_vm2, %v653_v2  ;;  %v4897_v2 = vld [vmem:[#allocation2 + $0x71] sm:$0xff] }
  0x96   : > { %578 = vst.msk [vmem:[#allocation3 + $0xb0] sm:$0xff] %vm417_vm0, %v546_v57 }
  0x97   : > { %2459 = vst.msk [vmem:[#allocation4 + $0x28] sm:$0xff] %vm2452_vm12, %v4335_v0 }
  0x98   : > { %704 = vrot.lane.b32.xlu2 %v614_v58, %s6478_s29  ;;  %v548_v58 = vld [vmem:[#allocation2 + $0x187] sm:$0xff]  ;;  %2453 = vst.msk [vmem:[#allocation4] sm:$0xff] %vm2452_vm12, %v4335_v0 }
  0x99   : > { %702 = vrot.lane.b32.xlu1 %v613_v59, %s6478_s29  ;;  %580 = vst.msk [vmem:[#allocation3 + $0xc0] sm:$0xff] %vm417_vm0, %v548_v58 }
  0x9a   : > { %2454 = vst.msk [vmem:[#allocation4 + $0x8] sm:$0xff] %vm2452_vm12, %v4335_v0 }
  0x9b   : > { %2455 = vst.msk [vmem:[#allocation4 + $0x10] sm:$0xff] %vm2452_vm12, %v4335_v0 }
  0x9c   : > { %712 = vrot.lane.b32.xlu0 %v618_v60, %s6478_s29  ;;  %v655_v7 = vpop.permute.xlu0 %654  ;;  %2458 = vst.msk [vmem:[#allocation4 + $0x20] sm:$0xff] %vm2452_vm12, %v4335_v0 }
  0x9d   : > { %750 = vst.msk [vmem:[#allocation3 + $0x8] sm:$0xff] %vm748_vm2, %v655_v7 }
  0x9e   : > { %2460 = vst.msk [vmem:[#allocation4 + $0x30] sm:$0xff] %vm2452_vm12, %v4335_v0 }
  0x9f   : > { %2462 = vst.msk [vmem:[#allocation4 + $0x40] sm:$0xff] %vm2452_vm12, %v4335_v0 }
  0xa0   : > { %710 = vrot.lane.b32.xlu2 %v617_v61, %s6478_s29  ;;  %v549_v61 = vld [vmem:[#allocation2 + $0x18f] sm:$0xff]  ;;  %2463 = vst.msk [vmem:[#allocation4 + $0x48] sm:$0xff] %vm2452_vm12, %v4335_v0 }
  0xa1   : > { %708 = vrot.lane.b32.xlu1 %v616_v62, %s6478_s29  ;;  %581 = vst.msk [vmem:[#allocation3 + $0xc8] sm:$0xff] %vm417_vm0, %v549_v61  ;;  %s6516_s29 = smov 8  }
  0xa2   : > { %2464 = vst.msk [vmem:[#allocation4 + $0x50] sm:$0xff] %vm2452_vm12, %v4335_v0 }
  0xa3   : > { %2466 = vst.msk [vmem:[#allocation4 + $0x60] sm:$0xff] %vm2452_vm12, %v4335_v0 }
  0xa4   : > { %1231 = vrot.lane.b32.xlu0 %v4600_v15, %s6485_s16  ;;  %v4786_v15 = vld [vmem:[#allocation2 + $0x49] sm:$0xff]  ;;  %2467 = vst.msk [vmem:[#allocation4 + $0x68] sm:$0xff] %vm2452_vm12, %v4335_v0 }
  0xa5   : > { %2468 = vst.msk [vmem:[#allocation4 + $0x70] sm:$0xff] %vm2452_vm12, %v4335_v0 }
  0xa6   : > { %2470 = vst.msk [vmem:[#allocation4 + $0x80] sm:$0xff] %vm2452_vm12, %v4335_v0 }
  0xa7   : > { %2471 = vst.msk [vmem:[#allocation4 + $0x88] sm:$0xff] %vm2452_vm12, %v4335_v0 }
  0xa8   : > { %1038 = vrot.lane.b32.xlu2 %v974_v50, %s6483_s22  ;;  %v553_v50 = vld [vmem:[#allocation2 + $0x1cf] sm:$0xff]  ;;  %2472 = vst.msk [vmem:[#allocation4 + $0x90] sm:$0xff] %vm2452_vm12, %v4335_v0 }
  0xa9   : > { %845 = vrot.lane.b32.xlu1 %v781_v4, %s6481_s24  ;;  %585 = vst.msk [vmem:[#allocation3 + $0xe8] sm:$0xff] %vm417_vm0, %v553_v50 }
  0xaa   : > { %2474 = vst.msk [vmem:[#allocation4 + $0xa0] sm:$0xff] %vm2452_vm12, %v4335_v0 }
  0xab   : > { %2475 = vst.msk [vmem:[#allocation4 + $0xa8] sm:$0xff] %vm2452_vm12, %v4335_v0 }
  0xac   : > { %1811 = vrot.lane.b32.xlu0 %v4594_v13, %s4340_s25  ;;  %2476 = vst.msk [vmem:[#allocation4 + $0xb0] sm:$0xff] %vm2452_vm12, %v4335_v0 }
  0xad   : > { %2478 = vst.msk [vmem:[#allocation4 + $0xc0] sm:$0xff] %vm2452_vm12, %v4335_v0 }
  0xae   : > { %2479 = vst.msk [vmem:[#allocation4 + $0xc8] sm:$0xff] %vm2452_vm12, %v4335_v0 }
  0xaf   : > { %2480 = vst.msk [vmem:[#allocation4 + $0xd0] sm:$0xff] %vm2452_vm12, %v4335_v0 }
  0xb0   : > { %1618 = vrot.lane.b32.xlu2 %v4701_v54, %s6489_s30  ;;  %2482 = vst.msk [vmem:[#allocation4 + $0xe0] sm:$0xff] %vm2452_vm12, %v4335_v0 }
  0xb1   : > { %1424 = vrot.lane.b32.xlu1 %v1360_v9, %s6479_s12  ;;  %2483 = vst.msk [vmem:[#allocation4 + $0xe8] sm:$0xff] %vm2452_vm12, %v4335_v0 }
  0xb2   : > { %v661_v11 = vpop.permute.xlu2 %660  ;;  %2484 = vst.msk [vmem:[#allocation4 + $0xf0] sm:$0xff] %vm2452_vm12, %v4335_v0 }
  0xb3   : > { %753 = vst.msk [vmem:[#allocation3 + $0x20] sm:$0xff] %vm748_vm2, %v661_v11 }
  0xb4   : > { %1040 = vrot.lane.b32.xlu0 %v975_v5, %s6483_s22  ;;  %v4905_v5 = vld [vmem:[#allocation2 + $0x1c7] sm:$0xff]  ;;  %2486 = vst.msk [vmem:[#allocation4 + $0x100] sm:$0xff] %vm2452_vm12, %v4335_v0 }
  0xb5   : > { %584 = vst.msk [vmem:[#allocation3 + $0xe0] sm:$0xff] %vm417_vm0, %v4905_v5 }
  0xb6   : > { %2487 = vst.msk [vmem:[#allocation4 + $0x108] sm:$0xff] %vm2452_vm12, %v4335_v0 }
  0xb7   : > { %2488 = vst.msk [vmem:[#allocation4 + $0x110] sm:$0xff] %vm2452_vm12, %v4335_v0 }
  0xb8   : > { %847 = vrot.lane.b32.xlu2 %v782_v14, %s6481_s24  ;;  %v4923_v14 = vld [vmem:[#allocation2 + $0x89] sm:$0xff]  ;;  %2490 = vst.msk [vmem:[#allocation4 + $0x120] sm:$0xff] %vm2452_vm12, %v4335_v0 }
  0xb9   : > { %2004 = vrot.lane.b32.xlu1 %v4786_v15, %s6491_s13  ;;  %2491 = vst.msk [vmem:[#allocation4 + $0x128] sm:$0xff] %vm2452_vm12, %v4335_v0 }
  0xba   : > { %v663_v17 = vpop.permute.xlu2 %662  ;;  %2492 = vst.msk [vmem:[#allocation4 + $0x130] sm:$0xff] %vm2452_vm12, %v4335_v0 }
  0xbb   : > { %754 = vst.msk [vmem:[#allocation3 + $0x28] sm:$0xff] %vm748_vm2, %v663_v17 }
  0xbc   : > { %1620 = vrot.lane.b32.xlu0 %v4752_v1, %s6489_s30  ;;  %2494 = vst.msk [vmem:[#allocation4 + $0x140] sm:$0xff] %vm2452_vm12, %v4335_v0 }
  0xbd   : > { %2495 = vst.msk [vmem:[#allocation4 + $0x148] sm:$0xff] %vm2452_vm12, %v4335_v0 }
  0xbe   : > { %2496 = vst.msk [vmem:[#allocation4 + $0x150] sm:$0xff] %vm2452_vm12, %v4335_v0 }
  0xbf   : > { %2498 = vst.msk [vmem:[#allocation4 + $0x160] sm:$0xff] %vm2452_vm12, %v4335_v0 }
  0xc0   : > { %1426 = vrot.lane.b32.xlu2 %v1361_v21, %s6479_s12  ;;  %2499 = vst.msk [vmem:[#allocation4 + $0x168] sm:$0xff] %vm2452_vm12, %v4335_v0 }
  0xc1   : > { %1233 = vrot.lane.b32.xlu1 %v4622_v24, %s6485_s16  ;;  %v547_v24 = vld [vmem:[#allocation2 + $0x16f] sm:$0xff]  ;;  %2500 = vst.msk [vmem:[#allocation4 + $0x170] sm:$0xff] %vm2452_vm12, %v4335_v0 }
  0xc2   : > { %v669_v25 = vpop.permute.xlu2 %668  ;;  %579 = vst.msk [vmem:[#allocation3 + $0xb8] sm:$0xff] %vm417_vm0, %v547_v24 }
  0xc3   : > { %757 = vst.msk [vmem:[#allocation3 + $0x40] sm:$0xff] %vm748_vm2, %v669_v25  ;;  %v2169_v25 = vld [vmem:[%s6513_s1 + $0x20] sm:$0xf] }
  0xc4   : > { %849 = vrot.lane.b32.xlu0 %v1360_v9, %s6481_s24  ;;  %4113 = vmatpush.msk.msra.mxu0 %vm2271_vm3, %v2169_v25  ;;  %2502 = vst.msk [vmem:[#allocation4 + $0x180] sm:$0xff] %vm2452_vm12, %v4335_v0 }
  0xc5   : > { %4194 = vmatpush.msk.msra.mxu2 %vm2271_vm3, %v2169_v25  ;;  %4193 = vmatpush.msk.msra.mxu1 %vm2271_vm3, %v2169_v25  ;;  %2503 = vst.msk [vmem:[#allocation4 + $0x188] sm:$0xff] %vm2452_vm12, %v4335_v0 }
  0xc6   : > { %4195 = vmatpush.msk.msra.mxu3 %vm2271_vm3, %v2169_v25  ;;  %2504 = vst.msk [vmem:[#allocation4 + $0x190] sm:$0xff] %vm2452_vm12, %v4335_v0  ;;  %vm2974_vm3 = vcmask 523712  }
  0xc7   : > { %2506 = vst.msk [vmem:[#allocation4 + $0x1a0] sm:$0xff] %vm2452_vm12, %v4335_v0 }
  0xc8   : > { %2006 = vrot.lane.b32.xlu2 %v4818_v31, %s6491_s13  ;;  %2507 = vst.msk [vmem:[#allocation4 + $0x1a8] sm:$0xff] %vm2452_vm12, %v4335_v0 }
  0xc9   : > { %1813 = vrot.lane.b32.xlu1 %v4618_v22, %s4340_s25  ;;  %2508 = vst.msk [vmem:[#allocation4 + $0x1b0] sm:$0xff] %vm2452_vm12, %v4335_v0 }
  0xca   : > { %v675_v32 = vpop.permute.xlu2 %674  ;;  %2510 = vst.msk [vmem:[#allocation4 + $0x1c0] sm:$0xff] %vm2452_vm12, %v4335_v0 }
  0xcb   : > { %760 = vst.msk [vmem:[#allocation3 + $0x58] sm:$0xff] %vm748_vm2, %v675_v32  ;;  %v657_v37 = vpop.permute.xlu1 %656 }
  0xcc   : > { %751 = vst.msk [vmem:[#allocation3 + $0x10] sm:$0xff] %vm748_vm2, %v657_v37  ;;  %1428 = vrot.lane.b32.xlu0 %v4786_v15, %s6479_s12  ;;  %v2166_v37 = vld [vmem:[%s6513_s1 + $0x8] sm:$0xff] }
  0xcd   : > { %2511 = vst.msk [vmem:[#allocation4 + $0x1c8] sm:$0xff] %vm2452_vm12, %v4335_v0 }
  0xce   : > { %v665_v40 = vpop.permute.xlu0 %664  ;;  %2512 = vst.msk [vmem:[#allocation4 + $0x1d0] sm:$0xff] %vm2452_vm12, %v4335_v0 }
  0xcf   : > { %755 = vst.msk [vmem:[#allocation3 + $0x30] sm:$0xff] %vm748_vm2, %v665_v40  ;;  %v2165_v40 = vld [vmem:[%s6513_s1] sm:$0xff] }
  0xd0   : > { %1235 = vrot.lane.b32.xlu2 %v4594_v13, %s6485_s16  ;;  %v4853_v13 = vld [vmem:[#allocation2 + $0x127] sm:$0xff]  ;;  %2514 = vst.msk [vmem:[#allocation4 + $0x1e0] sm:$0xff] %vm2452_vm12, %v4335_v0 }
  0xd1   : > { %1042 = vrot.lane.b32.xlu1 %v4701_v54, %s6483_s22  ;;  %574 = vst.msk [vmem:[#allocation3 + $0x90] sm:$0xff] %vm417_vm0, %v4853_v13  ;;  %v4871_v54 = vld [vmem:[#allocation2 + $0x14f] sm:$0xff] }
  0xd2   : > { %v681_v45 = vpop.permute.xlu2 %680  ;;  %577 = vst.msk [vmem:[#allocation3 + $0xa8] sm:$0xff] %vm417_vm0, %v4871_v54 }
  0xd3   : > { %763 = vst.msk [vmem:[#allocation3 + $0x70] sm:$0xff] %vm748_vm2, %v681_v45  ;;  %v659_v47 = vpop.permute.xlu1 %658 }
  0xd4   : > { %752 = vst.msk [vmem:[#allocation3 + $0x18] sm:$0xff] %vm748_vm2, %v659_v47  ;;  %2008 = vrot.lane.b32.xlu0 %v4844_v43, %s6491_s13 }
  0xd5   : > { %2515 = vst.msk [vmem:[#allocation4 + $0x1e8] sm:$0xff] %vm2452_vm12, %v4335_v0 }
  0xd6   : > { %v671_v49 = vpop.permute.xlu0 %670  ;;  %2516 = vst.msk [vmem:[#allocation4 + $0x1f0] sm:$0xff] %vm2452_vm12, %v4335_v0 }
  0xd7   : > { %758 = vst.msk [vmem:[#allocation3 + $0x48] sm:$0xff] %vm748_vm2, %v671_v49 }
  0xd8   : > { %1815 = vrot.lane.b32.xlu2 %v4610_v19, %s4340_s25  ;;  %2518 = vst.msk [vmem:[#allocation4 + $0x200] sm:$0xff] %vm2452_vm12, %v4335_v0 }
  0xd9   : > { %1622 = vrot.lane.b32.xlu1 %v4782_v12, %s6489_s30  ;;  %2519 = vst.msk [vmem:[#allocation4 + $0x208] sm:$0xff] %vm2452_vm12, %v4335_v0 }
  0xda   : > { %v687_v51 = vpop.permute.xlu2 %686  ;;  %2520 = vst.msk [vmem:[#allocation4 + $0x210] sm:$0xff] %vm2452_vm12, %v4335_v0 }
  0xdb   : > { %766 = vst.msk [vmem:[#allocation3 + $0x88] sm:$0xff] %vm748_vm2, %v687_v51  ;;  %v667_v53 = vpop.permute.xlu1 %666  ;;  %v4985_v51 = vld [vmem:[#allocation2 + $0xa9] sm:$0xff] }
  0xdc   : > { %756 = vst.msk [vmem:[#allocation3 + $0x38] sm:$0xff] %vm748_vm2, %v667_v53  ;;  %1237 = vrot.lane.b32.xlu0 %v4618_v22, %s6485_s16 }
  0xde   : > { %v677_v55 = vpop.permute.xlu0 %676 }
  0xdf   : > { %761 = vst.msk [vmem:[#allocation3 + $0x60] sm:$0xff] %vm748_vm2, %v677_v55 }
  0xe0   : > { %1044 = vrot.lane.b32.xlu2 %v4752_v1, %s6483_s22  ;;  %v551_v1 = vld [vmem:[#allocation2 + $0x1af] sm:$0xff] }
  0xe1   : > { %851 = vrot.lane.b32.xlu1 %v1361_v21, %s6481_s24  ;;  %583 = vst.msk [vmem:[#allocation3 + $0xd8] sm:$0xff] %vm417_vm0, %v551_v1  ;;  %v5020_v1 = vld [vmem:[#allocation2 + $0xc9] sm:$0xff] }
  0xe2   : > { %v693_v56 = vpop.permute.xlu2 %692 }
  0xe3   : > { %769 = vst.msk [vmem:[#allocation3 + $0xa0] sm:$0xff] %vm748_vm2, %v693_v56  ;;  %v673_v22 = vpop.permute.xlu1 %672 }
  0xe4   : > { %759 = vst.msk [vmem:[#allocation3 + $0x50] sm:$0xff] %vm748_vm2, %v673_v22  ;;  %1817 = vrot.lane.b32.xlu0 %v4643_v30, %s4340_s25 }
  0xe6   : > { %v683_v59 = vpop.permute.xlu0 %682 }
  0xe7   : > { %764 = vst.msk [vmem:[#allocation3 + $0x78] sm:$0xff] %vm748_vm2, %v683_v59  ;;  %v5004_v59 = vld [vmem:[#allocation2 + $0xb1] sm:$0xff] }
  0xe8   : > { %1624 = vrot.lane.b32.xlu2 %v4795_v18, %s6489_s30 }
  0xe9   : > { %1430 = vrot.lane.b32.xlu1 %v4818_v31, %s6479_s12 }
  0xea   : > { %v699_v60 = vpop.permute.xlu2 %698 }
  0xeb   : > { %772 = vst.msk [vmem:[#allocation3 + $0xb8] sm:$0xff] %vm748_vm2, %v699_v60  ;;  %v679_v62 = vpop.permute.xlu1 %678 }
  0xec   : > { %762 = vst.msk [vmem:[#allocation3 + $0x68] sm:$0xff] %vm748_vm2, %v679_v62  ;;  %1046 = vrot.lane.b32.xlu0 %v4782_v12, %s6483_s22 }
  0xee   : > { %v689_v3 = vpop.permute.xlu0 %688 }
  0xef   : > { %767 = vst.msk [vmem:[#allocation3 + $0x90] sm:$0xff] %vm748_vm2, %v689_v3 }
  0xf0   : > { %853 = vrot.lane.b32.xlu2 %v4786_v15, %s6481_s24 }
  0xf1   : > { %2010 = vrot.lane.b32.xlu1 %v4897_v2, %s6491_s13 }
  0xf2   : > { %v705_v4 = vpop.permute.xlu2 %704 }
  0xf3   : > { %775 = vst.msk [vmem:[#allocation3 + $0xd0] sm:$0xff] %vm748_vm2, %v705_v4  ;;  %v685_v7 = vpop.permute.xlu1 %684 }
  0xf4   : > { %765 = vst.msk [vmem:[#allocation3 + $0x80] sm:$0xff] %vm748_vm2, %v685_v7  ;;  %1626 = vrot.lane.b32.xlu0 %v4748_v63, %s6489_s30 }
  0xf6   : > { %v695_v9 = vpop.permute.xlu0 %694 }
  0xf7   : > { %770 = vst.msk [vmem:[#allocation3 + $0xa8] sm:$0xff] %vm748_vm2, %v695_v9 }
  0xf8   : > { %1432 = vrot.lane.b32.xlu2 %v4844_v43, %s6479_s12 }
  0xf9   : > { %1239 = vrot.lane.b32.xlu1 %v4610_v19, %s6485_s16 }
  0xfa   : > { %v711_v11 = vpop.permute.xlu2 %710 }
  0xfb   : > { %778 = vst.msk [vmem:[#allocation3 + $0xe8] sm:$0xff] %vm748_vm2, %v711_v11  ;;  %v691_v12 = vpop.permute.xlu1 %690 }
  0xfc   : > { %768 = vst.msk [vmem:[#allocation3 + $0x98] sm:$0xff] %vm748_vm2, %v691_v12  ;;  %855 = vrot.lane.b32.xlu0 %v4818_v31, %s6481_s24  ;;  %s6514_s24 = smov 16  }
  0xfe   : > { %v701_v15 = vpop.permute.xlu0 %700 }
  0xff   : > { %773 = vst.msk [vmem:[#allocation3 + $0xc0] sm:$0xff] %vm748_vm2, %v701_v15  ;;  %v5057_v15 = vld [vmem:[#allocation2 + $0xd1] sm:$0xff] }
 0x100   : > { %2012 = vrot.lane.b32.xlu2 %v4923_v14, %s6491_s13 }
 0x101   : > { %1819 = vrot.lane.b32.xlu1 %v4641_v29, %s4340_s25 }
 0x102   : > { %v1039_v19 = vpop.permute.xlu2 %1038 }
 0x103   : > { %v697_v17 = vpop.permute.xlu1 %696 }
 0x104   : > { %771 = vst.msk [vmem:[#allocation3 + $0xb0] sm:$0xff] %vm748_vm2, %v697_v17  ;;  %1434 = vrot.lane.b32.xlu0 %v4897_v2, %s6479_s12  ;;  %s6515_s12 = smov 12  }
 0x106   : > { %v707_v21 = vpop.permute.xlu0 %706 }
 0x107   : > { %776 = vst.msk [vmem:[#allocation3 + $0xd8] sm:$0xff] %vm748_vm2, %v707_v21 }
 0x108   : > { %1241 = vrot.lane.b32.xlu2 %v4643_v30, %s6485_s16  ;;  %v2168_v30 = vld [vmem:[%s6513_s1 + $0x18] sm:$0xff]  ;;  %s6525_s16 = smov 24  }
 0x109   : > { %1048 = vrot.lane.b32.xlu1 %v4795_v18, %s6483_s22  ;;  %v2167_v18 = vld [vmem:[%s6513_s1 + $0x10] sm:$0xff]  ;;  %2287 = vmatpush.msra.mxu0 %v2168_v30  ;;  %s6519_s22 = smov 4   ;;  %s6503_s1 = smov 80  }
 0x10a   : > { %v1619_v31 = vpop.permute.xlu2 %1618  ;;  %4197 = vmatpush.msra.mxu2 %v2168_v30  ;;  %4196 = vmatpush.msra.mxu1 %v2168_v30 }
 0x10b   : > { %v703_v24 = vpop.permute.xlu1 %702  ;;  %4198 = vmatpush.msra.mxu3 %v2168_v30  ;;  %2288 = vmatpush.msra.mxu0 %v2167_v18 }
 0x10c   : > { %774 = vst.msk [vmem:[#allocation3 + $0xc8] sm:$0xff] %vm748_vm2, %v703_v24  ;;  %2014 = vrot.lane.b32.xlu0 %v4938_v23, %s6491_s13  ;;  %4200 = vmatpush.msra.mxu2 %v2167_v18  ;;  %v5076_v24 = vld [vmem:[#allocation2 + $0xe9] sm:$0xff] }
 0x10d   : > { %4199 = vmatpush.msra.mxu1 %v2167_v18  ;;  %2289 = vmatpush.msra.mxu0 %v2166_v37 }
 0x10e   : > { %v713_v32 = vpop.permute.xlu0 %712  ;;  %4203 = vmatpush.msra.mxu2 %v2166_v37  ;;  %4201 = vmatpush.msra.mxu3 %v2167_v18 }
 0x10f   : > { %779 = vst.msk [vmem:[#allocation3 + $0xf0] sm:$0xff] %vm748_vm2, %v713_v32  ;;  %4202 = vmatpush.msra.mxu1 %v2166_v37  ;;  %2290 = vmatpush.msra.mxu0 %v2165_v40 }
 0x110   : > { %1821 = vrot.lane.b32.xlu2 %v4633_v27, %s4340_s25  ;;  %4206 = vmatpush.msra.mxu2 %v2165_v40 }
 0x111   : > { %1628 = vrot.lane.b32.xlu1 %v4802_v20, %s6489_s30  ;;  %4205 = vmatpush.msra.mxu1 %v2165_v40 }
 0x112   : > { %v848_v44 = vpop.permute.xlu2 %847  ;;  %4204 = vmatpush.msra.mxu3 %v2166_v37  ;;  %v5092_v37 = vld [vmem:[#allocation2 + $0xf1] sm:$0xff] }
 0x113   : > { %943 = vst.msk [vmem:[#allocation3 + $0x8] sm:$0xff] %vm941_vm4, %v848_v44  ;;  %v709_v45 = vpop.permute.xlu1 %708 }
 0x114   : > { %777 = vst.msk [vmem:[#allocation3 + $0xe0] sm:$0xff] %vm748_vm2, %v709_v45  ;;  %1243 = vrot.lane.b32.xlu0 %v4641_v29, %s6514_s24  ;;  %4207 = vmatpush.msra.mxu3 %v2165_v40 }
 0x116   : > { %v1232_v47 = vpop.permute.xlu0 %1231 }
 0x118   : > { %1050 = vrot.lane.b32.xlu2 %v4748_v63, %s6515_s12 }
 0x119   : > { %857 = vrot.lane.b32.xlu1 %v4844_v43, %s6516_s29 }
 0x11a   : > { %v1427_v49 = vpop.permute.xlu2 %1426 }
 0x11b   : > { %v846_v50 = vpop.permute.xlu1 %845 }
 0x11c   : > { %942 = vst.msk [vmem:[#allocation3] sm:$0xff] %vm941_vm4, %v846_v50  ;;  %1823 = vrot.lane.b32.xlu0 %v4661_v36, %s4340_s25 }
 0x11d   : > { %1135 = vst.msk [vmem:[#allocation3] sm:$0xff] %vm1134_vm5, %v1039_v19 }
 0x11e   : > { %1328 = vst.msk [vmem:[#allocation3] sm:$0xff] %vm1327_vm6, %v1232_v47  ;;  %v1812_v29 = vpop.permute.xlu0 %1811 }
 0x120   : > { %1630 = vrot.lane.b32.xlu2 %v4810_v26, %s6489_s30 }
 0x121   : > { %1436 = vrot.lane.b32.xlu1 %v4923_v14, %s6517_s14 }
 0x122   : > { %v2007_v63 = vpop.permute.xlu2 %2006 }
 0x123   : > { %v1425_v43 = vpop.permute.xlu1 %1424 }
 0x124   : > { %1521 = vst.msk [vmem:[#allocation3] sm:$0xff] %vm1520_vm7, %v1425_v43  ;;  %1052 = vrot.lane.b32.xlu0 %v4802_v20, %s6515_s12 }
 0x125   : > { %1715 = vst.msk [vmem:[#allocation3] sm:$0xff] %vm1714_vm8, %v1619_v31 }
 0x126   : > { %1908 = vst.msk [vmem:[#allocation3] sm:$0xff] %vm1907_vm9, %v1812_v29  ;;  %v1041_v53 = vpop.permute.xlu0 %1040 }
 0x127   : > { %1136 = vst.msk [vmem:[#allocation3 + $0x8] sm:$0xff] %vm1134_vm5, %v1041_v53  ;;  %v1180_v53 = vld [vmem:[#allocation2 + $0xf0] sm:$0xff] }
 0x128   : > { %859 = vrot.lane.b32.xlu2 %v4897_v2, %s6516_s29 }
 0x129   : > { %2016 = vrot.lane.b32.xlu1 %v4985_v51, %s6491_s13 }
 0x12a   : > { %v1236_v55 = vpop.permute.xlu2 %1235 }
 0x12b   : > { %v2005_v56 = vpop.permute.xlu1 %2004 }
 0x12c   : > { %2101 = vst.msk [vmem:[#allocation3] sm:$0xff] %vm2100_vm10, %v2005_v56  ;;  %1632 = vrot.lane.b32.xlu0 %v4765_v6, %s6489_s30 }
 0x12e   : > { %v1621_v20 = vpop.permute.xlu0 %1620 }
 0x130   : > { %1438 = vrot.lane.b32.xlu2 %v4938_v23, %s6517_s14 }
 0x131   : > { %1245 = vrot.lane.b32.xlu1 %v4633_v27, %s6514_s24 }
 0x132   : > { %v1816_v57 = vpop.permute.xlu2 %1815 }
 0x133   : > { %v1234_v22 = vpop.permute.xlu1 %1233  ;;  %v2133_v58 = vld [vmem:[#allocation3] sm:$0xff] }
 0x134   : > { %1329 = vst.msk [vmem:[#allocation3 + $0x8] sm:$0xff] %vm1327_vm6, %v1234_v22  ;;  %4114 = vmatmul.msk.f32.vlgmr.msra.gmra.mxu0 %vm2174_vm11, %v2133_v58  ;;  %861 = vrot.lane.b32.xlu0 %v4923_v14, %s6516_s29  ;;  %v5173_v22 = vld [vmem:[#allocation2 + $0x111] sm:$0xff] }
 0x135   : > { %1522 = vst.msk [vmem:[#allocation3 + $0x8] sm:$0xff] %vm1520_vm7, %v1427_v49  ;;  %v1760_v58 = vld [vmem:[#allocation2 + $0x110] sm:$0xff] }
 0x136   : > { %1716 = vst.msk [vmem:[#allocation3 + $0x8] sm:$0xff] %vm1714_vm8, %v1621_v20  ;;  %v850_v60 = vpop.permute.xlu0 %849 }
 0x137   : > { %944 = vst.msk [vmem:[#allocation3 + $0x10] sm:$0xff] %vm941_vm4, %v850_v60 }
 0x138   : > { %2018 = vrot.lane.b32.xlu2 %v5004_v59, %s6491_s13 }
 0x139   : > { %1825 = vrot.lane.b32.xlu1 %v4659_v35, %s4340_s25 }
 0x13a   : > { %v1045_v27 = vpop.permute.xlu2 %1044 }
 0x13b   : > { %v1814_v61 = vpop.permute.xlu1 %1813 }
 0x13c   : > { %1909 = vst.msk [vmem:[#allocation3 + $0x8] sm:$0xff] %vm1907_vm9, %v1814_v61  ;;  %1440 = vrot.lane.b32.xlu0 %v4985_v51, %s6517_s14  ;;  %v1181_v61 = vld [vmem:[#allocation2 + $0x108] sm:$0xff] }
 0x13d   : > { %2102 = vst.msk [vmem:[#allocation3 + $0x8] sm:$0xff] %vm2100_vm10, %v2007_v63 }
 0x13e   : > { %v1429_v62 = vpop.permute.xlu0 %1428 }
 0x140   : > { %1247 = vrot.lane.b32.xlu2 %v4661_v36, %s6514_s24 }
 0x141   : > { %1054 = vrot.lane.b32.xlu1 %v4810_v26, %s6515_s12 }
 0x142   : > { %v1625_v2 = vpop.permute.xlu2 %1624 }
 0x143   : > { %v1043_v3 = vpop.permute.xlu1 %1042 }
 0x144   : > { %1137 = vst.msk [vmem:[#allocation3 + $0x10] sm:$0xff] %vm1134_vm5, %v1043_v3  ;;  %v2134_v4 = vld [vmem:[#allocation3 + $0x8] sm:$0xff]  ;;  %2020 = vrot.lane.b32.xlu0 %v5020_v1, %s6491_s13 }
 0x145   : > { %1330 = vst.msk [vmem:[#allocation3 + $0x10] sm:$0xff] %vm1327_vm6, %v1236_v55  ;;  %4115 = vmatmul.msk.f32.gmra.mxu0 %vm2174_vm11, %v2134_v4 }
 0x146   : > { %1523 = vst.msk [vmem:[#allocation3 + $0x10] sm:$0xff] %vm1520_vm7, %v1429_v62  ;;  %v2009_v36 = vpop.permute.xlu0 %2008  ;;  %v5197_v62 = vld [vmem:[%s6518_s2] ss:$0 sm:$0xff] }
 0x148   : > { %1827 = vrot.lane.b32.xlu2 %v4651_v33, %s4340_s25 }
 0x149   : > { %1634 = vrot.lane.b32.xlu1 %v4816_v28, %s6489_s30 }
 0x14a   : > { %v854_v26 = vpop.permute.xlu2 %853 }
 0x14b   : > { %946 = vst.msk [vmem:[#allocation3 + $0x20] sm:$0xff] %vm941_vm4, %v854_v26  ;;  %v1623_v7 = vpop.permute.xlu1 %1622 }
 0x14c   : > { %1717 = vst.msk [vmem:[#allocation3 + $0x10] sm:$0xff] %vm1714_vm8, %v1623_v7  ;;  %1249 = vrot.lane.b32.xlu0 %v4659_v35, %s6514_s24 }
 0x14d   : > { %1910 = vst.msk [vmem:[#allocation3 + $0x10] sm:$0xff] %vm1907_vm9, %v1816_v57 }
 0x14e   : > { %2103 = vst.msk [vmem:[#allocation3 + $0x10] sm:$0xff] %vm2100_vm10, %v2009_v36  ;;  %v1238_v8 = vpop.permute.xlu0 %1237 }
 0x150   : > { %1056 = vrot.lane.b32.xlu2 %v4765_v6, %s6515_s12 }
 0x151   : > { %863 = vrot.lane.b32.xlu1 %v4938_v23, %s6516_s29 }
 0x152   : > { %v1433_v9 = vpop.permute.xlu2 %1432 }
 0x153   : > { %v852_v11 = vpop.permute.xlu1 %851 }
 0x154   : > { %945 = vst.msk [vmem:[#allocation3 + $0x18] sm:$0xff] %vm941_vm4, %v852_v11  ;;  %1829 = vrot.lane.b32.xlu0 %v4679_v42, %s4340_s25 }
 0x155   : > { %1138 = vst.msk [vmem:[#allocation3 + $0x18] sm:$0xff] %vm1134_vm5, %v1045_v27  ;;  %v2135_v35 = vld [vmem:[#allocation3 + $0x10] sm:$0xff] }
 0x156   : > { %1331 = vst.msk [vmem:[#allocation3 + $0x18] sm:$0xff] %vm1327_vm6, %v1238_v8  ;;  %4116 = vmatmul.msk.f32.gmra.mxu0 %vm2174_vm11, %v2135_v35  ;;  %v1818_v12 = vpop.permute.xlu0 %1817  ;;  %v5231_v8 = vld [vmem:[#allocation2 + $0x128] sm:$0xff] }
 0x158   : > { %1636 = vrot.lane.b32.xlu2 %v4827_v34, %s6489_s30 }
 0x159   : > { %1442 = vrot.lane.b32.xlu1 %v5004_v59, %s6517_s14 }
 0x15a   : > { %v2013_v6 = vpop.permute.xlu2 %2012 }
 0x15b   : > { %v1431_v14 = vpop.permute.xlu1 %1430 }
 0x15c   : > { %1524 = vst.msk [vmem:[#allocation3 + $0x18] sm:$0xff] %vm1520_vm7, %v1431_v14  ;;  %1058 = vrot.lane.b32.xlu0 %v4816_v28, %s6515_s12 }
 0x15d   : > { %1718 = vst.msk [vmem:[#allocation3 + $0x18] sm:$0xff] %vm1714_vm8, %v1625_v2 }
 0x15e   : > { %1911 = vst.msk [vmem:[#allocation3 + $0x18] sm:$0xff] %vm1907_vm9, %v1818_v12  ;;  %v1047_v19 = vpop.permute.xlu0 %1046 }
 0x15f   : > { %1139 = vst.msk [vmem:[#allocation3 + $0x20] sm:$0xff] %vm1134_vm5, %v1047_v19 }
 0x160   : > { %865 = vrot.lane.b32.xlu2 %v4985_v51, %s6516_s29 }
 0x161   : > { %2022 = vrot.lane.b32.xlu1 %v5057_v15, %s6491_s13 }
 0x162   : > { %v1242_v17 = vpop.permute.xlu2 %1241 }
 0x163   : > { %v2011_v21 = vpop.permute.xlu1 %2010 }
 0x164   : > { %2104 = vst.msk [vmem:[#allocation3 + $0x18] sm:$0xff] %vm2100_vm10, %v2011_v21  ;;  %1638 = vrot.lane.b32.xlu0 %v4776_v10, %s6489_s30 }
 0x166   : > { %v1627_v28 = vpop.permute.xlu0 %1626 }
 0x168   : > { %1444 = vrot.lane.b32.xlu2 %v5020_v1, %s6517_s14 }
 0x169   : > { %1251 = vrot.lane.b32.xlu1 %v4651_v33, %s6514_s24 }
 0x16a   : > { %v1822_v23 = vpop.permute.xlu2 %1821 }
 0x16b   : > { %v1240_v25 = vpop.permute.xlu1 %1239  ;;  %v2136_v31 = vld [vmem:[#allocation3 + $0x18] sm:$0xff] }
 0x16c   : > { %1332 = vst.msk [vmem:[#allocation3 + $0x20] sm:$0xff] %vm1327_vm6, %v1240_v25  ;;  %4117 = vmatmul.msk.f32.gmra.mxu0 %vm2174_vm11, %v2136_v31  ;;  %867 = vrot.lane.b32.xlu0 %v5004_v59, %s6516_s29 }
 0x16d   : > { %1525 = vst.msk [vmem:[#allocation3 + $0x20] sm:$0xff] %vm1520_vm7, %v1433_v9  ;;  %v5239_v9 = vld [vmem:[#allocation2 + $0x129] sm:$0xff] }
 0x16e   : > { %1719 = vst.msk [vmem:[#allocation3 + $0x20] sm:$0xff] %vm1714_vm8, %v1627_v28  ;;  %v856_v30 = vpop.permute.xlu0 %855  ;;  %v5302_v28 = vld [vmem:[#allocation2 + $0x131] sm:$0xff] }
 0x16f   : > { %947 = vst.msk [vmem:[#allocation3 + $0x28] sm:$0xff] %vm941_vm4, %v856_v30 }
 0x170   : > { %2024 = vrot.lane.b32.xlu2 %v5076_v24, %s6491_s13 }
 0x171   : > { %1831 = vrot.lane.b32.xlu1 %v4677_v41, %s4340_s25 }
 0x172   : > { %v1051_v33 = vpop.permute.xlu2 %1050 }
 0x173   : > { %v1820_v18 = vpop.permute.xlu1 %1819 }
 0x174   : > { %1912 = vst.msk [vmem:[#allocation3 + $0x20] sm:$0xff] %vm1907_vm9, %v1820_v18  ;;  %1446 = vrot.lane.b32.xlu0 %v5057_v15, %s6517_s14 }
 0x175   : > { %2105 = vst.msk [vmem:[#allocation3 + $0x20] sm:$0xff] %vm2100_vm10, %v2013_v6 }
 0x176   : > { %v1435_v32 = vpop.permute.xlu0 %1434 }
 0x178   : > { %1253 = vrot.lane.b32.xlu2 %v4679_v42, %s6514_s24 }
 0x179   : > { %1060 = vrot.lane.b32.xlu1 %v4827_v34, %s6515_s12 }
 0x17a   : > { %v1631_v40 = vpop.permute.xlu2 %1630 }
 0x17b   : > { %v1049_v44 = vpop.permute.xlu1 %1048 }
 0x17c   : > { %1140 = vst.msk [vmem:[#allocation3 + $0x28] sm:$0xff] %vm1134_vm5, %v1049_v44  ;;  %v2137_v45 = vld [vmem:[#allocation3 + $0x20] sm:$0xff]  ;;  %2026 = vrot.lane.b32.xlu0 %v5092_v37, %s6491_s13 }
 0x17d   : > { %1333 = vst.msk [vmem:[#allocation3 + $0x28] sm:$0xff] %vm1327_vm6, %v1242_v17  ;;  %4118 = vmatmul.msk.f32.gmra.mxu0 %vm2174_vm11, %v2137_v45 }
 0x17e   : > { %1526 = vst.msk [vmem:[#allocation3 + $0x28] sm:$0xff] %vm1520_vm7, %v1435_v32  ;;  %v2015_v42 = vpop.permute.xlu0 %2014  ;;  %v5325_v32 = vld [vmem:[#allocation2 + $0x147] sm:$0xff] }
 0x180   : > { %1833 = vrot.lane.b32.xlu2 %v4669_v39, %s4340_s25 }
 0x181   : > { %1640 = vrot.lane.b32.xlu1 %v4833_v38, %s6489_s30 }
 0x182   : > { %v860_v34 = vpop.permute.xlu2 %859 }
 0x183   : > { %949 = vst.msk [vmem:[#allocation3 + $0x38] sm:$0xff] %vm941_vm4, %v860_v34  ;;  %v1629_v47 = vpop.permute.xlu1 %1628  ;;  %v5345_v34 = vld [vmem:[#allocation2 + $0x148] sm:$0xff] }
 0x184   : > { %1720 = vst.msk [vmem:[#allocation3 + $0x28] sm:$0xff] %vm1714_vm8, %v1629_v47  ;;  %1255 = vrot.lane.b32.xlu0 %v4677_v41, %s6514_s24 }
 0x185   : > { %1913 = vst.msk [vmem:[#allocation3 + $0x28] sm:$0xff] %vm1907_vm9, %v1822_v23 }
 0x186   : > { %2106 = vst.msk [vmem:[#allocation3 + $0x28] sm:$0xff] %vm2100_vm10, %v2015_v42  ;;  %v1244_v49 = vpop.permute.xlu0 %1243  ;;  %v5343_v42 = vld [vmem:[#allocation2 + $0x149] sm:$0xff] }
 0x188   : > { %1062 = vrot.lane.b32.xlu2 %v4776_v10, %s6515_s12 }
 0x189   : > { %869 = vrot.lane.b32.xlu1 %v5020_v1, %s6516_s29 }
 0x18a   : > { %v1439_v39 = vpop.permute.xlu2 %1438 }
 0x18b   : > { %v858_v50 = vpop.permute.xlu1 %857 }
 0x18c   : > { %948 = vst.msk [vmem:[#allocation3 + $0x30] sm:$0xff] %vm941_vm4, %v858_v50  ;;  %1835 = vrot.lane.b32.xlu0 %v4692_v48, %s4340_s25  ;;  %v5129_v48 = vld [vmem:[#allocation2 + $0x109] sm:$0xff] }
 0x18d   : > { %1141 = vst.msk [vmem:[#allocation3 + $0x30] sm:$0xff] %vm1134_vm5, %v1051_v33  ;;  %v2138_v41 = vld [vmem:[#allocation3 + $0x28] sm:$0xff] }
 0x18e   : > { %1334 = vst.msk [vmem:[#allocation3 + $0x30] sm:$0xff] %vm1327_vm6, %v1244_v49  ;;  %4119 = vmatmul.msk.f32.gmra.mxu0 %vm2174_vm11, %v2138_v41  ;;  %v1824_v29 = vpop.permute.xlu0 %1823 }
 0x190   : > { %1642 = vrot.lane.b32.xlu2 %v4847_v46, %s6489_s30 }
 0x191   : > { %1448 = vrot.lane.b32.xlu1 %v5076_v24, %s6517_s14 }
 0x192   : > { %v2019_v10 = vpop.permute.xlu2 %2018 }
 0x193   : > { %v1437_v63 = vpop.permute.xlu1 %1436 }
 0x194   : > { %1527 = vst.msk [vmem:[#allocation3 + $0x30] sm:$0xff] %vm1520_vm7, %v1437_v63  ;;  %1064 = vrot.lane.b32.xlu0 %v4833_v38, %s6515_s12 }
 0x195   : > { %1721 = vst.msk [vmem:[#allocation3 + $0x30] sm:$0xff] %vm1714_vm8, %v1631_v40 }
 0x196   : > { %1914 = vst.msk [vmem:[#allocation3 + $0x30] sm:$0xff] %vm1907_vm9, %v1824_v29  ;;  %v1053_v43 = vpop.permute.xlu0 %1052  ;;  %v5364_v29 = vld [vmem:[#allocation2 + $0x189] sm:$0xff] }
 0x197   : > { %1142 = vst.msk [vmem:[#allocation3 + $0x38] sm:$0xff] %vm1134_vm5, %v1053_v43 }
 0x198   : > { %871 = vrot.lane.b32.xlu2 %v5057_v15, %s6516_s29  ;;  %v5278_v15 = vld [vmem:[#allocation2 + $0x130] sm:$0xff] }
 0x199   : > { %2028 = vrot.lane.b32.xlu1 %v5129_v48, %s6491_s13 }
 0x19a   : > { %v5140_v38 = vpop.permute.xlu2 %1247 }
 0x19b   : > { %v2017_v51 = vpop.permute.xlu1 %2016 }
 0x19c   : > { %2107 = vst.msk [vmem:[#allocation3 + $0x30] sm:$0xff] %vm2100_vm10, %v2017_v51  ;;  %1644 = vrot.lane.b32.xlu0 %v4791_v16, %s6489_s30 }
 0x19e   : > { %v1633_v55 = vpop.permute.xlu0 %1632 }
 0x1a0   : > { %1450 = vrot.lane.b32.xlu2 %v5092_v37, %s6517_s14 }
 0x1a1   : > { %1257 = vrot.lane.b32.xlu1 %v1180_v53, %s6514_s24 }
 0x1a2   : > { %v5162_v56 = vpop.permute.xlu2 %1827 }
 0x1a3   : > { %v1246_v20 = vpop.permute.xlu1 %1245  ;;  %v2139_v57 = vld [vmem:[#allocation3 + $0x30] sm:$0xff] }
 0x1a4   : > { %1335 = vst.msk [vmem:[#allocation3 + $0x38] sm:$0xff] %vm1327_vm6, %v1246_v20  ;;  %4120 = vmatmul.msk.f32.gmra.mxu0 %vm2174_vm11, %v2139_v57  ;;  %873 = vrot.lane.b32.xlu0 %v5076_v24, %s6516_s29  ;;  %v5387_v20 = vld [vmem:[#allocation2 + $0x1a8] sm:$0xff] }
 0x1a5   : > { %1528 = vst.msk [vmem:[#allocation3 + $0x38] sm:$0xff] %vm1520_vm7, %v1439_v39 }
 0x1a6   : > { %1722 = vst.msk [vmem:[#allocation3 + $0x38] sm:$0xff] %vm1714_vm8, %v1633_v55  ;;  %v862_v59 = vpop.permute.xlu0 %861  ;;  %v5385_v55 = vld [vmem:[#allocation2 + $0x1a7] sm:$0xff] }
 0x1a7   : > { %950 = vst.msk [vmem:[#allocation3 + $0x40] sm:$0xff] %vm941_vm4, %v862_v59  ;;  %v5401_v59 = vld [vmem:[#allocation2 + $0x1a9] sm:$0xff] }
 0x1a8   : > { %2030 = vrot.lane.b32.xlu2 %v5173_v22, %s6491_s13 }
 0x1a9   : > { %1837 = vrot.lane.b32.xlu1 %v1760_v58, %s4340_s25 }
 0x1aa   : > { %v5184_v60 = vpop.permute.xlu2 %1056 }
 0x1ab   : > { %v1826_v27 = vpop.permute.xlu1 %1825 }
 0x1ac   : > { %1915 = vst.msk [vmem:[#allocation3 + $0x38] sm:$0xff] %vm1907_vm9, %v1826_v27  ;;  %1452 = vrot.lane.b32.xlu0 %v5129_v48, %s6517_s14  ;;  %v5403_v27 = vld [vmem:[#allocation2 + $0x150] sm:$0xff] }
 0x1ad   : > { %2108 = vst.msk [vmem:[#allocation3 + $0x38] sm:$0xff] %vm2100_vm10, %v2019_v10 }
 0x1ae   : > { %v5227_v7 = vpop.permute.xlu0 %1440 }
 0x1b0   : > { %1259 = vrot.lane.b32.xlu2 %v1181_v61, %s6514_s24 }
 0x1b1   : > { %1066 = vrot.lane.b32.xlu1 %v4847_v46, %s6515_s12  ;;  %v2292_v1 = vpop.f32.mrf.mxu0 }
 0x1b2   : > { %v2293_v2 = vadd.f32 %v5197_v62, %v2292_v1  ;;  %v5213_v3 = vpop.permute.xlu2 %1636 }
 0x1b3   : > { %v5217_v4 = vpop.permute.xlu1 %1054 }
 0x1b4   : > { %v2388_v36 = vmul.f32 0.1, %v2293_v2  ;;  %v2140_v26 = vld [vmem:[#allocation3 + $0x38] sm:$0xff]  ;;  %2032 = vrot.lane.b32.xlu0 %v5239_v9, %s6491_s13  ;;  %1143 = vst.msk [vmem:[#allocation3 + $0x40] sm:$0xff] %vm1134_vm5, %v5217_v4 }
 0x1b5   : > { %4121 = vmatmul.msk.f32.gmra.mxu0 %vm2174_vm11, %v2140_v26  ;;  %1336 = vst.msk [vmem:[#allocation3 + $0x40] sm:$0xff] %vm1327_vm6, %v5140_v38 }
 0x1b6   : > { %v2420_v46 = vmax.f32 %v2293_v2, %v2388_v36  ;;  %v2021_v12 = vpop.permute.xlu0 %2020  ;;  %1529 = vst.msk [vmem:[#allocation3 + $0x40] sm:$0xff] %vm1520_vm7, %v5227_v7 }
 0x1b8   : > { %2527 = vst.msk [vmem:[#allocation4 + $0x28] sm:$0xff] %vm2452_vm12, %v2420_v46  ;;  %1839 = vrot.lane.b32.xlu2 %v5231_v8, %s4340_s25  ;;  %v5415_v46 = vld [vmem:[#allocation2 + $0x151] sm:$0xff] }
 0x1b9   : > { %1646 = vrot.lane.b32.xlu1 %v4853_v13, %s6489_s30 }
 0x1ba   : > { %v866_v11 = vpop.permute.xlu2 %865 }
 0x1bb   : > { %v1635_v35 = vpop.permute.xlu1 %1634  ;;  %952 = vst.msk [vmem:[#allocation3 + $0x50] sm:$0xff] %vm941_vm4, %v866_v11 }
 0x1bc   : > { %1261 = vrot.lane.b32.xlu0 %v1760_v58, %s6514_s24  ;;  %1723 = vst.msk [vmem:[#allocation3 + $0x40] sm:$0xff] %vm1714_vm8, %v1635_v35 }
 0x1bd   : > { %1916 = vst.msk [vmem:[#allocation3 + $0x40] sm:$0xff] %vm1907_vm9, %v5162_v56 }
 0x1be   : > { %2109 = vst.msk [vmem:[#allocation3 + $0x40] sm:$0xff] %vm2100_vm10, %v2021_v12  ;;  %v5431_v12 = vld [vmem:[#allocation2 + $0x1c9] sm:$0xff] }
 0x1c0   : > { %1068 = vrot.lane.b32.xlu2 %v4791_v16, %s6515_s12  ;;  %v1250_v16 = vpop.permute.xlu0 %1249 }
 0x1c1   : > { %875 = vrot.lane.b32.xlu1 %v5092_v37, %s6516_s29 }
 0x1c2   : > { %v5265_v6 = vpop.permute.xlu2 %1444  ;;  %v2295_v21 = vpop.f32.mrf.mxu0 }
 0x1c3   : > { %v864_v14 = vpop.permute.xlu1 %863  ;;  %v2296_v25 = vadd.f32 %v5197_v62, %v2295_v21 }
 0x1c4   : > { %1841 = vrot.lane.b32.xlu0 %v5278_v15, %s4340_s25  ;;  %951 = vst.msk [vmem:[#allocation3 + $0x48] sm:$0xff] %vm941_vm4, %v864_v14 }
 0x1c5   : > { %v2389_v30 = vmul.f32 0.1, %v2296_v25  ;;  %1144 = vst.msk [vmem:[#allocation3 + $0x48] sm:$0xff] %vm1134_vm5, %v5184_v60  ;;  %v2141_v50 = vld [vmem:[#allocation3 + $0x40] sm:$0xff] }
 0x1c6   : > { %1337 = vst.msk [vmem:[#allocation3 + $0x48] sm:$0xff] %vm1327_vm6, %v1250_v16  ;;  %4122 = vmatmul.msk.f32.gmra.mxu0 %vm2174_vm11, %v2141_v50 }
 0x1c7   : > { %v2421_v37 = vmax.f32 %v2296_v25, %v2389_v30 }
 0x1c8   : > { %1648 = vrot.lane.b32.xlu2 %v4865_v52, %s6489_s30  ;;  %v1830_v23 = vpop.permute.xlu0 %1829 }
 0x1c9   : > { %1454 = vrot.lane.b32.xlu1 %v5173_v22, %s6517_s14  ;;  %2528 = vst.msk [vmem:[#allocation4 + $0x30] sm:$0xff] %vm2452_vm12, %v2421_v37  ;;  %v5468_v37 = vld [vmem:[#allocation2 + $0x167] sm:$0xff] }
 0x1ca   : > { %v5290_v19 = vpop.permute.xlu2 %2024 }
 0x1cb   : > { %v1443_v17 = vpop.permute.xlu1 %1442 }
 0x1cc   : > { %1070 = vrot.lane.b32.xlu0 %v4853_v13, %s6515_s12  ;;  %1530 = vst.msk [vmem:[#allocation3 + $0x48] sm:$0xff] %vm1520_vm7, %v1443_v17  ;;  %v5442_v17 = vld [vmem:[#allocation2 + $0x191] sm:$0xff] }
 0x1cd   : > { %1724 = vst.msk [vmem:[#allocation3 + $0x48] sm:$0xff] %vm1714_vm8, %v5213_v3 }
 0x1ce   : > { %1917 = vst.msk [vmem:[#allocation3 + $0x48] sm:$0xff] %vm1907_vm9, %v1830_v23 }
 0x1d0   : > { %877 = vrot.lane.b32.xlu2 %v5129_v48, %s6516_s29  ;;  %v1059_v18 = vpop.permute.xlu0 %1058 }
 0x1d1   : > { %2034 = vrot.lane.b32.xlu1 %v5302_v28, %s6491_s13  ;;  %1145 = vst.msk [vmem:[#allocation3 + $0x50] sm:$0xff] %vm1134_vm5, %v1059_v18 }
 0x1d2   : > { %v5317_v31 = vpop.permute.xlu2 %1253 }
 0x1d3   : > { %v2023_v24 = vpop.permute.xlu1 %2022  ;;  %v2298_v33 = vpop.f32.mrf.mxu0 }
 0x1d4   : > { %v2299_v13 = vadd.f32 %v5197_v62, %v2298_v33  ;;  %1650 = vrot.lane.b32.xlu0 %v5325_v32, %s6489_s30  ;;  %2110 = vst.msk [vmem:[#allocation3 + $0x48] sm:$0xff] %vm2100_vm10, %v2023_v24  ;;  %v5455_v24 = vld [vmem:[#allocation2 + $0x1af] sm:$0xff] }
 0x1d5   : > { %v5457_v33 = vld [vmem:[#allocation2 + $0x16f] sm:$0xff] }
 0x1d6   : > { %v2390_v45 = vmul.f32 0.1, %v2299_v13 }
 0x1d8   : > { %1456 = vrot.lane.b32.xlu2 %v5239_v9, %s6517_s14  ;;  %v1639_v47 = vpop.permute.xlu0 %1638  ;;  %v2422_v49 = vmax.f32 %v2299_v13, %v2390_v45  ;;  %v5470_v13 = vld [vmem:[#allocation2 + $0x1b0] sm:$0xff] }
 0x1d9   : > { %1263 = vrot.lane.b32.xlu1 %v5231_v8, %s6514_s24  ;;  %v5418_v8 = vld [vmem:[#allocation2 + $0x1c8] sm:$0xff] }
 0x1da   : > { %v1834_v40 = vpop.permute.xlu2 %1833  ;;  %2529 = vst.msk [vmem:[#allocation4 + $0x48] sm:$0xff] %vm2452_vm12, %v2422_v49 }
 0x1db   : > { %v1252_v44 = vpop.permute.xlu1 %1251  ;;  %v2142_v38 = vld [vmem:[#allocation3 + $0x48] sm:$0xff] }
 0x1dc   : > { %879 = vrot.lane.b32.xlu0 %v5173_v22, %s6516_s29  ;;  %1338 = vst.msk [vmem:[#allocation3 + $0x50] sm:$0xff] %vm1327_vm6, %v1252_v44  ;;  %4123 = vmatmul.msk.f32.gmra.mxu0 %vm2174_vm11, %v2142_v38  ;;  %v5472_v44 = vld [vmem:[#allocation2 + $0x170] sm:$0xff] }
 0x1dd   : > { %1531 = vst.msk [vmem:[#allocation3 + $0x50] sm:$0xff] %vm1520_vm7, %v5265_v6 }
 0x1de   : > { %1725 = vst.msk [vmem:[#allocation3 + $0x50] sm:$0xff] %vm1714_vm8, %v1639_v47 }
 0x1e0   : > { %2036 = vrot.lane.b32.xlu2 %v5343_v42, %s6491_s13  ;;  %v868_v10 = vpop.permute.xlu0 %867 }
 0x1e1   : > { %1843 = vrot.lane.b32.xlu1 %v5345_v34, %s4340_s25  ;;  %953 = vst.msk [vmem:[#allocation3 + $0x58] sm:$0xff] %vm941_vm4, %v868_v10  ;;  %v5485_v10 = vld [vmem:[#allocation2 + $0x168] sm:$0xff] }
 0x1e2   : > { %v1063_v39 = vpop.permute.xlu2 %1062 }
 0x1e3   : > { %v1832_v41 = vpop.permute.xlu1 %1831 }
 0x1e4   : > { %1918 = vst.msk [vmem:[#allocation3 + $0x50] sm:$0xff] %vm1907_vm9, %v1832_v41  ;;  %1265 = vrot.lane.b32.xlu0 %v5278_v15, %s6514_s24 }
 0x1e5   : > { %2111 = vst.msk [vmem:[#allocation3 + $0x50] sm:$0xff] %vm2100_vm10, %v5290_v19 }
 0x1e8   : > { %893 = vrot.lane.b32.xlu2 %v5364_v29, %s6516_s29  ;;  %v1447_v56 = vpop.permute.xlu0 %1446 }
 0x1e9   : > { %1072 = vrot.lane.b32.xlu1 %v4865_v52, %s6515_s12  ;;  %v2301_v63 = vpop.f32.mrf.mxu0 }
 0x1ea   : > { %v2302_v48 = vadd.f32 %v5197_v62, %v2301_v63  ;;  %v1643_v43 = vpop.permute.xlu2 %1642  ;;  %v5487_v63 = vld [vmem:[#allocation2 + $0x1b1] sm:$0xff] }
 0x1eb   : > { %v1061_v51 = vpop.permute.xlu1 %1060 }
 0x1ec   : > { %v2391_v53 = vmul.f32 0.1, %v2302_v48  ;;  %1146 = vst.msk [vmem:[#allocation3 + $0x58] sm:$0xff] %vm1134_vm5, %v1061_v51  ;;  %v2143_v57 = vld [vmem:[#allocation3 + $0x50] sm:$0xff]  ;;  %1279 = vrot.lane.b32.xlu0 %v5387_v20, %s6514_s24 }
 0x1ed   : > { %1339 = vst.msk [vmem:[#allocation3 + $0x58] sm:$0xff] %vm1327_vm6, %v5317_v31  ;;  %4124 = vmatmul.msk.f32.gmra.mxu0 %vm2174_vm11, %v2143_v57  ;;  %v5506_v57 = vld [vmem:[#allocation2 + $0x18f] sm:$0xff] }
 0x1ee   : > { %v2423_v52 = vmax.f32 %v2302_v48, %v2391_v53  ;;  %1532 = vst.msk [vmem:[#allocation3 + $0x58] sm:$0xff] %vm1520_vm7, %v1447_v56  ;;  %v5502_v53 = vld [vmem:[#allocation2 + $0x169] sm:$0xff] }
 0x1f0   : > { %2530 = vst.msk [vmem:[#allocation4 + $0x50] sm:$0xff] %vm2452_vm12, %v2423_v52  ;;  %1458 = vrot.lane.b32.xlu2 %v5302_v28, %s6517_s14  ;;  %v2027_v60 = vpop.permute.xlu0 %2026  ;;  %v5504_v52 = vld [vmem:[#allocation2 + $0x1cf] sm:$0xff] }
 0x1f1   : > { %1086 = vrot.lane.b32.xlu1 %v5385_v55, %s6515_s12 }
 0x1f2   : > { %v872_v22 = vpop.permute.xlu2 %871 }
 0x1f3   : > { %955 = vst.msk [vmem:[#allocation3 + $0x68] sm:$0xff] %vm941_vm4, %v872_v22  ;;  %v1641_v58 = vpop.permute.xlu1 %1640 }
 0x1f4   : > { %1726 = vst.msk [vmem:[#allocation3 + $0x58] sm:$0xff] %vm1714_vm8, %v1641_v58  ;;  %1845 = vrot.lane.b32.xlu0 %v5403_v27, %s4340_s25 }
 0x1f5   : > { %1919 = vst.msk [vmem:[#allocation3 + $0x58] sm:$0xff] %vm1907_vm9, %v1834_v40 }
 0x1f6   : > { %2112 = vst.msk [vmem:[#allocation3 + $0x58] sm:$0xff] %vm2100_vm10, %v2027_v60 }
 0x1f7   : > { %v2562_v4 = vld [vmem:[#allocation4 + $0x47] ss:$2 sm:$0xff] }
 0x1f8   : > { %1472 = vrot.lane.b32.xlu2 %v5401_v59, %s6517_s14  ;;  %2576 = vst.msk [vmem:[#allocation5 + $0x8] sm:$0xff] %vm2452_vm12, %v2562_v4 }
 0x1f9   : > { %1652 = vrot.lane.b32.xlu1 %v4871_v54, %s6489_s30  ;;  %v1256_v54 = vpop.permute.xlu0 %1255 }
 0x1fa   : > { %v2304_v61 = vpop.f32.mrf.mxu0  ;;  %v1451_v1 = vpop.permute.xlu2 %1450 }
 0x1fb   : > { %v2305_v2 = vadd.f32 %v5197_v62, %v2304_v61  ;;  %v870_v3 = vpop.permute.xlu1 %869 }
 0x1fc   : > { %954 = vst.msk [vmem:[#allocation3 + $0x60] sm:$0xff] %vm941_vm4, %v870_v3  ;;  %1859 = vrot.lane.b32.xlu0 %v5418_v8, %s4340_s25 }
 0x1fd   : > { %v2392_v36 = vmul.f32 0.1, %v2305_v2  ;;  %1147 = vst.msk [vmem:[#allocation3 + $0x60] sm:$0xff] %vm1134_vm5, %v1063_v39  ;;  %v2144_v7 = vld [vmem:[#allocation3 + $0x58] sm:$0xff] }
 0x1fe   : > { %1340 = vst.msk [vmem:[#allocation3 + $0x60] sm:$0xff] %vm1327_vm6, %v1256_v54  ;;  %4125 = vmatmul.msk.f32.gmra.mxu0 %vm2174_vm11, %v2144_v7 }
 0x1ff   : > { %v2424_v26 = vmax.f32 %v2305_v2, %v2392_v36  ;;  %v5520_v36 = vld [vmem:[#allocation2 + $0x190] sm:$0xff] }
 0x200   : > { %2038 = vrot.lane.b32.xlu2 %v5415_v46, %s6491_s13 }
 0x201   : > { %2531 = vst.msk [vmem:[#allocation4 + $0x68] sm:$0xff] %vm2452_vm12, %v2424_v26  ;;  %1666 = vrot.lane.b32.xlu1 %v4905_v5, %s6489_s30  ;;  %v1836_v6 = vpop.permute.xlu0 %1835 }
 0x202   : > { %v2031_v11 = vpop.permute.xlu2 %2030 }
 0x203   : > { %v1449_v35 = vpop.permute.xlu1 %1448 }
 0x204   : > { %1533 = vst.msk [vmem:[#allocation3 + $0x60] sm:$0xff] %vm1520_vm7, %v1449_v35  ;;  %1074 = vrot.lane.b32.xlu0 %v5325_v32, %s6515_s12  ;;  %v5533_v35 = vld [vmem:[#allocation2 + $0x1d1] sm:$0xff] }
 0x205   : > { %1727 = vst.msk [vmem:[#allocation3 + $0x60] sm:$0xff] %vm1714_vm8, %v1643_v43  ;;  %v5489_v43 = vld [vmem:[#allocation2 + $0x171] sm:$0xff] }
 0x206   : > { %1920 = vst.msk [vmem:[#allocation3 + $0x60] sm:$0xff] %vm1907_vm9, %v1836_v6 }
 0x208   : > { %2052 = vrot.lane.b32.xlu2 %v5431_v12, %s6491_s13 }
 0x209   : > { %881 = vrot.lane.b32.xlu1 %v5239_v9, %s6516_s29  ;;  %v1065_v21 = vpop.permute.xlu0 %1064 }
 0x20a   : > { %v1260_v5 = vpop.permute.xlu2 %1259  ;;  %1148 = vst.msk [vmem:[#allocation3 + $0x68] sm:$0xff] %vm1134_vm5, %v1065_v21 }
 0x20b   : > { %v2029_v14 = vpop.permute.xlu1 %2028  ;;  %v2307_v16 = vpop.f32.mrf.mxu0 }
 0x20c   : > { %2113 = vst.msk [vmem:[#allocation3 + $0x60] sm:$0xff] %vm2100_vm10, %v2029_v14  ;;  %v2308_v15 = vadd.f32 %v5197_v62, %v2307_v16  ;;  %887 = vrot.lane.b32.xlu0 %v5415_v46, %s6516_s29 }
 0x20e   : > { %v2393_v19 = vmul.f32 0.1, %v2308_v15 }
 0x210   : > { %v2425_v23 = vmax.f32 %v2308_v15, %v2393_v19  ;;  %1267 = vrot.lane.b32.xlu2 %v5345_v34, %s6514_s24 }
 0x211   : > { %895 = vrot.lane.b32.xlu1 %v5442_v17, %s6516_s29  ;;  %v1645_v30 = vpop.permute.xlu0 %1644 }
 0x212   : > { %2532 = vst.msk [vmem:[#allocation4 + $0x70] sm:$0xff] %vm2452_vm12, %v2425_v23  ;;  %v1840_v9 = vpop.permute.xlu2 %1839  ;;  %v1000_v23 = vld [vmem:[#allocation2 + $0x1c7] sm:$0xff] }
 0x213   : > { %v1258_v25 = vpop.permute.xlu1 %1257  ;;  %v2145_v31 = vld [vmem:[#allocation3 + $0x60] sm:$0xff] }
 0x214   : > { %1341 = vst.msk [vmem:[#allocation3 + $0x68] sm:$0xff] %vm1327_vm6, %v1258_v25  ;;  %4126 = vmatmul.msk.f32.gmra.mxu0 %vm2174_vm11, %v2145_v31  ;;  %1080 = vrot.lane.b32.xlu0 %v5457_v33, %s6515_s12  ;;  %v5554_v25 = vld [vmem:[#allocation2 + $0x187] sm:$0xff] }
 0x215   : > { %1534 = vst.msk [vmem:[#allocation3 + $0x68] sm:$0xff] %vm1520_vm7, %v1451_v1  ;;  %v5518_v1 = vld [vmem:[#allocation2 + $0x1d0] sm:$0xff] }
 0x216   : > { %1728 = vst.msk [vmem:[#allocation3 + $0x68] sm:$0xff] %vm1714_vm8, %v1645_v30 }
 0x218   : > { %1460 = vrot.lane.b32.xlu2 %v5343_v42, %s6517_s14 }
 0x219   : > { %1088 = vrot.lane.b32.xlu1 %v5455_v24, %s6515_s12  ;;  %v874_v40 = vpop.permute.xlu0 %873 }
 0x21a   : > { %v1069_v18 = vpop.permute.xlu2 %1068  ;;  %956 = vst.msk [vmem:[#allocation3 + $0x70] sm:$0xff] %vm941_vm4, %v874_v40 }
 0x21b   : > { %v1838_v32 = vpop.permute.xlu1 %1837 }
 0x21c   : > { %1921 = vst.msk [vmem:[#allocation3 + $0x68] sm:$0xff] %vm1907_vm9, %v1838_v32  ;;  %1273 = vrot.lane.b32.xlu0 %v5472_v44, %s6514_s24 }
 0x21d   : > { %2114 = vst.msk [vmem:[#allocation3 + $0x68] sm:$0xff] %vm2100_vm10, %v2031_v11  ;;  %v993_v11 = vld [vmem:[#allocation2 + $0x14f] sm:$0xff] }
 0x220   : > { %1654 = vrot.lane.b32.xlu2 %v5468_v37, %s6489_s30 }
 0x221   : > { %1281 = vrot.lane.b32.xlu1 %v5470_v13, %s6514_s24  ;;  %v2310_v45 = vpop.f32.mrf.mxu0  ;;  %v1453_v48 = vpop.permute.xlu0 %1452 }
 0x222   : > { %v2311_v34 = vadd.f32 %v5197_v62, %v2310_v45  ;;  %v1649_v47 = vpop.permute.xlu2 %1648 }
 0x223   : > { %v1067_v49 = vpop.permute.xlu1 %1066 }
 0x224   : > { %v2394_v39 = vmul.f32 0.1, %v2311_v34  ;;  %1149 = vst.msk [vmem:[#allocation3 + $0x70] sm:$0xff] %vm1134_vm5, %v1067_v49  ;;  %v2146_v50 = vld [vmem:[#allocation3 + $0x68] sm:$0xff]  ;;  %1466 = vrot.lane.b32.xlu0 %v5489_v43, %s6517_s14 }
 0x225   : > { %1342 = vst.msk [vmem:[#allocation3 + $0x70] sm:$0xff] %vm1327_vm6, %v1260_v5  ;;  %4127 = vmatmul.msk.f32.gmra.mxu0 %vm2174_vm11, %v2146_v50 }
 0x226   : > { %v2426_v41 = vmax.f32 %v2311_v34, %v2394_v39  ;;  %1535 = vst.msk [vmem:[#allocation3 + $0x70] sm:$0xff] %vm1520_vm7, %v1453_v48  ;;  %v5579_v34 = vld [vmem:[#allocation2 + $0x188] sm:$0xff] }
 0x228   : > { %2533 = vst.msk [vmem:[#allocation4 + $0x88] sm:$0xff] %vm2452_vm12, %v2426_v41  ;;  %1847 = vrot.lane.b32.xlu2 %v5485_v10, %s4340_s25 }
 0x229   : > { %1474 = vrot.lane.b32.xlu1 %v5487_v63, %s6517_s14  ;;  %v2033_v56 = vpop.permute.xlu0 %2032 }
 0x22a   : > { %v878_v38 = vpop.permute.xlu2 %877 }
 0x22b   : > { %v1647_v51 = vpop.permute.xlu1 %1646  ;;  %958 = vst.msk [vmem:[#allocation3 + $0x80] sm:$0xff] %vm941_vm4, %v878_v38  ;;  %v5591_v38 = vld [vmem:[#allocation2 + $0x1e7] sm:$0xff] }
 0x22c   : > { %1729 = vst.msk [vmem:[#allocation3 + $0x70] sm:$0xff] %vm1714_vm8, %v1647_v51  ;;  %1660 = vrot.lane.b32.xlu0 %v5506_v57, %s6489_s30 }
 0x22d   : > { %1922 = vst.msk [vmem:[#allocation3 + $0x70] sm:$0xff] %vm1907_vm9, %v1840_v9 }
 0x22e   : > { %2115 = vst.msk [vmem:[#allocation3 + $0x70] sm:$0xff] %vm2100_vm10, %v2033_v56 }
 0x230   : > { %2040 = vrot.lane.b32.xlu2 %v5502_v53, %s6491_s13 }
 0x231   : > { %1668 = vrot.lane.b32.xlu1 %v5504_v52, %s6489_s30  ;;  %v1262_v3 = vpop.permute.xlu0 %1261 }
 0x232   : > { %v1457_v22 = vpop.permute.xlu2 %1456  ;;  %v2313_v60 = vpop.f32.mrf.mxu0 }
 0x233   : > { %v876_v58 = vpop.permute.xlu1 %875  ;;  %v2314_v61 = vadd.f32 %v5197_v62, %v2313_v60 }
 0x234   : > { %957 = vst.msk [vmem:[#allocation3 + $0x78] sm:$0xff] %vm941_vm4, %v876_v58  ;;  %1853 = vrot.lane.b32.xlu0 %v5520_v36, %s4340_s25 }
 0x235   : > { %1150 = vst.msk [vmem:[#allocation3 + $0x78] sm:$0xff] %vm1134_vm5, %v1069_v18  ;;  %v2395_v2 = vmul.f32 0.1, %v2314_v61  ;;  %v2147_v4 = vld [vmem:[#allocation3 + $0x70] sm:$0xff] }
 0x236   : > { %1343 = vst.msk [vmem:[#allocation3 + $0x78] sm:$0xff] %vm1327_vm6, %v1262_v3  ;;  %4128 = vmatmul.msk.f32.gmra.mxu0 %vm2174_vm11, %v2147_v4 }
 0x237   : > { %v2427_v26 = vmax.f32 %v2314_v61, %v2395_v2 }
 0x238   : > { %883 = vrot.lane.b32.xlu2 %v5302_v28, %s6516_s29 }
 0x239   : > { %1861 = vrot.lane.b32.xlu1 %v5518_v1, %s4340_s25  ;;  %2534 = vst.msk [vmem:[#allocation4 + $0x90] sm:$0xff] %vm2452_vm12, %v2427_v26  ;;  %v1842_v6 = vpop.permute.xlu0 %1841 }
 0x23a   : > { %v2037_v54 = vpop.permute.xlu2 %2036 }
 0x23b   : > { %v1455_v7 = vpop.permute.xlu1 %1454 }
 0x23c   : > { %1536 = vst.msk [vmem:[#allocation3 + $0x78] sm:$0xff] %vm1520_vm7, %v1455_v7  ;;  %2046 = vrot.lane.b32.xlu0 %v5442_v17, %s6491_s13 }
 0x23d   : > { %1730 = vst.msk [vmem:[#allocation3 + $0x78] sm:$0xff] %vm1714_vm8, %v1649_v47 }
 0x23e   : > { %1923 = vst.msk [vmem:[#allocation3 + $0x78] sm:$0xff] %vm1907_vm9, %v1842_v6 }
 0x240   : > { %1076 = vrot.lane.b32.xlu2 %v993_v11, %s6515_s12  ;;  %v2564_v14 = vld [vmem:[#allocation4 + $0x87] ss:$2 sm:$0xff] }
 0x241   : > { %2054 = vrot.lane.b32.xlu1 %v5533_v35, %s6491_s13  ;;  %2577 = vst.msk [vmem:[#allocation5 + $0x10] sm:$0xff] %vm2452_vm12, %v2564_v14  ;;  %v1071_v16 = vpop.permute.xlu0 %1070 }
 0x242   : > { %v894_v28 = vpop.permute.xlu2 %893  ;;  %1151 = vst.msk [vmem:[#allocation3 + $0x80] sm:$0xff] %vm1134_vm5, %v1071_v16 }
 0x243   : > { %v2035_v5 = vpop.permute.xlu1 %2034  ;;  %966 = vst.msk [vmem:[#allocation3 + $0xc0] sm:$0xff] %vm941_vm4, %v894_v28 }
 0x244   : > { %2116 = vst.msk [vmem:[#allocation3 + $0x78] sm:$0xff] %vm2100_vm10, %v2035_v5  ;;  %889 = vrot.lane.b32.xlu0 %v5502_v53, %s6516_s29  ;;  %v5621_v5 = vld [vmem:[#allocation2 + $0x1e8] sm:$0xff] }
 0x248   : > { %1269 = vrot.lane.b32.xlu2 %v5403_v27, %s6514_s24  ;;  %v414_v27 = vld [vmem:[%s4565_s15 + $0xe8] sm:$0xff] }
 0x249   : > { %897 = vrot.lane.b32.xlu1 %v5401_v59, %s6516_s29  ;;  %v1651_v9 = vpop.permute.xlu0 %1650  ;;  %521 = vst.msk [vmem:[#allocation2 + $0x1f0] sm:$0xff] %vm417_vm0, %v414_v27 }
 0x24a   : > { %v1459_v15 = vpop.permute.xlu2 %1458 }
 0x24b   : > { %v1264_v19 = vpop.permute.xlu1 %1263  ;;  %v2148_v21 = vld [vmem:[#allocation3 + $0x78] sm:$0xff] }
 0x24c   : > { %1344 = vst.msk [vmem:[#allocation3 + $0x80] sm:$0xff] %vm1327_vm6, %v1264_v19  ;;  %4129 = vmatmul.msk.f32.gmra.mxu0 %vm2174_vm11, %v2148_v21  ;;  %1082 = vrot.lane.b32.xlu0 %v5554_v25, %s6515_s12 }
 0x24d   : > { %1537 = vst.msk [vmem:[#allocation3 + $0x80] sm:$0xff] %vm1520_vm7, %v1457_v22  ;;  %v416_v22 = vld [vmem:[%s4565_s15 + $0xf8] sm:$0xff] }
 0x24e   : > { %1731 = vst.msk [vmem:[#allocation3 + $0x80] sm:$0xff] %vm1714_vm8, %v1651_v9 }
 0x24f   : > { %523 = vst.msk [vmem:[#allocation2 + $0x210] sm:$0xff] %vm417_vm0, %v416_v22 }
 0x250   : > { %1462 = vrot.lane.b32.xlu2 %v5415_v46, %s6517_s14  ;;  %v5567_v32 = vld [vmem:[#allocation2 + $0x1ef] sm:$0xff] }
 0x251   : > { %1090 = vrot.lane.b32.xlu1 %v1000_v23, %s6515_s12  ;;  %v880_v18 = vpop.permute.xlu0 %879  ;;  %587 = vst.msk [vmem:[#allocation3 + $0xf8] sm:$0xff] %vm417_vm0, %v5567_v32  ;;  %v5608_v3 = vld [vmem:[#allocation2 + $0x1f0] sm:$0xff] }
 0x252   : > { %v1473_v31 = vpop.permute.xlu2 %1472  ;;  %959 = vst.msk [vmem:[#allocation3 + $0x88] sm:$0xff] %vm941_vm4, %v880_v18  ;;  %v5623_v16 = vld [vmem:[#allocation2 + $0x1f1] sm:$0xff]  ;;  %v5637_v9 = vld [vmem:[#allocation2 + $0x1e9] sm:$0xff] }
 0x253   : > { %v1844_v30 = vpop.permute.xlu1 %1843 }
 0x254   : > { %1924 = vst.msk [vmem:[#allocation3 + $0x80] sm:$0xff] %vm1907_vm9, %v1844_v30  ;;  %903 = vrot.lane.b32.xlu0 %v5533_v35, %s6516_s29 }
 0x255   : > { %2117 = vst.msk [vmem:[#allocation3 + $0x80] sm:$0xff] %vm2100_vm10, %v2037_v54 }
 0x258   : > { %1656 = vrot.lane.b32.xlu2 %v5457_v33, %s6489_s30  ;;  %v2316_v33 = vpop.f32.mrf.mxu0 }
 0x259   : > { %1283 = vrot.lane.b32.xlu1 %v5418_v8, %s6514_s24  ;;  %v1266_v47 = vpop.permute.xlu0 %1265  ;;  %v2317_v8 = vadd.f32 %v5197_v62, %v2316_v33  ;;  %v5664_v33 = vld [vmem:[#allocation2 + $0x210] sm:$0xff] }
 0x25a   : > { %v2039_v46 = vpop.permute.xlu2 %2038 }
 0x25b   : > { %v1073_v40 = vpop.permute.xlu1 %1072  ;;  %v2396_v50 = vmul.f32 0.1, %v2317_v8 }
 0x25c   : > { %1152 = vst.msk [vmem:[#allocation3 + $0x88] sm:$0xff] %vm1134_vm5, %v1073_v40  ;;  %v2149_v45 = vld [vmem:[#allocation3 + $0x80] sm:$0xff]  ;;  %1849 = vrot.lane.b32.xlu0 %v5472_v44, %s4340_s25  ;;  %v415_v44 = vld [vmem:[%s4565_s15 + $0xf0] sm:$0xff]  ;;  %s6487_s15 = smov 56  }
 0x25d   : > { %4130 = vmatmul.msk.f32.gmra.mxu0 %vm2174_vm11, %v2149_v45  ;;  %1345 = vst.msk [vmem:[#allocation3 + $0x88] sm:$0xff] %vm1327_vm6, %v1266_v47  ;;  %v2428_v41 = vmax.f32 %v2317_v8, %v2396_v50 }
 0x25e   : > { %1538 = vst.msk [vmem:[#allocation3 + $0x88] sm:$0xff] %vm1520_vm7, %v1459_v15 }
 0x25f   : > { %2535 = vst.msk [vmem:[#allocation4 + $0xa8] sm:$0xff] %vm2452_vm12, %v2428_v41 }
 0x260   : > { %1476 = vrot.lane.b32.xlu2 %v5431_v12, %s6517_s14  ;;  %v2319_v51 = vpop.f32.mrf.mxu0  ;;  %522 = vst.msk [vmem:[#allocation2 + $0x208] sm:$0xff] %vm417_vm0, %v415_v44  ;;  %vm2802_vm0 = vcmask 326912  }
 0x261   : > { %1275 = vrot.lane.b32.xlu1 %v5579_v34, %s6514_s24  ;;  %v1280_v48 = vpop.permute.xlu0 %1279  ;;  %v2320_v56 = vadd.f32 %v5197_v62, %v2319_v51 }
 0x262   : > { %v2053_v49 = vpop.permute.xlu2 %2052 }
 0x263   : > { %v1087_v39 = vpop.permute.xlu1 %1086  ;;  %v2397_v61 = vmul.f32 0.1, %v2320_v56 }
 0x264   : > { %1159 = vst.msk [vmem:[#allocation3 + $0xc0] sm:$0xff] %vm1134_vm5, %v1087_v39  ;;  %1670 = vrot.lane.b32.xlu0 %v5591_v38, %s6489_s30 }
 0x265   : > { %1352 = vst.msk [vmem:[#allocation3 + $0xc0] sm:$0xff] %vm1327_vm6, %v1280_v48  ;;  %v2429_v2 = vmax.f32 %v2320_v56, %v2397_v61  ;;  %v5678_v56 = vld [vmem:[#allocation2 + $0x211] sm:$0xff] }
 0x266   : > { %1545 = vst.msk [vmem:[#allocation3 + $0xc0] sm:$0xff] %vm1520_vm7, %v1473_v31 }
 0x267   : > { %2536 = vst.msk [vmem:[#allocation4 + $0xb0] sm:$0xff] %vm2452_vm12, %v2429_v2 }
 0x268   : > { %1468 = vrot.lane.b32.xlu2 %v5364_v29, %s6517_s14 }
 0x269   : > { %1096 = vrot.lane.b32.xlu1 %v5567_v32, %s6515_s12  ;;  %v1846_v4 = vpop.permute.xlu0 %1845 }
 0x26a   : > { %v1268_v58 = vpop.permute.xlu2 %1267  ;;  %v2322_v26 = vpop.f32.mrf.mxu0 }
 0x26b   : > { %v1653_v60 = vpop.permute.xlu1 %1652  ;;  %v2323_v54 = vadd.f32 %v5197_v62, %v2322_v26 }
 0x26c   : > { %1732 = vst.msk [vmem:[#allocation3 + $0x88] sm:$0xff] %vm1714_vm8, %v1653_v60  ;;  %1662 = vrot.lane.b32.xlu0 %v5385_v55, %s6489_s30 }
 0x26d   : > { %1925 = vst.msk [vmem:[#allocation3 + $0x88] sm:$0xff] %vm1907_vm9, %v1846_v4  ;;  %v2398_v6 = vmul.f32 0.1, %v2323_v54 }
 0x26e   : > { %2118 = vst.msk [vmem:[#allocation3 + $0x88] sm:$0xff] %vm2100_vm10, %v2039_v46 }
 0x26f   : > { %v2430_v28 = vmax.f32 %v2323_v54, %v2398_v6  ;;  %v5722_v6 = vld [vmem:[#allocation2 + $0x208] sm:$0xff] }
 0x270   : > { %1289 = vrot.lane.b32.xlu2 %v5608_v3, %s6514_s24 }
 0x271   : > { %2042 = vrot.lane.b32.xlu1 %v5489_v43, %s6491_s13  ;;  %v1860_v14 = vpop.permute.xlu0 %1859  ;;  %2537 = vst.msk [vmem:[#allocation4 + $0xc8] sm:$0xff] %vm2452_vm12, %v2430_v28 }
 0x272   : > { %v1461_v7 = vpop.permute.xlu2 %1460 }
 0x273   : > { %v1667_v11 = vpop.permute.xlu1 %1666 }
 0x274   : > { %1739 = vst.msk [vmem:[#allocation3 + $0xc0] sm:$0xff] %vm1714_vm8, %v1667_v11  ;;  %1482 = vrot.lane.b32.xlu0 %v5623_v16, %s6517_s14 }
 0x275   : > { %1932 = vst.msk [vmem:[#allocation3 + $0xc0] sm:$0xff] %vm1907_vm9, %v1860_v14  ;;  %v2150_v15 = vld [vmem:[#allocation3 + $0x88] sm:$0xff] }
 0x276   : > { %2125 = vst.msk [vmem:[#allocation3 + $0xc0] sm:$0xff] %vm2100_vm10, %v2053_v49  ;;  %4131 = vmatmul.msk.f32.gmra.mxu0 %vm2174_vm11, %v2150_v15 }
 0x278   : > { %885 = vrot.lane.b32.xlu2 %v5343_v42, %s6516_s29 }
 0x279   : > { %1863 = vrot.lane.b32.xlu1 %v5621_v5, %s4340_s25  ;;  %v1075_v42 = vpop.permute.xlu0 %1074 }
 0x27a   : > { %v1655_v55 = vpop.permute.xlu2 %1654 }
 0x27b   : > { %v882_v19 = vpop.permute.xlu1 %881  ;;  %v2325_v21 = vpop.f32.mrf.mxu0 }
 0x27c   : > { %960 = vst.msk [vmem:[#allocation3 + $0x90] sm:$0xff] %vm941_vm4, %v882_v19  ;;  %v2326_v23 = vadd.f32 %v5197_v62, %v2325_v21  ;;  %1078 = vrot.lane.b32.xlu0 %v5468_v37, %s6515_s12  ;;  %v5734_v19 = vld [vmem:[#allocation2 + $0x209] sm:$0xff] }
 0x27d   : > { %1153 = vst.msk [vmem:[#allocation3 + $0x90] sm:$0xff] %vm1134_vm5, %v1075_v42  ;;  %v2157_v31 = vld [vmem:[#allocation3 + $0xc0] sm:$0xff] }
 0x27e   : > { %v2399_v27 = vmul.f32 0.1, %v2326_v23  ;;  %1346 = vst.msk [vmem:[#allocation3 + $0x90] sm:$0xff] %vm1327_vm6, %v1268_v58  ;;  %4138 = vmatmul.msk.f32.vlgmr.msra.gmra.mxu2 %vm2174_vm11, %v2157_v31 }
 0x27f   : > { %1539 = vst.msk [vmem:[#allocation3 + $0x90] sm:$0xff] %vm1520_vm7, %v1461_v7 }
 0x280   : > { %2056 = vrot.lane.b32.xlu2 %v5637_v9, %s6491_s13  ;;  %v2431_v30 = vmax.f32 %v2326_v23, %v2399_v27  ;;  %1733 = vst.msk [vmem:[#allocation3 + $0x90] sm:$0xff] %vm1714_vm8, %v1655_v55  ;;  %v1584_v23 = vld [vmem:[#allocation2 + $0x227] sm:$0xff] }
 0x281   : > { %1855 = vrot.lane.b32.xlu1 %v5387_v20, %s4340_s25  ;;  %v5653_v20 = vld [vmem:[#allocation2 + $0x20f] sm:$0xff]  ;;  %v888_v40 = vpop.permute.xlu0 %887 }
 0x282   : > { %v1848_v18 = vpop.permute.xlu2 %1847  ;;  %2538 = vst.msk [vmem:[#allocation4 + $0xd0] sm:$0xff] %vm2452_vm12, %v2431_v30 }
 0x283   : > { %v896_v46 = vpop.permute.xlu1 %895  ;;  %1926 = vst.msk [vmem:[#allocation3 + $0x90] sm:$0xff] %vm1907_vm9, %v1848_v18 }
 0x284   : > { %967 = vst.msk [vmem:[#allocation3 + $0xc8] sm:$0xff] %vm941_vm4, %v896_v46  ;;  %899 = vrot.lane.b32.xlu0 %v5487_v63, %s6516_s29 }
 0x285   : > { %963 = vst.msk [vmem:[#allocation3 + $0xa8] sm:$0xff] %vm941_vm4, %v888_v40 }
 0x288   : > { %2048 = vrot.lane.b32.xlu2 %v5401_v59, %s6491_s13 }
 0x289   : > { %1676 = vrot.lane.b32.xlu1 %v5653_v20, %s6489_s30  ;;  %v2566_v47 = vld [vmem:[#allocation4 + $0xc7] ss:$2 sm:$0xff]  ;;  %v1081_v8 = vpop.permute.xlu0 %1080 }
 0x28a   : > { %v2041_v37 = vpop.permute.xlu2 %2040  ;;  %2578 = vst.msk [vmem:[#allocation5 + $0x18] sm:$0xff] %vm2452_vm12, %v2566_v47  ;;  %v1970_v47 = vld [vmem:[#allocation2 + $0x229] sm:$0xff] }
 0x28b   : > { %v1089_v45 = vpop.permute.xlu1 %1088  ;;  %2119 = vst.msk [vmem:[#allocation3 + $0x90] sm:$0xff] %vm2100_vm10, %v2041_v37 }
 0x28c   : > { %1160 = vst.msk [vmem:[#allocation3 + $0xc8] sm:$0xff] %vm1134_vm5, %v1089_v45  ;;  %891 = vrot.lane.b32.xlu0 %v5489_v43, %s6516_s29 }
 0x28d   : > { %1156 = vst.msk [vmem:[#allocation3 + $0xa8] sm:$0xff] %vm1134_vm5, %v1081_v8 }
 0x290   : > { %1869 = vrot.lane.b32.xlu2 %v5664_v33, %s4340_s25 }
 0x291   : > { %1271 = vrot.lane.b32.xlu1 %v5485_v10, %s6514_s24  ;;  %v2328_v59 = vpop.f32.mrf.mxu0  ;;  %v1274_v44 = vpop.permute.xlu0 %1273 }
 0x292   : > { %v2329_v49 = vadd.f32 %v5197_v62, %v2328_v59  ;;  %v884_v39 = vpop.permute.xlu2 %883  ;;  %v2151_v41 = vld [vmem:[#allocation3 + $0x90] sm:$0xff]  ;;  %1349 = vst.msk [vmem:[#allocation3 + $0xa8] sm:$0xff] %vm1327_vm6, %v1274_v44 }
 0x293   : > { %v1282_v50 = vpop.permute.xlu1 %1281  ;;  %961 = vst.msk [vmem:[#allocation3 + $0x98] sm:$0xff] %vm941_vm4, %v884_v39  ;;  %4132 = vmatmul.msk.f32.gmra.mxu0 %vm2174_vm11, %v2151_v41 }
 0x294   : > { %v2400_v48 = vmul.f32 0.1, %v2329_v49  ;;  %1353 = vst.msk [vmem:[#allocation3 + $0xc8] sm:$0xff] %vm1327_vm6, %v1282_v50  ;;  %2062 = vrot.lane.b32.xlu0 %v5678_v56, %s6491_s13 }
 0x296   : > { %v2432_v51 = vmax.f32 %v2329_v49, %v2400_v48 }
 0x298   : > { %2539 = vst.msk [vmem:[#allocation4 + $0xe8] sm:$0xff] %vm2452_vm12, %v2432_v51  ;;  %1464 = vrot.lane.b32.xlu2 %v5502_v53, %s6517_s14 }
 0x299   : > { %1092 = vrot.lane.b32.xlu1 %v5504_v52, %s6515_s12  ;;  %v1467_v22 = vpop.permute.xlu0 %1466 }
 0x29a   : > { %v1077_v10 = vpop.permute.xlu2 %1076  ;;  %1542 = vst.msk [vmem:[#allocation3 + $0xa8] sm:$0xff] %vm1520_vm7, %v1467_v22  ;;  %v1585_v22 = vld [vmem:[#allocation2 + $0x22f] sm:$0xff] }
 0x29b   : > { %v1475_v43 = vpop.permute.xlu1 %1474  ;;  %1154 = vst.msk [vmem:[#allocation3 + $0x98] sm:$0xff] %vm1134_vm5, %v1077_v10 }
 0x29c   : > { %1546 = vst.msk [vmem:[#allocation3 + $0xc8] sm:$0xff] %vm1520_vm7, %v1475_v43  ;;  %1658 = vrot.lane.b32.xlu0 %v5554_v25, %s6489_s30  ;;  %v5710_v25 = vld [vmem:[#allocation2 + $0x207] sm:$0xff]  ;;  %v1778_v43 = vld [vmem:[#allocation2 + $0x230] sm:$0xff] }
 0x2a0   : > { %1285 = vrot.lane.b32.xlu2 %v5518_v1, %s6514_s24 }
 0x2a1   : > { %1084 = vrot.lane.b32.xlu1 %v5506_v57, %s6515_s12  ;;  %v1661_v4 = vpop.permute.xlu0 %1660 }
 0x2a2   : > { %v2331_v53 = vpop.f32.mrf.mxu0  ;;  %v1270_v58 = vpop.permute.xlu2 %1269  ;;  %1736 = vst.msk [vmem:[#allocation3 + $0xa8] sm:$0xff] %vm1714_vm8, %v1661_v4 }
 0x2a3   : > { %v2332_v52 = vadd.f32 %v5197_v62, %v2331_v53  ;;  %v1669_v60 = vpop.permute.xlu1 %1668  ;;  %1347 = vst.msk [vmem:[#allocation3 + $0x98] sm:$0xff] %vm1327_vm6, %v1270_v58 }
 0x2a4   : > { %1740 = vst.msk [vmem:[#allocation3 + $0xc8] sm:$0xff] %vm1714_vm8, %v1669_v60  ;;  %1478 = vrot.lane.b32.xlu0 %v5533_v35, %s6517_s14 }
 0x2a5   : > { %v2401_v61 = vmul.f32 0.1, %v2332_v52 }
 0x2a7   : > { %v2433_v2 = vmax.f32 %v2332_v52, %v2401_v61 }
 0x2a8   : > { %1277 = vrot.lane.b32.xlu2 %v5520_v36, %s6514_s24 }
 0x2a9   : > { %2540 = vst.msk [vmem:[#allocation4 + $0xf0] sm:$0xff] %vm2452_vm12, %v2433_v2  ;;  %905 = vrot.lane.b32.xlu1 %v5637_v9, %s6516_s29  ;;  %v1854_v26 = vpop.permute.xlu0 %1853 }
 0x2aa   : > { %v1463_v57 = vpop.permute.xlu2 %1462  ;;  %1929 = vst.msk [vmem:[#allocation3 + $0xa8] sm:$0xff] %vm1907_vm9, %v1854_v26 }
 0x2ab   : > { %v1862_v1 = vpop.permute.xlu1 %1861  ;;  %1540 = vst.msk [vmem:[#allocation3 + $0x98] sm:$0xff] %vm1520_vm7, %v1463_v57 }
 0x2ac   : > { %1933 = vst.msk [vmem:[#allocation3 + $0xc8] sm:$0xff] %vm1907_vm9, %v1862_v1  ;;  %1470 = vrot.lane.b32.xlu0 %v5442_v17, %s6517_s14  ;;  %v2641_v1 = vld [vmem:[#allocation4 + $0x9] ss:$2 sm:$0xff] }
 0x2b0   : > { %1098 = vrot.lane.b32.xlu2 %v5710_v25, %s6515_s12 }
 0x2b1   : > { %1851 = vrot.lane.b32.xlu1 %v5579_v34, %s4340_s25  ;;  %v2047_v11 = vpop.permute.xlu0 %2046 }
 0x2b2   : > { %v1657_v36 = vpop.permute.xlu2 %1656  ;;  %2122 = vst.msk [vmem:[#allocation3 + $0xa8] sm:$0xff] %vm2100_vm10, %v2047_v11 }
 0x2b3   : > { %v2055_v35 = vpop.permute.xlu1 %2054  ;;  %1734 = vst.msk [vmem:[#allocation3 + $0x98] sm:$0xff] %vm1714_vm8, %v1657_v36  ;;  %v2334_v54 = vpop.f32.mrf.mxu0  ;;  %v2698_v36 = vld [vmem:[#allocation4 + $0x27] ss:$2 sm:$0xff] }
 0x2b4   : > { %2126 = vst.msk [vmem:[#allocation3 + $0xc8] sm:$0xff] %vm2100_vm10, %v2055_v35  ;;  %v2335_v7 = vadd.f32 %v5197_v62, %v2334_v54  ;;  %1291 = vrot.lane.b32.xlu0 %v5722_v6, %s6514_s24 }
 0x2b6   : > { %v2402_v28 = vmul.f32 0.1, %v2335_v7 }
 0x2b8   : > { %2044 = vrot.lane.b32.xlu2 %v5364_v29, %s6491_s13  ;;  %v2434_v17 = vmax.f32 %v2335_v7, %v2402_v28  ;;  %v2812_v28 = vld [vmem:[#allocation4 + $0x29] ss:$2 sm:$0xff] }
 0x2b9   : > { %1672 = vrot.lane.b32.xlu1 %v5567_v32, %s6489_s30  ;;  %v890_v15 = vpop.permute.xlu0 %889  ;;  %v2154_v55 = vld [vmem:[#allocation3 + $0xa8] sm:$0xff] }
 0x2ba   : > { %v1477_v34 = vpop.permute.xlu2 %1476  ;;  %2541 = vst.msk [vmem:[#allocation4 + $0x108] sm:$0xff] %vm2452_vm12, %v2434_v17  ;;  %4135 = vmatmul.msk.f32.vlgmr.msra.gmra.mxu1 %vm2174_vm11, %v2154_v55 }
 0x2bb   : > { %v898_v14 = vpop.permute.xlu1 %897  ;;  %v2158_v62 = vld [vmem:[#allocation3 + $0xc8] sm:$0xff]  ;;  %964 = vst.msk [vmem:[#allocation3 + $0xb0] sm:$0xff] %vm941_vm4, %v890_v15 }
 0x2bc   : > { %968 = vst.msk [vmem:[#allocation3 + $0xd0] sm:$0xff] %vm941_vm4, %v898_v14  ;;  %4139 = vmatmul.msk.f32.gmra.mxu2 %vm2174_vm11, %v2158_v62  ;;  %1484 = vrot.lane.b32.xlu0 %v5734_v19, %s6517_s14  ;;  %v2870_v14 = vld [vmem:[#allocation4 + $0x47] ss:$2 sm:$0xff] }
 0x2c0   : > { %1865 = vrot.lane.b32.xlu2 %v5608_v3, %s4340_s25 }
 0x2c1   : > { %1664 = vrot.lane.b32.xlu1 %v5455_v24, %s6489_s30  ;;  %v1083_v21 = vpop.permute.xlu0 %1082  ;;  %v5754_v24 = vld [vmem:[%s6518_s2] ss:$0 sm:$0xff] }
 0x2c2   : > { %v1469_v29 = vpop.permute.xlu2 %1468  ;;  %1157 = vst.msk [vmem:[#allocation3 + $0xb0] sm:$0xff] %vm1134_vm5, %v1083_v21  ;;  %v2586_v21 = vld [vmem:[#allocation4 + $0x48] ss:$2 sm:$0xff] }
 0x2c3   : > { %v1091_v32 = vpop.permute.xlu1 %1090 }
 0x2c4   : > { %1161 = vst.msk [vmem:[#allocation3 + $0xd0] sm:$0xff] %vm1134_vm5, %v1091_v32  ;;  %1678 = vrot.lane.b32.xlu0 %v1584_v23, %s6489_s30  ;;  %v2927_v32 = vld [vmem:[#allocation4 + $0x48] ss:$2 sm:$0xff] }
 0x2c8   : > { %2058 = vrot.lane.b32.xlu2 %v5623_v16, %s6491_s13 }
 0x2c9   : > { %1857 = vrot.lane.b32.xlu1 %v5470_v13, %s4340_s25  ;;  %v2337_v42 = vpop.f32.mrf.mxu0  ;;  %v904_v40 = vpop.permute.xlu0 %903  ;;  %v1777_v13 = vld [vmem:[#allocation2 + $0x228] sm:$0xff] }
 0x2ca   : > { %v2338_v27 = vadd.f32 %v5754_v24, %v2337_v42  ;;  %v1290_v31 = vpop.permute.xlu2 %1289  ;;  %971 = vst.msk [vmem:[#allocation3 + $0xe8] sm:$0xff] %vm941_vm4, %v904_v40 }
 0x2cb   : > { %v1284_v30 = vpop.permute.xlu1 %1283 }
 0x2cc   : > { %1354 = vst.msk [vmem:[#allocation3 + $0xd0] sm:$0xff] %vm1327_vm6, %v1284_v30  ;;  %v2403_v18 = vmul.f32 0.1, %v2338_v27  ;;  %1871 = vrot.lane.b32.xlu0 %v1777_v13, %s4340_s25  ;;  %v2700_v13 = vld [vmem:[#allocation4 + $0x67] ss:$2 sm:$0xff] }
 0x2cd   : > { %1547 = vst.msk [vmem:[#allocation3 + $0xd0] sm:$0xff] %vm1520_vm7, %v1477_v34  ;;  %v2755_v34 = vld [vmem:[#allocation4 + $0x28] ss:$2 sm:$0xff] }
 0x2ce   : > { %v2435_v46 = vmax.f32 %v2338_v27, %v2403_v18 }
 0x2d0   : > { %2542 = vst.msk [vmem:[#allocation4 + $0x110] sm:$0xff] %vm2452_vm12, %v2435_v46  ;;  %901 = vrot.lane.b32.xlu2 %v5431_v12, %s6516_s29 }
 0x2d1   : > { %2050 = vrot.lane.b32.xlu1 %v5487_v63, %s6491_s13  ;;  %v1850_v8 = vpop.permute.xlu0 %1849 }
 0x2d2   : > { %v886_v37 = vpop.permute.xlu2 %885  ;;  %1927 = vst.msk [vmem:[#allocation3 + $0x98] sm:$0xff] %vm1907_vm9, %v1850_v8 }
 0x2d3   : > { %v1276_v45 = vpop.permute.xlu1 %1275  ;;  %962 = vst.msk [vmem:[#allocation3 + $0xa0] sm:$0xff] %vm941_vm4, %v886_v37  ;;  %v2643_v37 = vld [vmem:[#allocation4 + $0x49] ss:$2 sm:$0xff] }
 0x2d4   : > { %1350 = vst.msk [vmem:[#allocation3 + $0xb0] sm:$0xff] %vm1327_vm6, %v1276_v45  ;;  %714 = vrot.lane.b32.xlu0 %v5608_v3, %s6519_s22  ;;  %v2757_v45 = vld [vmem:[#allocation4 + $0x68] ss:$2 sm:$0xff]  ;;  %s6526_s22 = smov 40  }
 0x2d5   : > { %1543 = vst.msk [vmem:[#allocation3 + $0xb0] sm:$0xff] %vm1520_vm7, %v1469_v29  ;;  %v2984_v29 = vld [vmem:[#allocation4 + $0x49] ss:$2 sm:$0xff] }
 0x2d7   : > { %v2568_v63 = vld [vmem:[#allocation4 + $0x107] ss:$2 sm:$0xff] }
 0x2d8   : > { %2064 = vrot.lane.b32.xlu2 %v1970_v47, %s6491_s13  ;;  %2579 = vst.msk [vmem:[#allocation5 + $0x20] sm:$0xff] %vm2452_vm12, %v2568_v63  ;;  %v2872_v63 = vld [vmem:[#allocation4 + $0x87] ss:$2 sm:$0xff] }
 0x2d9   : > { %1094 = vrot.lane.b32.xlu1 %v5591_v38, %s6515_s12  ;;  %v1671_v48 = vpop.permute.xlu0 %1670 }
 0x2da   : > { %v2340_v12 = vpop.f32.mrf.mxu0  ;;  %v2057_v49 = vpop.permute.xlu2 %2056  ;;  %1741 = vst.msk [vmem:[#allocation3 + $0xd0] sm:$0xff] %vm1714_vm8, %v1671_v48  ;;  %v2588_v48 = vld [vmem:[#allocation4 + $0x88] ss:$2 sm:$0xff] }
 0x2db   : > { %v2341_v59 = vadd.f32 %v5754_v24, %v2340_v12  ;;  %v1097_v39 = vpop.permute.xlu1 %1096 }
 0x2dc   : > { %1164 = vst.msk [vmem:[#allocation3 + $0xe8] sm:$0xff] %vm1134_vm5, %v1097_v39  ;;  %1480 = vrot.lane.b32.xlu0 %v5637_v9, %s6517_s14 }
 0x2dd   : > { %v2404_v50 = vmul.f32 0.1, %v2341_v59  ;;  %1357 = vst.msk [vmem:[#allocation3 + $0xe8] sm:$0xff] %vm1327_vm6, %v1290_v31 }
 0x2df   : > { %v2436_v41 = vmax.f32 %v2341_v59, %v2404_v50  ;;  %v2814_v59 = vld [vmem:[#allocation4 + $0x69] ss:$2 sm:$0xff] }
 0x2e0   : > { %907 = vrot.lane.b32.xlu2 %v5623_v16, %s6516_s29 }
 0x2e1   : > { %2543 = vst.msk [vmem:[#allocation4 + $0x128] sm:$0xff] %vm2452_vm12, %v2436_v41  ;;  %1287 = vrot.lane.b32.xlu1 %v5621_v5, %s6514_s24  ;;  %v1663_v51 = vpop.permute.xlu0 %1662 }
 0x2e2   : > { %v2049_v38 = vpop.permute.xlu2 %2048  ;;  %1737 = vst.msk [vmem:[#allocation3 + $0xb0] sm:$0xff] %vm1714_vm8, %v1663_v51 }
 0x2e3   : > { %v2043_v3 = vpop.permute.xlu1 %2042 }
 0x2e4   : > { %2120 = vst.msk [vmem:[#allocation3 + $0x98] sm:$0xff] %vm2100_vm10, %v2043_v3  ;;  %1293 = vrot.lane.b32.xlu0 %v5664_v33, %s6514_s24  ;;  %v2645_v3 = vld [vmem:[#allocation4 + $0x89] ss:$2 sm:$0xff] }
 0x2e8   : > { %1674 = vrot.lane.b32.xlu2 %v5710_v25, %s6489_s30  ;;  %v2584_v25 = vld [vmem:[#allocation4 + $0x8] ss:$2 sm:$0xff] }
 0x2e9   : > { %1100 = vrot.lane.b32.xlu1 %v5653_v20, %s6515_s12  ;;  %v1483_v9 = vpop.permute.xlu0 %1482  ;;  %s6497_s12 = smov 48  }
 0x2ea   : > { %v1870_v5 = vpop.permute.xlu2 %1869  ;;  %1550 = vst.msk [vmem:[#allocation3 + $0xe8] sm:$0xff] %vm1520_vm7, %v1483_v9  ;;  %v2759_v9 = vld [vmem:[#allocation4 + $0xa8] ss:$2 sm:$0xff] }
 0x2eb   : > { %v1864_v16 = vpop.permute.xlu1 %1863  ;;  %v2152_v44 = vld [vmem:[#allocation3 + $0x98] sm:$0xff] }
 0x2ec   : > { %1934 = vst.msk [vmem:[#allocation3 + $0xd0] sm:$0xff] %vm1907_vm9, %v1864_v16  ;;  %4133 = vmatmul.msk.f32.gmra.mxu0 %vm2174_vm11, %v2152_v44  ;;  %2060 = vrot.lane.b32.xlu0 %v5734_v19, %s6491_s13 }
 0x2ed   : > { %2127 = vst.msk [vmem:[#allocation3 + $0xd0] sm:$0xff] %vm2100_vm10, %v2057_v49  ;;  %v2929_v49 = vld [vmem:[#allocation4 + $0x88] ss:$2 sm:$0xff] }
 0x2f0   : > { %1486 = vrot.lane.b32.xlu2 %v5678_v56, %s6517_s14  ;;  %v1971_v56 = vld [vmem:[#allocation2 + $0x231] sm:$0xff]  ;;  %s6493_s14 = smov 64  }
 0x2f1   : > { %1867 = vrot.lane.b32.xlu1 %v5722_v6, %s4340_s25  ;;  %v1079_v52 = vpop.permute.xlu0 %1078 }
 0x2f2   : > { %v1465_v20 = vpop.permute.xlu2 %1464  ;;  %1155 = vst.msk [vmem:[#allocation3 + $0xa0] sm:$0xff] %vm1134_vm5, %v1079_v52  ;;  %v2931_v52 = vld [vmem:[#allocation4 + $0xc8] ss:$2 sm:$0xff] }
 0x2f3   : > { %v1856_v33 = vpop.permute.xlu1 %1855  ;;  %v2343_v53 = vpop.f32.mrf.mxu0 }
 0x2f4   : > { %1930 = vst.msk [vmem:[#allocation3 + $0xb0] sm:$0xff] %vm1907_vm9, %v1856_v33  ;;  %v2159_v10 = vld [vmem:[#allocation3 + $0xd0] sm:$0xff]  ;;  %v2344_v58 = vadd.f32 %v5754_v24, %v2343_v53  ;;  %2066 = vrot.lane.b32.xlu0 %v1971_v56, %s6491_s13 }
 0x2f5   : > { %2123 = vst.msk [vmem:[#allocation3 + $0xb0] sm:$0xff] %vm2100_vm10, %v2049_v38  ;;  %4140 = vmatmul.msk.f32.gmra.mxu2 %vm2174_vm11, %v2159_v10  ;;  %v2986_v38 = vld [vmem:[#allocation4 + $0x89] ss:$2 sm:$0xff] }
 0x2f6   : > { %v2405_v60 = vmul.f32 0.1, %v2344_v58  ;;  %v2816_v33 = vld [vmem:[#allocation4 + $0xa9] ss:$2 sm:$0xff] }
 0x2f7   : > { %v2874_v56 = vld [vmem:[#allocation4 + $0xc7] ss:$2 sm:$0xff] }
 0x2f8   : > { %1873 = vrot.lane.b32.xlu2 %v1778_v43, %s4340_s25  ;;  %v2437_v4 = vmax.f32 %v2344_v58, %v2405_v60  ;;  %s6495_s25 = smov 40   ;;  %v2988_v58 = vld [vmem:[#allocation4 + $0xc9] ss:$2 sm:$0xff] }
 0x2f9   : > { %1680 = vrot.lane.b32.xlu1 %v1585_v22, %s6489_s30  ;;  %v900_v26 = vpop.permute.xlu0 %899 }
 0x2fa   : > { %v1286_v61 = vpop.permute.xlu2 %1285  ;;  %2544 = vst.msk [vmem:[#allocation4 + $0x130] sm:$0xff] %vm2452_vm12, %v2437_v4 }
 0x2fb   : > { %v1677_v2 = vpop.permute.xlu1 %1676  ;;  %969 = vst.msk [vmem:[#allocation3 + $0xd8] sm:$0xff] %vm941_vm4, %v900_v26 }
 0x2fc   : > { %1744 = vst.msk [vmem:[#allocation3 + $0xe8] sm:$0xff] %vm1714_vm8, %v1677_v2  ;;  %v2155_v57 = vld [vmem:[#allocation3 + $0xb0] sm:$0xff]  ;;  %2721 = vrot.lane.b32.xlu0 %v2698_v36, %s6489_s30 }
 0x2fd   : > { %1937 = vst.msk [vmem:[#allocation3 + $0xe8] sm:$0xff] %vm1907_vm9, %v1870_v5  ;;  %4136 = vmatmul.msk.f32.gmra.mxu1 %vm2174_vm11, %v2155_v57  ;;  %v2590_v36 = vld [vmem:[#allocation4 + $0xc8] ss:$2 sm:$0xff] }
 0x300   : > { %2664 = vrot.lane.b32.xlu2 %v2641_v1, %s6514_s24  ;;  %v2647_v1 = vld [vmem:[#allocation4 + $0xc9] ss:$2 sm:$0xff] }
 0x301   : > { %2607 = vrot.lane.b32.xlu1 %v2584_v25, %s6516_s29  ;;  %v2364_v7 = vpop.f32.mrf.mxu2  ;;  %v892_v6 = vpop.permute.xlu0 %891 }
 0x302   : > { %v1278_v35 = vpop.permute.xlu2 %1277  ;;  %v2365_v11 = vadd.f32 %v5754_v24, %v2364_v7  ;;  %965 = vst.msk [vmem:[#allocation3 + $0xb8] sm:$0xff] %vm941_vm4, %v892_v6 }
 0x303   : > { %v1272_v54 = vpop.permute.xlu1 %1271 }
 0x304   : > { %1348 = vst.msk [vmem:[#allocation3 + $0xa0] sm:$0xff] %vm1327_vm6, %v1272_v54  ;;  %v2412_v17 = vmul.f32 0.1, %v2365_v11  ;;  %2893 = vrot.lane.b32.xlu0 %v2870_v14, %s6497_s12  ;;  %v2704_v54 = vld [vmem:[#allocation4 + $0xe7] ss:$2 sm:$0xff] }
 0x305   : > { %1541 = vst.msk [vmem:[#allocation3 + $0xa0] sm:$0xff] %vm1520_vm7, %v1465_v20  ;;  %v2702_v20 = vld [vmem:[#allocation4 + $0xa7] ss:$2 sm:$0xff] }
 0x306   : > { %v2444_v62 = vmax.f32 %v2365_v11, %v2412_v17  ;;  %v2818_v14 = vld [vmem:[#allocation4 + $0xe9] ss:$2 sm:$0xff] }
 0x308   : > { %2835 = vrot.lane.b32.xlu2 %v2812_v28, %s6495_s25  ;;  %2551 = vst.msk [vmem:[#allocation4 + $0x1a8] sm:$0xff] %vm2452_vm12, %v2444_v62  ;;  %v2761_v62 = vld [vmem:[#allocation4 + $0xe8] ss:$2 sm:$0xff] }
 0x309   : > { %2778 = vrot.lane.b32.xlu1 %v2755_v34, %s6491_s13  ;;  %v2063_v19 = vpop.permute.xlu0 %2062 }
 0x30a   : > { %v1099_v15 = vpop.permute.xlu2 %1098  ;;  %2130 = vst.msk [vmem:[#allocation3 + $0xe8] sm:$0xff] %vm2100_vm10, %v2063_v19 }
 0x30b   : > { %v1093_v55 = vpop.permute.xlu1 %1092 }
 0x30c   : > { %1162 = vst.msk [vmem:[#allocation3 + $0xd8] sm:$0xff] %vm1134_vm5, %v1093_v55  ;;  %2609 = vrot.lane.b32.xlu0 %v2586_v21, %s6516_s29  ;;  %v2990_v21 = vld [vmem:[#allocation4 + $0x109] ss:$2 sm:$0xff] }
 0x30d   : > { %1355 = vst.msk [vmem:[#allocation3 + $0xd8] sm:$0xff] %vm1327_vm6, %v1286_v61 }
 0x310   : > { %3007 = vrot.lane.b32.xlu2 %v2984_v29, %s6493_s14  ;;  %v2346_v23 = vpop.f32.mrf.mxu0 }
 0x311   : > { %2950 = vrot.lane.b32.xlu1 %v2927_v32, %s6487_s15  ;;  %v2347_v42 = vadd.f32 %v5754_v24, %v2346_v23  ;;  %v1659_v46 = vpop.permute.xlu0 %1658  ;;  %v2162_v40 = vld [vmem:[#allocation3 + $0xe8] sm:$0xff] }
 0x312   : > { %v2045_v27 = vpop.permute.xlu2 %2044  ;;  %1735 = vst.msk [vmem:[#allocation3 + $0xa0] sm:$0xff] %vm1714_vm8, %v1659_v46  ;;  %4143 = vmatmul.msk.f32.vlgmr.msra.gmra.mxu3 %vm2174_vm11, %v2162_v40  ;;  %v2933_v23 = vld [vmem:[#allocation4 + $0x108] ss:$2 sm:$0xff]  ;;  %v2706_v40 = vld [vmem:[#allocation4 + $0x127] ss:$2 sm:$0xff] }
 0x313   : > { %v1085_v31 = vpop.permute.xlu1 %1084  ;;  %v2406_v30 = vmul.f32 0.1, %v2347_v42 }
 0x314   : > { %1158 = vst.msk [vmem:[#allocation3 + $0xb8] sm:$0xff] %vm1134_vm5, %v1085_v31  ;;  %2780 = vrot.lane.b32.xlu0 %v2757_v45, %s6491_s13  ;;  %v2560_v31 = vld [vmem:[#allocation4 + $0x7] ss:$2 sm:$0xff] }
 0x315   : > { %1351 = vst.msk [vmem:[#allocation3 + $0xb8] sm:$0xff] %vm1327_vm6, %v1278_v35  ;;  %v2438_v18 = vmax.f32 %v2347_v42, %v2406_v30 }
 0x316   : > { %2575 = vst.msk [vmem:[#allocation5] sm:$0xff] %vm2452_vm12, %v2560_v31 }
 0x317   : > { %2545 = vst.msk [vmem:[#allocation4 + $0x148] sm:$0xff] %vm2452_vm12, %v2438_v18 }
 0x318   : > { %2723 = vrot.lane.b32.xlu2 %v2700_v13, %s6489_s30  ;;  %v2649_v13 = vld [vmem:[#allocation4 + $0x109] ss:$2 sm:$0xff] }
 0x319   : > { %2666 = vrot.lane.b32.xlu1 %v2643_v37, %s6514_s24  ;;  %v1479_v12 = vpop.permute.xlu0 %1478  ;;  %v2763_v37 = vld [vmem:[#allocation4 + $0x128] ss:$2 sm:$0xff] }
 0x31a   : > { %v1866_v47 = vpop.permute.xlu2 %1865  ;;  %1548 = vst.msk [vmem:[#allocation3 + $0xd8] sm:$0xff] %vm1520_vm7, %v1479_v12 }
 0x31b   : > { %v906_v8 = vpop.permute.xlu1 %905 }
 0x31c   : > { %972 = vst.msk [vmem:[#allocation3 + $0xf0] sm:$0xff] %vm941_vm4, %v906_v8  ;;  %2952 = vrot.lane.b32.xlu0 %v2929_v49, %s6487_s15  ;;  %v3056_v8 = vld [vmem:[%s6520_s3 + $0x40] sm:$0xff]  ;;  %v3054_v49 = vld [vmem:[%s6520_s3 + $0x30] sm:$0xff] }
 0x31d   : > { %1165 = vst.msk [vmem:[#allocation3 + $0xf0] sm:$0xff] %vm1134_vm5, %v1099_v15  ;;  %v2876_v15 = vld [vmem:[#allocation4 + $0x107] ss:$2 sm:$0xff]  ;;  %3093 = vmatpush.msrb.mxu1 %v3056_v8 }
 0x320   : > { %2895 = vrot.lane.b32.xlu2 %v2872_v63, %s6497_s12  ;;  %v2820_v63 = vld [vmem:[#allocation4 + $0x129] ss:$2 sm:$0xff] }
 0x321   : > { %2837 = vrot.lane.b32.xlu1 %v2814_v59, %s6495_s25  ;;  %v1471_v41 = vpop.permute.xlu0 %1470  ;;  %v3055_v59 = vld [vmem:[%s6520_s3 + $0x38] sm:$0xff] }
 0x322   : > { %v2059_v39 = vpop.permute.xlu2 %2058  ;;  %1544 = vst.msk [vmem:[#allocation3 + $0xb8] sm:$0xff] %vm1520_vm7, %v1471_v41  ;;  %3094 = vmatpush.msrb.mxu1 %v3055_v59 }
 0x323   : > { %v1852_v50 = vpop.permute.xlu1 %1851 }
 0x324   : > { %1928 = vst.msk [vmem:[#allocation3 + $0xa0] sm:$0xff] %vm1907_vm9, %v1852_v50  ;;  %2668 = vrot.lane.b32.xlu0 %v2645_v3, %s6514_s24  ;;  %3095 = vmatpush.msrb.mxu1 %v3054_v49  ;;  %v3051_v3 = vld [vmem:[%s6520_s3 + $0x18] sm:$0xff] }
 0x325   : > { %2121 = vst.msk [vmem:[#allocation3 + $0xa0] sm:$0xff] %vm2100_vm10, %v2045_v27  ;;  %v2592_v27 = vld [vmem:[#allocation4 + $0x108] ss:$2 sm:$0xff] }
 0x328   : > { %2611 = vrot.lane.b32.xlu2 %v2588_v48, %s6516_s29  ;;  %v3052_v48 = vld [vmem:[%s6520_s3 + $0x20] sm:$0xff] }
 0x329   : > { %3009 = vrot.lane.b32.xlu1 %v2986_v38, %s6493_s14  ;;  %v1292_v44 = vpop.permute.xlu0 %1291 }
 0x32a   : > { %v902_v51 = vpop.permute.xlu2 %901  ;;  %1358 = vst.msk [vmem:[#allocation3 + $0xf0] sm:$0xff] %vm1327_vm6, %v1292_v44  ;;  %v3049_v44 = vld [vmem:[%s6520_s3 + $0x8] sm:$0xff] }
 0x32b   : > { %v1673_v5 = vpop.permute.xlu1 %1672  ;;  %970 = vst.msk [vmem:[#allocation3 + $0xe0] sm:$0xff] %vm941_vm4, %v902_v51  ;;  %v3050_v51 = vld [vmem:[%s6520_s3 + $0x10] sm:$0xff] }
 0x32c   : > { %v2153_v16 = vld [vmem:[#allocation3 + $0xa0] sm:$0xff]  ;;  %1742 = vst.msk [vmem:[#allocation3 + $0xd8] sm:$0xff] %vm1714_vm8, %v1673_v5  ;;  %2839 = vrot.lane.b32.xlu0 %v2816_v33, %s6495_s25 }
 0x32d   : > { %4134 = vmatmul.msk.f32.gmra.mxu0 %vm2174_vm11, %v2153_v16  ;;  %1935 = vst.msk [vmem:[#allocation3 + $0xd8] sm:$0xff] %vm1907_vm9, %v1866_v47 }
 0x32e   : > { %2128 = vst.msk [vmem:[#allocation3 + $0xd8] sm:$0xff] %vm2100_vm10, %v2059_v39  ;;  %v3053_v39 = vld [vmem:[%s6520_s3 + $0x28] sm:$0xff] }
 0x32f   : > { %3096 = vmatpush.msrb.mxu1 %v3053_v39 }
 0x330   : > { %2782 = vrot.lane.b32.xlu2 %v2759_v9, %s6491_s13 }
 0x331   : > { %2725 = vrot.lane.b32.xlu1 %v2702_v20, %s6489_s30  ;;  %v1485_v53 = vpop.permute.xlu0 %1484  ;;  %3097 = vmatpush.msrb.mxu1 %v3052_v48 }
 0x332   : > { %v2065_v10 = vpop.permute.xlu2 %2064  ;;  %1551 = vst.msk [vmem:[#allocation3 + $0xf0] sm:$0xff] %vm1520_vm7, %v1485_v53 }
 0x333   : > { %v1665_v43 = vpop.permute.xlu1 %1664  ;;  %3098 = vmatpush.msrb.mxu1 %v3051_v3 }
 0x334   : > { %1738 = vst.msk [vmem:[#allocation3 + $0xb8] sm:$0xff] %vm1714_vm8, %v1665_v43  ;;  %3011 = vrot.lane.b32.xlu0 %v2988_v58, %s6493_s14 }
 0x335   : > { %v2160_v22 = vld [vmem:[#allocation3 + $0xd8] sm:$0xff]  ;;  %3099 = vmatpush.msrb.mxu1 %v3050_v51 }
 0x336   : > { %4141 = vmatmul.msk.f32.gmra.mxu2 %vm2174_vm11, %v2160_v22 }
 0x337   : > { %v2355_v2 = vpop.f32.mrf.mxu1  ;;  %3100 = vmatpush.msrb.mxu1 %v3049_v44 }
 0x338   : > { %2954 = vrot.lane.b32.xlu2 %v2931_v52, %s6487_s15  ;;  %v2356_v4 = vadd.f32 %v5754_v24, %v2355_v2 }
 0x339   : > { %2897 = vrot.lane.b32.xlu1 %v2874_v56, %s6497_s12  ;;  %v1679_v57 = vpop.permute.xlu0 %1678 }
 0x33a   : > { %v908_v60 = vpop.permute.xlu2 %907  ;;  %v2409_v25 = vmul.f32 0.1, %v2356_v4  ;;  %1745 = vst.msk [vmem:[#allocation3 + $0xf0] sm:$0xff] %vm1714_vm8, %v1679_v57 }
 0x33b   : > { %v1858_v61 = vpop.permute.xlu1 %1857 }
 0x33c   : > { %1931 = vst.msk [vmem:[#allocation3 + $0xb8] sm:$0xff] %vm1907_vm9, %v1858_v61  ;;  %v2441_v7 = vmax.f32 %v2356_v4, %v2409_v25  ;;  %2727 = vrot.lane.b32.xlu0 %v2704_v54, %s6489_s30 }
 0x33e   : > { %2548 = vst.msk [vmem:[#allocation4 + $0x170] sm:$0xff] %vm2452_vm12, %v2441_v7 }
 0x33f   : > { %v2367_v26 = vpop.f32.mrf.mxu2 }
 0x340   : > { %v2368_v35 = vadd.f32 %v5754_v24, %v2367_v26  ;;  %2670 = vrot.lane.b32.xlu2 %v2647_v1, %s6514_s24 }
 0x341   : > { %2613 = vrot.lane.b32.xlu1 %v2590_v36, %s6516_s29  ;;  %v1872_v34 = vpop.permute.xlu0 %1871 }
 0x342   : > { %v2413_v11 = vmul.f32 0.1, %v2368_v35  ;;  %v1675_v6 = vpop.permute.xlu2 %1674  ;;  %1938 = vst.msk [vmem:[#allocation3 + $0xf0] sm:$0xff] %vm1907_vm9, %v1872_v34 }
 0x343   : > { %v2051_v28 = vpop.permute.xlu1 %2050  ;;  %2131 = vst.msk [vmem:[#allocation3 + $0xf0] sm:$0xff] %vm2100_vm10, %v2065_v10  ;;  %v3048_v10 = vld [vmem:[%s6520_s3] sm:$0xff] }
 0x344   : > { %v2445_v17 = vmax.f32 %v2368_v35, %v2413_v11  ;;  %2124 = vst.msk [vmem:[#allocation3 + $0xb8] sm:$0xff] %vm2100_vm10, %v2051_v28  ;;  %2899 = vrot.lane.b32.xlu0 %v2876_v15, %s6497_s12  ;;  %3101 = vmatpush.msrb.mxu1 %v3048_v10  ;;  %s6522_s12 = smov 64  }
 0x346   : > { %2552 = vst.msk [vmem:[#allocation4 + $0x1b0] sm:$0xff] %vm2452_vm12, %v2445_v17 }
 0x348   : > { %2841 = vrot.lane.b32.xlu2 %v2818_v14, %s6495_s25 }
 0x349   : > { %2784 = vrot.lane.b32.xlu1 %v2761_v62, %s6491_s13  ;;  %v715_v32 = vpop.permute.xlu0 %714 }
 0x34a   : > { %v1487_v55 = vpop.permute.xlu2 %1486  ;;  %780 = vst.msk [vmem:[#allocation3 + $0xf8] sm:$0xff] %vm748_vm2, %v715_v32  ;;  %v2163_v42 = vld [vmem:[#allocation3 + $0xf0] sm:$0xff]  ;;  %vm2917_vm2 = vcmask 458112  }
 0x34b   : > { %v1095_v19 = vpop.permute.xlu1 %1094  ;;  %v2156_v29 = vld [vmem:[#allocation3 + $0xb8] sm:$0xff]  ;;  %973 = vst.msk [vmem:[#allocation3 + $0xf8] sm:$0xff] %vm941_vm4, %v908_v60  ;;  %4144 = vmatmul.msk.f32.gmra.mxu3 %vm2174_vm11, %v2163_v42  ;;  %vm3031_vm4 = vcmask 589312  }
 0x34c   : > { %1163 = vst.msk [vmem:[#allocation3 + $0xe0] sm:$0xff] %vm1134_vm5, %v1095_v19  ;;  %4137 = vmatmul.msk.f32.gmra.mxu1 %vm2174_vm11, %v2156_v29  ;;  %2615 = vrot.lane.b32.xlu0 %v2592_v27, %s6516_s29 }
 0x350   : > { %3013 = vrot.lane.b32.xlu2 %v2990_v21, %s6493_s14  ;;  %s6524_s14 = smov 32  }
 0x351   : > { %2956 = vrot.lane.b32.xlu1 %v2933_v23, %s6487_s15  ;;  %v1481_v46 = vpop.permute.xlu0 %1480  ;;  %s3981_s15 = scalar_lea.sflag [#allocation9], %s377_s0 }
 0x352   : > { %v1874_v30 = vpop.permute.xlu2 %1873 }
 0x353   : > { %v1288_v18 = vpop.permute.xlu1 %1287 }
 0x354   : > { %1356 = vst.msk [vmem:[#allocation3 + $0xe0] sm:$0xff] %vm1327_vm6, %v1288_v18  ;;  %2786 = vrot.lane.b32.xlu0 %v2763_v37, %s6491_s13  ;;  %s6523_s13 = smov 56  }
 0x355   : > { %1549 = vst.msk [vmem:[#allocation3 + $0xe0] sm:$0xff] %vm1520_vm7, %v1481_v46 }
 0x356   : > { %1743 = vst.msk [vmem:[#allocation3 + $0xe0] sm:$0xff] %vm1714_vm8, %v1675_v6 }
 0x358   : > { %2729 = vrot.lane.b32.xlu2 %v2706_v40, %s6489_s30 }
 0x359   : > { %2672 = vrot.lane.b32.xlu1 %v2649_v13, %s6514_s24  ;;  %v1294_v12 = vpop.permute.xlu0 %1293 }
 0x35a   : > { %v2665_v45 = vpop.permute.xlu2 %2664 }
 0x35b   : > { %v1101_v47 = vpop.permute.xlu1 %1100 }
 0x35c   : > { %1166 = vst.msk [vmem:[#allocation3 + $0xf8] sm:$0xff] %vm1134_vm5, %v1101_v47  ;;  %vm3061_vm5 = vcmask 588800  }
 0x35d   : > { %1359 = vst.msk [vmem:[#allocation3 + $0xf8] sm:$0xff] %vm1327_vm6, %v1294_v12  ;;  %vm3149_vm6 = vcmask 130048  }
 0x35e   : > { %1552 = vst.msk [vmem:[#allocation3 + $0xf8] sm:$0xff] %vm1520_vm7, %v1487_v55  ;;  %vm3233_vm7 = vcmask 122880  }
 0x35f   : > { %3231 = vst.msk [vmem:[#allocation6] sm:$0xff] %vm3149_vm6, %v4335_v0 }
 0x360   : > { %3232 = vst.msk [vmem:[#allocation6 + $0x8] sm:$0xff] %vm3149_vm6, %v4335_v0 }
 0x361   : > { %2843 = vrot.lane.b32.xlu1 %v2820_v63, %s6495_s25  ;;  %v2061_v38 = vpop.permute.xlu0 %2060  ;;  %s6521_s25 = smov 48   ;;  %3235 = vst.msk [vmem:[#allocation6 + $0x18] sm:$0xff] %vm3149_vm6, %v4335_v0 }
 0x362   : > { %v2836_v50 = vpop.permute.xlu2 %2835  ;;  %3236 = vst.msk [vmem:[#allocation6 + $0x20] sm:$0xff] %vm3149_vm6, %v4335_v0 }
 0x363   : > { %v1868_v41 = vpop.permute.xlu1 %1867  ;;  %3238 = vst.msk [vmem:[#allocation6 + $0x30] sm:$0xff] %vm3149_vm6, %v4335_v0 }
 0x364   : > { %1936 = vst.msk [vmem:[#allocation3 + $0xe0] sm:$0xff] %vm1907_vm9, %v1868_v41 }
 0x365   : > { %2129 = vst.msk [vmem:[#allocation3 + $0xe0] sm:$0xff] %vm2100_vm10, %v2061_v38 }
 0x366   : > { %3239 = vst.msk [vmem:[#allocation6 + $0x38] sm:$0xff] %vm3149_vm6, %v4335_v0 }
 0x367   : > { %3241 = vst.msk [vmem:[#allocation6 + $0x48] sm:$0xff] %vm3149_vm6, %v4335_v0 }
 0x368   : > { %3242 = vst.msk [vmem:[#allocation6 + $0x50] sm:$0xff] %vm3149_vm6, %v4335_v0 }
 0x369   : > { %v2349_v5 = vpop.f32.mrf.mxu0  ;;  %v2067_v22 = vpop.permute.xlu0 %2066  ;;  %3244 = vst.msk [vmem:[#allocation6 + $0x60] sm:$0xff] %vm3149_vm6, %v4335_v0 }
 0x36a   : > { %v2350_v16 = vadd.f32 %v5754_v24, %v2349_v5  ;;  %v3008_v20 = vpop.permute.xlu2 %3007  ;;  %3245 = vst.msk [vmem:[#allocation6 + $0x68] sm:$0xff] %vm3149_vm6, %v4335_v0 }
 0x36b   : > { %v1681_v9 = vpop.permute.xlu1 %1680  ;;  %3247 = vst.msk [vmem:[#allocation6 + $0x78] sm:$0xff] %vm3149_vm6, %v4335_v0 }
 0x36c   : > { %v2407_v33 = vmul.f32 0.1, %v2350_v16  ;;  %1746 = vst.msk [vmem:[#allocation3 + $0xf8] sm:$0xff] %vm1714_vm8, %v1681_v9  ;;  %v2161_v53 = vld [vmem:[#allocation3 + $0xe0] sm:$0xff]  ;;  %vm3327_vm8 = vcmask 261248  }
 0x36d   : > { %1939 = vst.msk [vmem:[#allocation3 + $0xf8] sm:$0xff] %vm1907_vm9, %v1874_v30  ;;  %4142 = vmatmul.msk.f32.gmra.mxu2 %vm2174_vm11, %v2161_v53  ;;  %vm3376_vm9 = vcmask 392448  }
 0x36e   : > { %v2439_v43 = vmax.f32 %v2350_v16, %v2407_v33  ;;  %2132 = vst.msk [vmem:[#allocation3 + $0xf8] sm:$0xff] %vm2100_vm10, %v2067_v22  ;;  %vm3425_vm10 = vcmask 523648  }
 0x36f   : > { %3248 = vst.msk [vmem:[#allocation6 + $0x80] sm:$0xff] %vm3149_vm6, %v4335_v0 }
 0x370   : > { %2546 = vst.msk [vmem:[#allocation4 + $0x150] sm:$0xff] %vm2452_vm12, %v2439_v43 }
 0x371   : > { %v2722_v58 = vpop.permute.xlu0 %2721  ;;  %3250 = vst.msk [vmem:[#allocation6 + $0x90] sm:$0xff] %vm3149_vm6, %v4335_v0 }
 0x372   : > { %v2724_v56 = vpop.permute.xlu2 %2723  ;;  %3251 = vst.msk [vmem:[#allocation6 + $0x98] sm:$0xff] %vm3149_vm6, %v4335_v0 }
 0x373   : > { %v2608_v52 = vpop.permute.xlu1 %2607  ;;  %3253 = vst.msk [vmem:[#allocation6 + $0xa8] sm:$0xff] %vm3149_vm6, %v4335_v0 }
 0x374   : > { %2632 = vst.msk [vmem:[#allocation5] sm:$0xff] %vm2631_vm13, %v2608_v52 }
 0x375   : > { %2689 = vst.msk [vmem:[#allocation5] sm:$0xff] %vm2688_vm14, %v2665_v45  ;;  %v2164_v4 = vld [vmem:[#allocation3 + $0xf8] sm:$0xff] }
 0x376   : > { %2746 = vst.msk [vmem:[#allocation5] sm:$0xff] %vm2745_vm15, %v2722_v58  ;;  %4145 = vmatmul.msk.f32.gmra.mxu3 %vm2174_vm11, %v2164_v4  ;;  %vm3474_vm11 = vcmask 654848  }
 0x377   : > { %v2878_v60 = vld [vmem:[#allocation4 + $0x147] ss:$2 sm:$0xff]  ;;  %v2935_v2 = vld [vmem:[#allocation4 + $0x148] ss:$2 sm:$0xff]  ;;  %3254 = vst.msk [vmem:[#allocation6 + $0xb0] sm:$0xff] %vm3149_vm6, %v4335_v0 }
 0x378   : > { %v2992_v61 = vld [vmem:[#allocation4 + $0x149] ss:$2 sm:$0xff]  ;;  %2901 = vrot.lane.b32.xlu2 %v2878_v60, %s6521_s25  ;;  %v2370_v57 = vpop.f32.mrf.mxu2  ;;  %2958 = vrot.lane.b32.xlu0 %v2935_v2, %s6523_s13  ;;  %v2594_v34 = vld [vmem:[#allocation4 + $0x148] ss:$2 sm:$0xff]  ;;  %3256 = vst.msk [vmem:[#allocation6 + $0xc0] sm:$0xff] %vm3149_vm6, %v4335_v0 }
 0x379   : > { %3015 = vrot.lane.b32.xlu1 %v2992_v61, %s6522_s12  ;;  %v2371_v1 = vadd.f32 %v5754_v24, %v2370_v57  ;;  %v2570_v25 = vld [vmem:[#allocation4 + $0x147] ss:$2 sm:$0xff]  ;;  %v2894_v28 = vpop.permute.xlu0 %2893  ;;  %3257 = vst.msk [vmem:[#allocation6 + $0xc8] sm:$0xff] %vm3149_vm6, %v4335_v0 }
 0x37a   : > { %v2358_v26 = vpop.f32.mrf.mxu1  ;;  %v2896_v35 = vpop.permute.xlu2 %2895  ;;  %2580 = vst.msk [vmem:[#allocation5 + $0x28] sm:$0xff] %vm2452_vm12, %v2570_v25  ;;  %v2651_v14 = vld [vmem:[#allocation4 + $0x149] ss:$2 sm:$0xff] }
 0x37b   : > { %v2779_v36 = vpop.permute.xlu1 %2778  ;;  %v2414_v54 = vmul.f32 0.1, %v2371_v1  ;;  %v2359_v7 = vadd.f32 %v5754_v24, %v2358_v26  ;;  %3259 = vst.msk [vmem:[#allocation6 + $0xd8] sm:$0xff] %vm3149_vm6, %v4335_v0 }
 0x37c   : > { %2803 = vst.msk [vmem:[#allocation5] sm:$0xff] %vm2802_vm0, %v2779_v36 }
 0x37d   : > { %2860 = vst.msk [vmem:[#allocation5] sm:$0xff] %vm2859_vm1, %v2836_v50  ;;  %v2446_v11 = vmax.f32 %v2371_v1, %v2414_v54  ;;  %v2410_v6 = vmul.f32 0.1, %v2359_v7 }
 0x37e   : > { %2918 = vst.msk [vmem:[#allocation5] sm:$0xff] %vm2917_vm2, %v2894_v28 }
 0x37f   : > { %2553 = vst.msk [vmem:[#allocation4 + $0x1c8] sm:$0xff] %vm2452_vm12, %v2446_v11  ;;  %v2442_v17 = vmax.f32 %v2359_v7, %v2410_v6 }
 0x380   : > { %2617 = vrot.lane.b32.xlu2 %v2594_v34, %s6516_s29  ;;  %2674 = vrot.lane.b32.xlu0 %v2651_v14, %s6514_s24  ;;  %3260 = vst.msk [vmem:[#allocation6 + $0xe0] sm:$0xff] %vm3149_vm6, %v4335_v0 }
 0x381   : > { %2549 = vst.msk [vmem:[#allocation4 + $0x188] sm:$0xff] %vm2452_vm12, %v2442_v17  ;;  %v2610_v55 = vpop.permute.xlu0 %2609 }
 0x382   : > { %v2612_v62 = vpop.permute.xlu2 %2611  ;;  %2633 = vst.msk [vmem:[#allocation5 + $0x8] sm:$0xff] %vm2631_vm13, %v2610_v55  ;;  %v2824_v55 = vld [vmem:[#allocation4 + $0x1a9] ss:$2 sm:$0xff] }
 0x383   : > { %v2951_v15 = vpop.permute.xlu1 %2950  ;;  %2634 = vst.msk [vmem:[#allocation5 + $0x10] sm:$0xff] %vm2631_vm13, %v2612_v62 }
 0x384   : > { %2975 = vst.msk [vmem:[#allocation5] sm:$0xff] %vm2974_vm3, %v2951_v15  ;;  %v2710_v15 = vld [vmem:[#allocation4 + $0x1a7] ss:$2 sm:$0xff] }
 0x385   : > { %3032 = vst.msk [vmem:[#allocation5] sm:$0xff] %vm3031_vm4, %v3008_v20 }
 0x386   : > { %3234 = vst.msk [vmem:[#allocation6 + $0x10] sm:$0x1] %vm3233_vm7, %v4335_v0 }
 0x387   : > { %3237 = vst.msk [vmem:[#allocation6 + $0x28] sm:$0x1] %vm3233_vm7, %v4335_v0 }
 0x388   : > { %3240 = vst.msk [vmem:[#allocation6 + $0x40] sm:$0x1] %vm3233_vm7, %v4335_v0 }
 0x389   : > { %v2781_v32 = vpop.permute.xlu0 %2780  ;;  %3243 = vst.msk [vmem:[#allocation6 + $0x58] sm:$0x1] %vm3233_vm7, %v4335_v0 }
 0x38a   : > { %v2783_v42 = vpop.permute.xlu2 %2782  ;;  %3246 = vst.msk [vmem:[#allocation6 + $0x70] sm:$0x1] %vm3233_vm7, %v4335_v0 }
 0x38b   : > { %v2667_v19 = vpop.permute.xlu1 %2666  ;;  %3249 = vst.msk [vmem:[#allocation6 + $0x88] sm:$0x1] %vm3233_vm7, %v4335_v0 }
 0x38c   : > { %2690 = vst.msk [vmem:[#allocation5 + $0x8] sm:$0xff] %vm2688_vm14, %v2667_v19  ;;  %v3040_v29 = vld [vmem:[#allocation5] sm:$0xff]  ;;  %v2767_v19 = vld [vmem:[#allocation4 + $0x1a8] ss:$2 sm:$0xff] }
 0x38d   : > { %2747 = vst.msk [vmem:[#allocation5 + $0x8] sm:$0xff] %vm2745_vm15, %v2724_v56  ;;  %4146 = vmatmul.msk.f32.vlgmr.msrb.gmra.mxu1 %vm3061_vm5, %v3040_v29 }
 0x38e   : > { %2804 = vst.msk [vmem:[#allocation5 + $0x8] sm:$0xff] %vm2802_vm0, %v2781_v32 }
 0x38f   : > { %3252 = vst.msk [vmem:[#allocation6 + $0xa0] sm:$0x1] %vm3233_vm7, %v4335_v0 }
 0x390   : > { %3255 = vst.msk [vmem:[#allocation6 + $0xb8] sm:$0x1] %vm3233_vm7, %v4335_v0 }
 0x391   : > { %v2953_v23 = vpop.permute.xlu0 %2952  ;;  %3258 = vst.msk [vmem:[#allocation6 + $0xd0] sm:$0x1] %vm3233_vm7, %v4335_v0 }
 0x392   : > { %v2955_v13 = vpop.permute.xlu2 %2954  ;;  %3261 = vst.msk [vmem:[#allocation6 + $0xe8] sm:$0x1] %vm3233_vm7, %v4335_v0 }
 0x393   : > { %v2838_v21 = vpop.permute.xlu1 %2837 }
 0x394   : > { %2861 = vst.msk [vmem:[#allocation5 + $0x8] sm:$0xff] %vm2859_vm1, %v2838_v21 }
 0x395   : > { %2919 = vst.msk [vmem:[#allocation5 + $0x8] sm:$0xff] %vm2917_vm2, %v2896_v35  ;;  %v2379_v27 = vpop.f32.mrf.mxu3 }
 0x396   : > { %2976 = vst.msk [vmem:[#allocation5 + $0x8] sm:$0xff] %vm2974_vm3, %v2953_v23  ;;  %v2380_v31 = vadd.f32 %v5754_v24, %v2379_v27  ;;  %v3144_v27 = vld [vmem:[%s6471_s5 + $0x8] sm:$0xff] }
 0x397   : > { %3188 = vmatpush.msrb.mxu2 %v3144_v27 }
 0x398   : > { %v2417_v18 = vmul.f32 0.1, %v2380_v31 }
 0x399   : > { %v2669_v46 = vpop.permute.xlu0 %2668 }
 0x39a   : > { %v2449_v40 = vmax.f32 %v2380_v31, %v2417_v18  ;;  %2691 = vst.msk [vmem:[#allocation5 + $0x10] sm:$0xff] %vm2688_vm14, %v2669_v46  ;;  %v2671_v63 = vpop.permute.xlu2 %2670 }
 0x39b   : > { %v3010_v30 = vpop.permute.xlu1 %3009 }
 0x39c   : > { %3033 = vst.msk [vmem:[#allocation5 + $0x8] sm:$0xff] %vm3031_vm4, %v3010_v30  ;;  %v3143_v30 = vld [vmem:[%s6471_s5] sm:$0xff] }
 0x39d   : > { %2556 = vst.msk [vmem:[#allocation4 + $0x1f0] sm:$0xff] %vm2452_vm12, %v2449_v40  ;;  %v4270_v40 = vld [vmem:[%s6518_s2] ss:$0 sm:$0xff]  ;;  %3189 = vmatpush.msrb.mxu2 %v3143_v30 }
 0x39e   : > { %v3811_v30 = vld [vmem:[%s6475_s9 + $0x20] sm:$0xff] }
 0x3a1   : > { %v2840_v47 = vpop.permute.xlu0 %2839 }
 0x3a2   : > { %v2842_v48 = vpop.permute.xlu2 %2841 }
 0x3a3   : > { %v2726_v37 = vpop.permute.xlu1 %2725  ;;  %v3041_v45 = vld [vmem:[#allocation5 + $0x8] sm:$0xff] }
 0x3a4   : > { %2748 = vst.msk [vmem:[#allocation5 + $0x10] sm:$0xff] %vm2745_vm15, %v2726_v37  ;;  %4147 = vmatmul.msk.f32.gmra.mxu1 %vm3061_vm5, %v3041_v45 }
 0x3a5   : > { %2805 = vst.msk [vmem:[#allocation5 + $0x10] sm:$0xff] %vm2802_vm0, %v2783_v42 }
 0x3a6   : > { %2862 = vst.msk [vmem:[#allocation5 + $0x10] sm:$0xff] %vm2859_vm1, %v2840_v47 }
 0x3a9   : > { %v3012_v50 = vpop.permute.xlu0 %3011 }
 0x3aa   : > { %v2352_v8 = vpop.f32.mrf.mxu0  ;;  %v3014_v22 = vpop.permute.xlu2 %3013 }
 0x3ab   : > { %v2353_v12 = vadd.f32 %v5754_v24, %v2352_v8  ;;  %v2898_v59 = vpop.permute.xlu1 %2897 }
 0x3ac   : > { %2920 = vst.msk [vmem:[#allocation5 + $0x10] sm:$0xff] %vm2917_vm2, %v2898_v59 }
 0x3ad   : > { %v2408_v49 = vmul.f32 0.1, %v2353_v12  ;;  %2977 = vst.msk [vmem:[#allocation5 + $0x10] sm:$0xff] %vm2974_vm3, %v2955_v13 }
 0x3ae   : > { %3034 = vst.msk [vmem:[#allocation5 + $0x10] sm:$0xff] %vm3031_vm4, %v3012_v50 }
 0x3af   : > { %v2440_v39 = vmax.f32 %v2353_v12, %v2408_v49 }
 0x3b1   : > { %2547 = vst.msk [vmem:[#allocation4 + $0x168] sm:$0xff] %vm2452_vm12, %v2440_v39  ;;  %v2728_v38 = vpop.permute.xlu0 %2727 }
 0x3b2   : > { %v2730_v56 = vpop.permute.xlu2 %2729 }
 0x3b3   : > { %v2614_v41 = vpop.permute.xlu1 %2613 }
 0x3b4   : > { %2635 = vst.msk [vmem:[#allocation5 + $0x18] sm:$0xff] %vm2631_vm13, %v2614_v41 }
 0x3b5   : > { %2692 = vst.msk [vmem:[#allocation5 + $0x18] sm:$0xff] %vm2688_vm14, %v2671_v63  ;;  %v3042_v3 = vld [vmem:[#allocation5 + $0x10] sm:$0xff] }
 0x3b6   : > { %2749 = vst.msk [vmem:[#allocation5 + $0x18] sm:$0xff] %vm2745_vm15, %v2728_v38  ;;  %4148 = vmatmul.msk.f32.gmra.mxu1 %vm3061_vm5, %v3042_v3 }
 0x3b8   : > { %v2765_v51 = vld [vmem:[#allocation4 + $0x168] ss:$2 sm:$0xff]  ;;  %v2708_v5 = vld [vmem:[#allocation4 + $0x167] ss:$2 sm:$0xff] }
 0x3b9   : > { %2788 = vrot.lane.b32.xlu2 %v2765_v51, %s6524_s14  ;;  %2731 = vrot.lane.b32.xlu1 %v2708_v5, %s6525_s16  ;;  %v2822_v16 = vld [vmem:[#allocation4 + $0x169] ss:$2 sm:$0xff]  ;;  %v2373_v44 = vpop.f32.mrf.mxu2  ;;  %v2900_v43 = vpop.permute.xlu0 %2899 }
 0x3ba   : > { %2845 = vrot.lane.b32.xlu0 %v2822_v16, %s6526_s22  ;;  %v2374_v9 = vadd.f32 %v5754_v24, %v2373_v44 }
 0x3bb   : > { %v2785_v20 = vpop.permute.xlu1 %2784 }
 0x3bc   : > { %v2415_v33 = vmul.f32 0.1, %v2374_v9  ;;  %2806 = vst.msk [vmem:[#allocation5 + $0x18] sm:$0xff] %vm2802_vm0, %v2785_v20 }
 0x3bd   : > { %2863 = vst.msk [vmem:[#allocation5 + $0x18] sm:$0xff] %vm2859_vm1, %v2842_v48  ;;  %v6081_v48 = vld [vmem:[%s6527_s4] ss:$0 sm:$0xff] }
 0x3be   : > { %v2447_v10 = vmax.f32 %v2374_v9, %v2415_v33  ;;  %2921 = vst.msk [vmem:[#allocation5 + $0x18] sm:$0xff] %vm2917_vm2, %v2900_v43 }
 0x3c0   : > { %2554 = vst.msk [vmem:[#allocation4 + $0x1d0] sm:$0xff] %vm2452_vm12, %v2447_v10 }
 0x3c1   : > { %v2616_v52 = vpop.permute.xlu0 %2615 }
 0x3c2   : > { %2636 = vst.msk [vmem:[#allocation5 + $0x20] sm:$0xff] %vm2631_vm13, %v2616_v52 }
 0x3c3   : > { %v2957_v53 = vpop.permute.xlu1 %2956 }
 0x3c4   : > { %2978 = vst.msk [vmem:[#allocation5 + $0x18] sm:$0xff] %vm2974_vm3, %v2957_v53 }
 0x3c5   : > { %3035 = vst.msk [vmem:[#allocation5 + $0x18] sm:$0xff] %vm3031_vm4, %v3014_v22 }
 0x3c7   : > { %v2574_v60 = vld [vmem:[#allocation4 + $0x1c7] ss:$2 sm:$0xff]  ;;  %v2939_v42 = vld [vmem:[#allocation4 + $0x1c8] ss:$2 sm:$0xff] }
 0x3c8   : > { %2582 = vst.msk [vmem:[#allocation5 + $0x38] sm:$0xff] %vm2452_vm12, %v2574_v60  ;;  %v2882_v29 = vld [vmem:[#allocation4 + $0x1c7] ss:$2 sm:$0xff]  ;;  %v2598_v31 = vld [vmem:[#allocation4 + $0x1c8] ss:$2 sm:$0xff] }
 0x3c9   : > { %v2361_v58 = vpop.f32.mrf.mxu1  ;;  %v2787_v25 = vpop.permute.xlu0 %2786  ;;  %v2996_v23 = vld [vmem:[#allocation4 + $0x1c9] ss:$2 sm:$0xff] }
 0x3ca   : > { %v2362_v61 = vadd.f32 %v5754_v24, %v2361_v58  ;;  %v2655_v8 = vld [vmem:[#allocation4 + $0x1c9] ss:$2 sm:$0xff] }
 0x3cb   : > { %v2673_v2 = vpop.permute.xlu1 %2672 }
 0x3cc   : > { %v2411_v4 = vmul.f32 0.1, %v2362_v61  ;;  %2693 = vst.msk [vmem:[#allocation5 + $0x20] sm:$0xff] %vm2688_vm14, %v2673_v2  ;;  %v3043_v57 = vld [vmem:[#allocation5 + $0x18] sm:$0xff] }
 0x3cd   : > { %2750 = vst.msk [vmem:[#allocation5 + $0x20] sm:$0xff] %vm2745_vm15, %v2730_v56  ;;  %4149 = vmatmul.msk.f32.gmra.mxu1 %vm3061_vm5, %v3043_v57 }
 0x3ce   : > { %v2443_v1 = vmax.f32 %v2362_v61, %v2411_v4  ;;  %2807 = vst.msk [vmem:[#allocation5 + $0x20] sm:$0xff] %vm2802_vm0, %v2787_v25  ;;  %v2382_v35 = vpop.f32.mrf.mxu3 }
 0x3cf   : > { %v2383_v54 = vadd.f32 %v5754_v24, %v2382_v35 }
 0x3d0   : > { %2550 = vst.msk [vmem:[#allocation4 + $0x190] sm:$0xff] %vm2452_vm12, %v2443_v1 }
 0x3d1   : > { %v2418_v7 = vmul.f32 0.1, %v2383_v54 }
 0x3d2   : > { %v2902_v26 = vpop.permute.xlu2 %2901 }
 0x3d3   : > { %v2844_v36 = vpop.permute.xlu1 %2843  ;;  %v2450_v17 = vmax.f32 %v2383_v54, %v2418_v7 }
 0x3d4   : > { %2864 = vst.msk [vmem:[#allocation5 + $0x20] sm:$0xff] %vm2859_vm1, %v2844_v36 }
 0x3d5   : > { %2922 = vst.msk [vmem:[#allocation5 + $0x20] sm:$0xff] %vm2917_vm2, %v2902_v26 }
 0x3d6   : > { %2557 = vst.msk [vmem:[#allocation4 + $0x208] sm:$0xff] %vm2452_vm12, %v2450_v17 }
 0x3d7   : > { %v2937_v11 = vld [vmem:[#allocation4 + $0x188] ss:$2 sm:$0xff]  ;;  %v2880_v6 = vld [vmem:[#allocation4 + $0x187] ss:$2 sm:$0xff] }
 0x3d8   : > { %2960 = vrot.lane.b32.xlu2 %v2937_v11, %s6523_s13  ;;  %2903 = vrot.lane.b32.xlu1 %v2880_v6, %s6521_s25  ;;  %v2994_v28 = vld [vmem:[#allocation4 + $0x189] ss:$2 sm:$0xff]  ;;  %v2596_v62 = vld [vmem:[#allocation4 + $0x188] ss:$2 sm:$0xff] }
 0x3d9   : > { %3017 = vrot.lane.b32.xlu0 %v2994_v28, %s6522_s12  ;;  %v2572_v14 = vld [vmem:[#allocation4 + $0x187] ss:$2 sm:$0xff] }
 0x3da   : > { %v2618_v34 = vpop.permute.xlu2 %2617  ;;  %2581 = vst.msk [vmem:[#allocation5 + $0x30] sm:$0xff] %vm2452_vm12, %v2572_v14  ;;  %v2653_v24 = vld [vmem:[#allocation4 + $0x189] ss:$2 sm:$0xff] }
 0x3db   : > { %2637 = vst.msk [vmem:[#allocation5 + $0x28] sm:$0xff] %vm2631_vm13, %v2618_v34 }
 0x3e0   : > { %2676 = vrot.lane.b32.xlu2 %v2653_v24, %s6514_s24  ;;  %2619 = vrot.lane.b32.xlu1 %v2596_v62, %s6516_s29 }
 0x3e1   : > { %2733 = vrot.lane.b32.xlu0 %v2710_v15, %s6525_s16 }
 0x3e8   : > { %2847 = vrot.lane.b32.xlu2 %v2824_v55, %s6526_s22  ;;  %2790 = vrot.lane.b32.xlu1 %v2767_v19, %s6524_s14 }
 0x3e9   : > { %2905 = vrot.lane.b32.xlu0 %v2882_v29, %s6521_s25 }
 0x3ea   : > { %v2959_v21 = vpop.permute.xlu0 %2958 }
 0x3eb   : > { %v3016_v32 = vpop.permute.xlu1 %3015  ;;  %2979 = vst.msk [vmem:[#allocation5 + $0x20] sm:$0xff] %vm2974_vm3, %v2959_v21 }
 0x3ec   : > { %3036 = vst.msk [vmem:[#allocation5 + $0x20] sm:$0xff] %vm3031_vm4, %v3016_v32 }
 0x3f0   : > { %3019 = vrot.lane.b32.xlu2 %v2996_v23, %s6522_s12  ;;  %2962 = vrot.lane.b32.xlu1 %v2939_v42, %s6523_s13  ;;  %v2376_v18 = vpop.f32.mrf.mxu2 }
 0x3f1   : > { %2621 = vrot.lane.b32.xlu0 %v2598_v31, %s6516_s29  ;;  %v2377_v13 = vadd.f32 %v4270_v40, %v2376_v18  ;;  %v3812_v31 = vld [vmem:[%s6475_s9 + $0x28] sm:$0xff] }
 0x3f2   : > { %v2675_v46 = vpop.permute.xlu0 %2674  ;;  %v3287_v18 = vld [vmem:[#allocation6 + $0x8] sm:$0xff]  ;;  %3851 = vmatpush.msra.mxu1 %v3812_v31 }
 0x3f3   : > { %2694 = vst.msk [vmem:[#allocation5 + $0x28] sm:$0xff] %vm2688_vm14, %v2675_v46  ;;  %v3044_v37 = vld [vmem:[#allocation5 + $0x20] sm:$0xff]  ;;  %v2416_v45 = vmul.f32 0.1, %v2377_v13 }
 0x3f4   : > { %4150 = vmatmul.msk.f32.gmra.mxu1 %vm3061_vm5, %v3044_v37 }
 0x3f5   : > { %v2448_v47 = vmax.f32 %v2377_v13, %v2416_v45  ;;  %3852 = vmatpush.msra.mxu1 %v3811_v30  ;;  %v3336_v13 = vld [vmem:[#allocation6 + $0x9] sm:$0xff]  ;;  %v6154_v45 = vld [vmem:[%s6472_s6] ss:$0 sm:$0xff]  ;;  %v3670_v30 = vld [vmem:[%s6473_s7 + $0x38] sm:$0xff] }
 0x3f7   : > { %2555 = vst.msk [vmem:[#allocation4 + $0x1e8] sm:$0xff] %vm2452_vm12, %v2448_v47 }
 0x3f8   : > { %2678 = vrot.lane.b32.xlu1 %v2655_v8, %s6514_s24 }
 0x3f9   : > { %v2385_v12 = vpop.f32.mrf.mxu3 }
 0x3fa   : > { %v2386_v63 = vadd.f32 %v4270_v40, %v2385_v12 }
 0x3fc   : > { %v2419_v59 = vmul.f32 0.1, %v2386_v63 }
 0x3fe   : > { %v2451_v49 = vmax.f32 %v2386_v63, %v2419_v59  ;;  %v2712_v39 = vld [vmem:[#allocation4 + $0x1e7] ss:$2 sm:$0xff]  ;;  %v2769_v41 = vld [vmem:[#allocation4 + $0x1e8] ss:$2 sm:$0xff] }
 0x3ff   : > { %v2826_v50 = vld [vmem:[#allocation4 + $0x1e9] ss:$2 sm:$0xff]  ;;  %2735 = vrot.lane.b32.xlu2 %v2712_v39, %s6525_s16  ;;  %2792 = vrot.lane.b32.xlu0 %v2769_v41, %s6524_s14  ;;  %s6499_s16 = smov 96  }
 0x400   : > { %2849 = vrot.lane.b32.xlu1 %v2826_v50, %s6526_s22  ;;  %2558 = vst.msk [vmem:[#allocation4 + $0x210] sm:$0xff] %vm2452_vm12, %v2451_v49  ;;  %vm3523_vm12 = vcmask 786048   ;;  %s6530_s22 = smov 80  }
 0x407   : > { %v2884_v38 = vld [vmem:[#allocation4 + $0x207] ss:$2 sm:$0xff]  ;;  %v2941_v51 = vld [vmem:[#allocation4 + $0x208] ss:$2 sm:$0xff] }
 0x408   : > { %v2998_v3 = vld [vmem:[#allocation4 + $0x209] ss:$2 sm:$0xff]  ;;  %2907 = vrot.lane.b32.xlu2 %v2884_v38, %s6521_s25  ;;  %2964 = vrot.lane.b32.xlu0 %v2941_v51, %s6523_s13  ;;  %s6501_s13 = smov 112  }
 0x409   : > { %3021 = vrot.lane.b32.xlu1 %v2998_v3, %s6522_s12 }
 0x40a   : > { %v3103_v5 = vpop.f32.mrf.mxu1 }
 0x40b   : > { %v3104_v16 = vadd.f32 %v6081_v48, %v3103_v5 }
 0x40d   : > { %v3127_v44 = vmul.f32 0.1, %v3104_v16 }
 0x40f   : > { %v3135_v9 = vmax.f32 %v3104_v16, %v3127_v44 }
 0x410   : > { %3303 = vrot.lane.b32.xlu2 %v3287_v18, %s6514_s24  ;;  %3352 = vrot.lane.b32.xlu0 %v3336_v13, %s6524_s14 }
 0x411   : > { %4154 = vmatmul.msk.f32.vlgmr.msrb.gmra.mxu2 %vm3149_vm6, %v3135_v9 }
 0x413   : > { %v2789_v53 = vpop.permute.xlu2 %2788 }
 0x421   : > { %v3106_v20 = vpop.f32.mrf.mxu1 }
 0x422   : > { %v3107_v33 = vadd.f32 %v6081_v48, %v3106_v20 }
 0x424   : > { %v3128_v10 = vmul.f32 0.1, %v3107_v33 }
 0x426   : > { %v3136_v43 = vmax.f32 %v3107_v33, %v3128_v10 }
 0x428   : > { %4155 = vmatmul.msk.f32.gmra.mxu2 %vm3149_vm6, %v3136_v43 }
 0x42b   : > { %v2732_v22 = vpop.permute.xlu1 %2731 }
 0x42c   : > { %2751 = vst.msk [vmem:[#allocation5 + $0x28] sm:$0xff] %vm2745_vm15, %v2732_v22  ;;  %v2846_v52 = vpop.permute.xlu0 %2845 }
 0x42d   : > { %2808 = vst.msk [vmem:[#allocation5 + $0x28] sm:$0xff] %vm2802_vm0, %v2789_v53 }
 0x42e   : > { %2865 = vst.msk [vmem:[#allocation5 + $0x28] sm:$0xff] %vm2859_vm1, %v2846_v52  ;;  %v3271_v52 = vld [vmem:[#allocation6 + $0x7] sm:$0xff] }
 0x42f   : > { %3279 = vst.msk [vmem:[#allocation7] sm:$0xff] %vm3149_vm6, %v3271_v52 }
 0x432   : > { %v2961_v2 = vpop.permute.xlu2 %2960 }
 0x433   : > { %v3109_v56 = vpop.f32.mrf.mxu1 }
 0x434   : > { %v3110_v58 = vadd.f32 %v6081_v48, %v3109_v56 }
 0x436   : > { %v3129_v60 = vmul.f32 0.1, %v3110_v58 }
 0x438   : > { %v3137_v61 = vmax.f32 %v3110_v58, %v3129_v60 }
 0x43a   : > { %4156 = vmatmul.msk.f32.gmra.mxu2 %vm3149_vm6, %v3137_v61  ;;  %v2677_v36 = vpop.permute.xlu2 %2676 }
 0x442   : > { %v2848_v6 = vpop.permute.xlu2 %2847 }
 0x44a   : > { %v2904_v4 = vpop.permute.xlu1 %2903  ;;  %v3112_v1 = vpop.f32.mrf.mxu1 }
 0x44b   : > { %2923 = vst.msk [vmem:[#allocation5 + $0x28] sm:$0xff] %vm2917_vm2, %v2904_v4  ;;  %v3018_v57 = vpop.permute.xlu0 %3017  ;;  %v3113_v25 = vadd.f32 %v6081_v48, %v3112_v1  ;;  %v3020_v14 = vpop.permute.xlu2 %3019 }
 0x44c   : > { %2980 = vst.msk [vmem:[#allocation5 + $0x28] sm:$0xff] %vm2974_vm3, %v2961_v2 }
 0x44d   : > { %3037 = vst.msk [vmem:[#allocation5 + $0x28] sm:$0xff] %vm3031_vm4, %v3018_v57  ;;  %v3130_v26 = vmul.f32 0.1, %v3113_v25 }
 0x44f   : > { %v3138_v35 = vmax.f32 %v3113_v25, %v3130_v26 }
 0x451   : > { %4157 = vmatmul.msk.f32.gmra.mxu2 %vm3149_vm6, %v3138_v35 }
 0x452   : > { %v2620_v54 = vpop.permute.xlu1 %2619 }
 0x453   : > { %2638 = vst.msk [vmem:[#allocation5 + $0x30] sm:$0xff] %vm2631_vm13, %v2620_v54  ;;  %v2734_v7 = vpop.permute.xlu0 %2733  ;;  %v3680_v54 = vld [vmem:[%s6473_s7 + $0x88] sm:$0xff] }
 0x454   : > { %2695 = vst.msk [vmem:[#allocation5 + $0x30] sm:$0xff] %vm2688_vm14, %v2677_v36  ;;  %v3045_v11 = vld [vmem:[#allocation5 + $0x28] sm:$0xff]  ;;  %3764 = vmatpush.msra.mxu2 %v3680_v54 }
 0x455   : > { %2752 = vst.msk [vmem:[#allocation5 + $0x30] sm:$0xff] %vm2745_vm15, %v2734_v7  ;;  %4151 = vmatmul.msk.f32.gmra.mxu1 %vm3061_vm5, %v3045_v11  ;;  %v3679_v11 = vld [vmem:[%s6473_s7 + $0x80] sm:$0xff] }
 0x456   : > { %3765 = vmatpush.msra.mxu2 %v3679_v11 }
 0x459   : > { %v2736_v15 = vpop.permute.xlu2 %2735 }
 0x45a   : > { %v2791_v28 = vpop.permute.xlu1 %2790 }
 0x45b   : > { %2809 = vst.msk [vmem:[#allocation5 + $0x30] sm:$0xff] %vm2802_vm0, %v2791_v28  ;;  %v2906_v17 = vpop.permute.xlu0 %2905 }
 0x45c   : > { %2866 = vst.msk [vmem:[#allocation5 + $0x30] sm:$0xff] %vm2859_vm1, %v2848_v6 }
 0x45d   : > { %2924 = vst.msk [vmem:[#allocation5 + $0x30] sm:$0xff] %vm2917_vm2, %v2906_v17  ;;  %v3678_v17 = vld [vmem:[%s6473_s7 + $0x78] sm:$0xff] }
 0x45e   : > { %3709 = vmatpush.msrb.mxu3 %v3678_v17 }
 0x462   : > { %v2963_v34 = vpop.permute.xlu1 %2962  ;;  %v2908_v42 = vpop.permute.xlu2 %2907 }
 0x463   : > { %2981 = vst.msk [vmem:[#allocation5 + $0x30] sm:$0xff] %vm2974_vm3, %v2963_v34  ;;  %v2622_v24 = vpop.permute.xlu0 %2621 }
 0x464   : > { %3038 = vst.msk [vmem:[#allocation5 + $0x30] sm:$0xff] %vm3031_vm4, %v3020_v14  ;;  %v3677_v14 = vld [vmem:[%s6473_s7 + $0x70] sm:$0xff] }
 0x465   : > { %2639 = vst.msk [vmem:[#allocation5 + $0x38] sm:$0xff] %vm2631_vm13, %v2622_v24  ;;  %v3676_v24 = vld [vmem:[%s6473_s7 + $0x68] sm:$0xff]  ;;  %3710 = vmatpush.msrb.mxu3 %v3677_v14  ;;  %vm3573_vm13 = vcmask 917248  }
 0x467   : > { %3711 = vmatpush.msrb.mxu3 %v3676_v24 }
 0x46a   : > { %v2679_v62 = vpop.permute.xlu1 %2678  ;;  %v3304_v61 = vpop.permute.xlu2 %3303 }
 0x46b   : > { %2696 = vst.msk [vmem:[#allocation5 + $0x38] sm:$0xff] %vm2688_vm14, %v2679_v62  ;;  %v3046_v55 = vld [vmem:[#allocation5 + $0x30] sm:$0xff]  ;;  %vm3622_vm14 = vcmask 1048448  }
 0x46c   : > { %2753 = vst.msk [vmem:[#allocation5 + $0x38] sm:$0xff] %vm2745_vm15, %v2736_v15  ;;  %4152 = vmatmul.msk.f32.gmra.mxu1 %vm3061_vm5, %v3046_v55  ;;  %v3675_v15 = vld [vmem:[%s6473_s7 + $0x60] sm:$0xff]  ;;  %vm3878_vm15 = vcmask 261120  }
 0x46d   : > { %3328 = vst.msk [vmem:[#allocation7] sm:$0xff] %vm3327_vm8, %v3304_v61  ;;  %3712 = vmatpush.msrb.mxu3 %v3675_v15 }
 0x471   : > { %v3115_v19 = vpop.f32.mrf.mxu1  ;;  %v2793_v23 = vpop.permute.xlu0 %2792 }
 0x472   : > { %v3116_v29 = vadd.f32 %v6081_v48, %v3115_v19  ;;  %v2850_v32 = vpop.permute.xlu1 %2849  ;;  %2810 = vst.msk [vmem:[#allocation5 + $0x38] sm:$0xff] %vm2802_vm0, %v2793_v23  ;;  %v3674_v19 = vld [vmem:[%s6473_s7 + $0x58] sm:$0xff] }
 0x473   : > { %2867 = vst.msk [vmem:[#allocation5 + $0x38] sm:$0xff] %vm2859_vm1, %v2850_v32  ;;  %3713 = vmatpush.msrb.mxu3 %v3674_v19  ;;  %v3673_v32 = vld [vmem:[%s6473_s7 + $0x50] sm:$0xff] }
 0x474   : > { %v3131_v21 = vmul.f32 0.1, %v3116_v29  ;;  %2925 = vst.msk [vmem:[#allocation5 + $0x38] sm:$0xff] %vm2917_vm2, %v2908_v42 }
 0x475   : > { %3714 = vmatpush.msrb.mxu3 %v3673_v32 }
 0x476   : > { %v3139_v27 = vmax.f32 %v3116_v29, %v3131_v21  ;;  %v3672_v21 = vld [vmem:[%s6473_s7 + $0x48] sm:$0xff] }
 0x477   : > { %3715 = vmatpush.msrb.mxu3 %v3672_v21 }
 0x478   : > { %4158 = vmatmul.msk.f32.gmra.mxu2 %vm3149_vm6, %v3139_v27  ;;  %v3671_v27 = vld [vmem:[%s6473_s7 + $0x40] sm:$0xff] }
 0x479   : > { %3716 = vmatpush.msrb.mxu3 %v3671_v27 }
 0x47a   : > { %v2965_v40 = vpop.permute.xlu0 %2964 }
 0x47b   : > { %v3022_v46 = vpop.permute.xlu1 %3021  ;;  %2982 = vst.msk [vmem:[#allocation5 + $0x38] sm:$0xff] %vm2974_vm3, %v2965_v40  ;;  %3717 = vmatpush.msrb.mxu3 %v3670_v30 }
 0x47c   : > { %3039 = vst.msk [vmem:[#allocation5 + $0x38] sm:$0xff] %vm3031_vm4, %v3022_v46 }
 0x482   : > { %v3353_v28 = vpop.permute.xlu0 %3352 }
 0x483   : > { %v3047_v37 = vld [vmem:[#allocation5 + $0x38] sm:$0xff]  ;;  %3377 = vst.msk [vmem:[#allocation7] sm:$0xff] %vm3376_vm9, %v3353_v28 }
 0x484   : > { %4153 = vmatmul.msk.f32.gmra.mxu1 %vm3061_vm5, %v3047_v37 }
 0x494   : > { %v3191_v47 = vpop.f32.mrf.mxu2 }
 0x495   : > { %v3192_v8 = vadd.f32 %v6154_v45, %v3191_v47  ;;  %v3668_v47 = vld [vmem:[%s6473_s7 + $0x28] sm:$0xff] }
 0x497   : > { %v3215_v12 = vmul.f32 0.1, %v3192_v8 }
 0x499   : > { %v3223_v63 = vmax.f32 %v3192_v8, %v3215_v12  ;;  %v3667_v8 = vld [vmem:[%s6473_s7 + $0x20] sm:$0xff]  ;;  %v3666_v12 = vld [vmem:[%s6473_s7 + $0x18] sm:$0xff] }
 0x49b   : > { %3263 = vst.msk [vmem:[#allocation6 + $0x20] sm:$0xff] %vm3149_vm6, %v3223_v63  ;;  %4170 = vmatmul.msk.f32.vlgmr.msra.gmra.mxu1 %vm3149_vm6, %v3223_v63 }
 0x4a2   : > { %v3434_v59 = vld [vmem:[#allocation6 + $0x20] sm:$0xff] }
 0x4a3   : > { %v3385_v49 = vld [vmem:[#allocation6 + $0x1f] sm:$0xff]  ;;  %3450 = vrot.lane.b32.xlu2 %v3434_v59, %s6522_s12 }
 0x4a4   : > { %v3483_v39 = vld [vmem:[#allocation6 + $0x21] sm:$0xff]  ;;  %3401 = vrot.lane.b32.xlu1 %v3385_v49, %s6521_s25  ;;  %3280 = vst.msk [vmem:[#allocation7 + $0x10] sm:$0xff] %vm3149_vm6, %v3385_v49 }
 0x4a5   : > { %3499 = vrot.lane.b32.xlu0 %v3483_v39, %s6503_s1 }
 0x4ab   : > { %v3194_v0 = vpop.f32.mrf.mxu2 }
 0x4ac   : > { %v3195_v50 = vadd.f32 %v6154_v45, %v3194_v0  ;;  %v3664_v0 = vld [vmem:[%s6473_s7 + $0x8] sm:$0xff] }
 0x4ad   : > { %3305 = vrot.lane.b32.xlu0 %v3434_v59, %s6514_s24  ;;  %v3665_v59 = vld [vmem:[%s6473_s7 + $0x10] sm:$0xff] }
 0x4ae   : > { %v3216_v41 = vmul.f32 0.1, %v3195_v50 }
 0x4b0   : > { %v3224_v38 = vmax.f32 %v3195_v50, %v3216_v41  ;;  %v3663_v41 = vld [vmem:[%s6473_s7] sm:$0xff] }
 0x4b2   : > { %3264 = vst.msk [vmem:[#allocation6 + $0x38] sm:$0xff] %vm3149_vm6, %v3224_v38  ;;  %4171 = vmatmul.msk.f32.gmra.mxu1 %vm3149_vm6, %v3224_v38 }
 0x4b9   : > { %v3582_v3 = vld [vmem:[#allocation6 + $0x38] sm:$0xff] }
 0x4ba   : > { %v3533_v51 = vld [vmem:[#allocation6 + $0x37] sm:$0xff]  ;;  %3598 = vrot.lane.b32.xlu2 %v3582_v3, %s6501_s13  ;;  %3452 = vrot.lane.b32.xlu0 %v3582_v3, %s6522_s12 }
 0x4bb   : > { %v3484_v5 = vld [vmem:[#allocation6 + $0x39] sm:$0xff]  ;;  %3549 = vrot.lane.b32.xlu1 %v3533_v51, %s6499_s16  ;;  %3281 = vst.msk [vmem:[#allocation7 + $0x20] sm:$0xff] %vm3149_vm6, %v3533_v51 }
 0x4bc   : > { %3639 = vst.msk [vmem:[#allocation7 + $0x8] sm:$0xff] %vm3149_vm6, %v3484_v5 }
 0x4bd   : > { %v3197_v16 = vpop.f32.mrf.mxu2 }
 0x4be   : > { %v3198_v44 = vadd.f32 %v6154_v45, %v3197_v16 }
 0x4c0   : > { %v3217_v9 = vmul.f32 0.1, %v3198_v44 }
 0x4c2   : > { %3403 = vrot.lane.b32.xlu2 %v3533_v51, %s6521_s25  ;;  %v3225_v20 = vmax.f32 %v3198_v44, %v3217_v9 }
 0x4c3   : > { %3354 = vrot.lane.b32.xlu1 %v3483_v39, %s6524_s14  ;;  %v3648_v63 = vld [vmem:[#allocation7 + $0x8] sm:$0xff] }
 0x4c4   : > { %3265 = vst.msk [vmem:[#allocation6 + $0x50] sm:$0xff] %vm3149_vm6, %v3225_v20  ;;  %4172 = vmatmul.msk.f32.gmra.mxu1 %vm3149_vm6, %v3225_v20 }
 0x4cb   : > { %3501 = vrot.lane.b32.xlu1 %v3484_v5, %s6503_s1  ;;  %v3583_v33 = vld [vmem:[#allocation6 + $0x50] sm:$0xff] }
 0x4cc   : > { %v3534_v10 = vld [vmem:[#allocation6 + $0x4f] sm:$0xff]  ;;  %3600 = vrot.lane.b32.xlu0 %v3583_v33, %s6501_s13 }
 0x4cd   : > { %v3485_v43 = vld [vmem:[#allocation6 + $0x51] sm:$0xff]  ;;  %3551 = vrot.lane.b32.xlu2 %v3534_v10, %s6499_s16  ;;  %3282 = vst.msk [vmem:[#allocation7 + $0x30] sm:$0xff] %vm3149_vm6, %v3534_v10 }
 0x4ce   : > { %3640 = vst.msk [vmem:[#allocation7 + $0x18] sm:$0xff] %vm3149_vm6, %v3485_v43 }
 0x4d2   : > { %v3118_v22 = vpop.f32.mrf.mxu1 }
 0x4d3   : > { %3307 = vrot.lane.b32.xlu1 %v3582_v3, %s6514_s24  ;;  %v3119_v53 = vadd.f32 %v6081_v48, %v3118_v22 }
 0x4d4   : > { %v3200_v58 = vpop.f32.mrf.mxu2  ;;  %3405 = vrot.lane.b32.xlu0 %v3534_v10, %s6521_s25 }
 0x4d5   : > { %v3132_v56 = vmul.f32 0.1, %v3119_v53  ;;  %3356 = vrot.lane.b32.xlu2 %v3484_v5, %s6524_s14  ;;  %v3201_v60 = vadd.f32 %v6154_v45, %v3200_v58  ;;  %v3650_v38 = vld [vmem:[#allocation7 + $0x18] sm:$0xff] }
 0x4d7   : > { %v3140_v2 = vmax.f32 %v3119_v53, %v3132_v56  ;;  %v3218_v4 = vmul.f32 0.1, %v3201_v60 }
 0x4d9   : > { %4159 = vmatmul.msk.f32.gmra.mxu2 %vm3149_vm6, %v3140_v2  ;;  %v3226_v57 = vmax.f32 %v3201_v60, %v3218_v4 }
 0x4db   : > { %3454 = vrot.lane.b32.xlu1 %v3583_v33, %s6522_s12  ;;  %3266 = vst.msk [vmem:[#allocation6 + $0x68] sm:$0xff] %vm3149_vm6, %v3226_v57  ;;  %4173 = vmatmul.msk.f32.gmra.mxu1 %vm3149_vm6, %v3226_v57 }
 0x4dd   : > { %3503 = vrot.lane.b32.xlu2 %v3485_v43, %s6503_s1 }
 0x4e2   : > { %v3535_v1 = vld [vmem:[#allocation6 + $0x67] sm:$0xff] }
 0x4e3   : > { %v3584_v25 = vld [vmem:[#allocation6 + $0x68] sm:$0xff]  ;;  %3553 = vrot.lane.b32.xlu0 %v3535_v1, %s6499_s16  ;;  %3283 = vst.msk [vmem:[#allocation7 + $0x40] sm:$0xff] %vm3149_vm6, %v3535_v1  ;;  %s6529_s16 = smov 96  }
 0x4e4   : > { %v6194_v26 = vld [vmem:[#allocation6 + $0x69] sm:$0xff]  ;;  %3602 = vrot.lane.b32.xlu1 %v3584_v25, %s6501_s13  ;;  %s6528_s13 = smov 112  }
 0x4e5   : > { %3641 = vst.msk [vmem:[#allocation7 + $0x28] sm:$0xff] %vm3149_vm6, %v6194_v26  ;;  %3309 = vrot.lane.b32.xlu2 %v3583_v33, %s6514_s24 }
 0x4e9   : > { %v3121_v36 = vpop.f32.mrf.mxu1 }
 0x4ea   : > { %v3122_v35 = vadd.f32 %v6081_v48, %v3121_v36 }
 0x4eb   : > { %3358 = vrot.lane.b32.xlu0 %v3485_v43, %s6524_s14 }
 0x4ec   : > { %v3133_v7 = vmul.f32 0.1, %v3122_v35  ;;  %3407 = vrot.lane.b32.xlu1 %v3535_v1, %s6521_s25  ;;  %v3652_v5 = vld [vmem:[#allocation7 + $0x28] sm:$0xff] }
 0x4ed   : > { %3456 = vrot.lane.b32.xlu2 %v3584_v25, %s6522_s12 }
 0x4ee   : > { %v3141_v6 = vmax.f32 %v3122_v35, %v3133_v7 }
 0x4f0   : > { %4160 = vmatmul.msk.f32.gmra.mxu2 %vm3149_vm6, %v3141_v6 }
 0x4f3   : > { %3505 = vrot.lane.b32.xlu0 %v6194_v26, %s6503_s1  ;;  %s4291_s1 = scalar_lea.hbm %s6477_s11, 128 }
 0x4fb   : > { %v3203_v34 = vpop.f32.mrf.mxu2  ;;  %3311 = vrot.lane.b32.xlu0 %v3584_v25, %s6514_s24 }
 0x4fc   : > { %v3204_v62 = vadd.f32 %v6154_v45, %v3203_v34 }
 0x4fd   : > { %v3451_v37 = vpop.permute.xlu2 %3450 }
 0x4fe   : > { %v3219_v55 = vmul.f32 0.1, %v3204_v62 }
 0x500   : > { %v3227_v29 = vmax.f32 %v3204_v62, %v3219_v55 }
 0x501   : > { %v3124_v23 = vpop.f32.mrf.mxu1 }
 0x502   : > { %3267 = vst.msk [vmem:[#allocation6 + $0x80] sm:$0xff] %vm3149_vm6, %v3227_v29  ;;  %4174 = vmatmul.msk.f32.gmra.mxu1 %vm3149_vm6, %v3227_v29  ;;  %v3125_v42 = vadd.f32 %v6081_v48, %v3124_v23  ;;  %v3669_v48 = vld [vmem:[%s6473_s7 + $0x30] sm:$0xff] }
 0x503   : > { %3718 = vmatpush.msrb.mxu3 %v3669_v48 }
 0x504   : > { %v3134_v31 = vmul.f32 0.1, %v3125_v42 }
 0x505   : > { %3719 = vmatpush.msrb.mxu3 %v3668_v47 }
 0x506   : > { %v3142_v18 = vmax.f32 %v3125_v42, %v3134_v31 }
 0x507   : > { %3720 = vmatpush.msrb.mxu3 %v3667_v8 }
 0x508   : > { %4161 = vmatmul.msk.f32.gmra.mxu2 %vm3149_vm6, %v3142_v18 }
 0x509   : > { %v3438_v46 = vld [vmem:[#allocation6 + $0x80] sm:$0xff]  ;;  %3721 = vmatpush.msrb.mxu3 %v3666_v12 }
 0x50a   : > { %v3536_v40 = vld [vmem:[#allocation6 + $0x7f] sm:$0xff]  ;;  %3458 = vrot.lane.b32.xlu0 %v3438_v46, %s6522_s12  ;;  %3604 = vrot.lane.b32.xlu2 %v3438_v46, %s6528_s13 }
 0x50b   : > { %v6248_v13 = vld [vmem:[#allocation6 + $0x81] sm:$0xff]  ;;  %3555 = vrot.lane.b32.xlu1 %v3536_v40, %s6529_s16  ;;  %3284 = vst.msk [vmem:[#allocation7 + $0x50] sm:$0xff] %vm3149_vm6, %v3536_v40  ;;  %3722 = vmatpush.msrb.mxu3 %v3665_v59 }
 0x50c   : > { %3642 = vst.msk [vmem:[#allocation7 + $0x38] sm:$0xff] %vm3149_vm6, %v6248_v13 }
 0x50d   : > { %3723 = vmatpush.msrb.mxu3 %v3664_v0 }
 0x50f   : > { %3724 = vmatpush.msrb.mxu3 %v3663_v41 }
 0x510   : > { %4162 = vmatmul.msk.f32.vlgmr.msra.gmra.mxu2 %vm3149_vm6, %v3648_v63 }
 0x512   : > { %3409 = vrot.lane.b32.xlu2 %v3536_v40, %s6521_s25 }
 0x513   : > { %3360 = vrot.lane.b32.xlu1 %v6194_v26, %s6524_s14  ;;  %v3654_v44 = vld [vmem:[#allocation7 + $0x38] sm:$0xff] }
 0x514   : > { %v3599_v49 = vpop.permute.xlu2 %3598 }
 0x516   : > { %v3402_v39 = vpop.permute.xlu1 %3401 }
 0x517   : > { %3426 = vst.msk [vmem:[#allocation7] sm:$0xff] %vm3425_vm10, %v3402_v39  ;;  %v3500_v50 = vpop.permute.xlu0 %3499  ;;  %v3540_v39 = vld [vmem:[#allocation6 + $0xdf] sm:$0xff] }
 0x518   : > { %3475 = vst.msk [vmem:[#allocation7] sm:$0xff] %vm3474_vm11, %v3451_v37  ;;  %4163 = vmatmul.msk.f32.gmra.mxu2 %vm3149_vm6, %v3650_v38 }
 0x519   : > { %3524 = vst.msk [vmem:[#allocation7] sm:$0xff] %vm3523_vm12, %v3500_v50 }
 0x51b   : > { %3507 = vrot.lane.b32.xlu1 %v6248_v13, %s6530_s22 }
 0x51c   : > { %v3404_v51 = vpop.permute.xlu2 %3403 }
 0x51f   : > { %v3306_v3 = vpop.permute.xlu0 %3305 }
 0x520   : > { %3329 = vst.msk [vmem:[#allocation7 + $0x10] sm:$0xff] %vm3327_vm8, %v3306_v3  ;;  %4164 = vmatmul.msk.f32.gmra.mxu2 %vm3149_vm6, %v3652_v5 }
 0x523   : > { %3313 = vrot.lane.b32.xlu1 %v3438_v46, %s6514_s24 }
 0x527   : > { %v3552_v16 = vpop.permute.xlu2 %3551 }
 0x528   : > { %4165 = vmatmul.msk.f32.gmra.mxu2 %vm3149_vm6, %v3654_v44 }
 0x52c   : > { %v3453_v43 = vpop.permute.xlu0 %3452 }
 0x52d   : > { %v3550_v9 = vpop.permute.xlu1 %3549 }
 0x52e   : > { %3574 = vst.msk [vmem:[#allocation7] sm:$0xff] %vm3573_vm13, %v3550_v9 }
 0x52f   : > { %3623 = vst.msk [vmem:[#allocation7] sm:$0xff] %vm3622_vm14, %v3599_v49  ;;  %v3357_v20 = vpop.permute.xlu2 %3356  ;;  %v3589_v49 = vld [vmem:[#allocation6 + $0xe0] sm:$0xff] }
 0x535   : > { %v3355_v33 = vpop.permute.xlu1 %3354 }
 0x536   : > { %3378 = vst.msk [vmem:[#allocation7 + $0x10] sm:$0xff] %vm3376_vm9, %v3355_v33  ;;  %v3647_v10 = vld [vmem:[#allocation7] sm:$0xff] }
 0x537   : > { %3427 = vst.msk [vmem:[#allocation7 + $0x10] sm:$0xff] %vm3425_vm10, %v3404_v51  ;;  %3725 = vmatmul.f32.vlgmr.msrb.gmra.mxu3 %v3647_v10  ;;  %v3504_v22 = vpop.permute.xlu2 %3503 }
 0x538   : > { %3476 = vst.msk [vmem:[#allocation7 + $0x10] sm:$0xff] %vm3474_vm11, %v3453_v43 }
 0x53d   : > { %v3502_v53 = vpop.permute.xlu1 %3501 }
 0x53e   : > { %3525 = vst.msk [vmem:[#allocation7 + $0x10] sm:$0xff] %vm3523_vm12, %v3502_v53  ;;  %v3601_v52 = vpop.permute.xlu0 %3600  ;;  %v3810_v53 = vld [vmem:[%s6475_s9 + $0x18] sm:$0xff] }
 0x53f   : > { %3575 = vst.msk [vmem:[#allocation7 + $0x10] sm:$0xff] %vm3573_vm13, %v3552_v16  ;;  %v3310_v56 = vpop.permute.xlu2 %3309  ;;  %3915 = vmatpush.msra.mxu3 %v3810_v53 }
 0x540   : > { %3624 = vst.msk [vmem:[#allocation7 + $0x10] sm:$0xff] %vm3622_vm14, %v3601_v52  ;;  %v3638_v52 = vld [vmem:[#allocation6 + $0xe1] sm:$0xff] }
 0x541   : > { %3331 = vst.msk [vmem:[#allocation7 + $0x30] sm:$0xff] %vm3327_vm8, %v3310_v56  ;;  %v3809_v56 = vld [vmem:[%s6475_s9 + $0x10] sm:$0xff] }
 0x542   : > { %3646 = vst.msk [vmem:[#allocation7 + $0x78] sm:$0xff] %vm3149_vm6, %v3638_v52  ;;  %3916 = vmatpush.msra.mxu3 %v3809_v56  ;;  %v4268_v56 = vld [vmem:[%s6476_s10] ss:$0 sm:$0xff] }
 0x545   : > { %v3308_v58 = vpop.permute.xlu1 %3307 }
 0x546   : > { %3330 = vst.msk [vmem:[#allocation7 + $0x20] sm:$0xff] %vm3327_vm8, %v3308_v58  ;;  %v3406_v60 = vpop.permute.xlu0 %3405 }
 0x547   : > { %3379 = vst.msk [vmem:[#allocation7 + $0x20] sm:$0xff] %vm3376_vm9, %v3357_v20  ;;  %v3649_v61 = vld [vmem:[#allocation7 + $0x10] sm:$0xff]  ;;  %v3457_v7 = vpop.permute.xlu2 %3456 }
 0x548   : > { %3428 = vst.msk [vmem:[#allocation7 + $0x20] sm:$0xff] %vm3425_vm10, %v3406_v60  ;;  %3728 = vmatmul.f32.gmra.mxu3 %v3649_v61  ;;  %v3808_v61 = vld [vmem:[%s6475_s9 + $0x8] sm:$0xff] }
 0x549   : > { %3917 = vmatpush.msra.mxu3 %v3808_v61 }
 0x54d   : > { %v3455_v2 = vpop.permute.xlu1 %3454 }
 0x54e   : > { %3477 = vst.msk [vmem:[#allocation7 + $0x20] sm:$0xff] %vm3474_vm11, %v3455_v2 }
 0x54f   : > { %3526 = vst.msk [vmem:[#allocation7 + $0x20] sm:$0xff] %vm3523_vm12, %v3504_v22 }
 0x555   : > { %v3554_v4 = vpop.permute.xlu0 %3553 }
 0x556   : > { %v3603_v57 = vpop.permute.xlu1 %3602  ;;  %3576 = vst.msk [vmem:[#allocation7 + $0x20] sm:$0xff] %vm3573_vm13, %v3554_v4  ;;  %v3807_v4 = vld [vmem:[%s6475_s9] sm:$0xff] }
 0x557   : > { %3625 = vst.msk [vmem:[#allocation7 + $0x20] sm:$0xff] %vm3622_vm14, %v3603_v57  ;;  %3918 = vmatpush.msra.mxu3 %v3807_v4  ;;  %v3662_v57 = vld [vmem:[#allocation7 + $0x78] sm:$0xff] }
 0x55c   : > { %v3206_v1 = vpop.f32.mrf.mxu2 }
 0x55d   : > { %v3207_v25 = vadd.f32 %v6154_v45, %v3206_v1  ;;  %v3359_v26 = vpop.permute.xlu0 %3358 }
 0x55e   : > { %v3408_v36 = vpop.permute.xlu1 %3407  ;;  %3380 = vst.msk [vmem:[#allocation7 + $0x30] sm:$0xff] %vm3376_vm9, %v3359_v26  ;;  %v3651_v54 = vld [vmem:[#allocation7 + $0x20] sm:$0xff] }
 0x55f   : > { %v3220_v35 = vmul.f32 0.1, %v3207_v25  ;;  %3429 = vst.msk [vmem:[#allocation7 + $0x30] sm:$0xff] %vm3425_vm10, %v3408_v36  ;;  %3731 = vmatmul.f32.gmra.mxu3 %v3651_v54 }
 0x560   : > { %3478 = vst.msk [vmem:[#allocation7 + $0x30] sm:$0xff] %vm3474_vm11, %v3457_v7 }
 0x561   : > { %v3228_v11 = vmax.f32 %v3207_v25, %v3220_v35 }
 0x563   : > { %3268 = vst.msk [vmem:[#allocation6 + $0x98] sm:$0xff] %vm3149_vm6, %v3228_v11  ;;  %4175 = vmatmul.msk.f32.gmra.mxu1 %vm3149_vm6, %v3228_v11  ;;  %v4267_v11 = vld [vmem:[%s6474_s8] ss:$0 sm:$0xff] }
 0x564   : > { %v3605_v29 = vpop.permute.xlu2 %3604 }
 0x565   : > { %v3506_v6 = vpop.permute.xlu0 %3505 }
 0x566   : > { %3527 = vst.msk [vmem:[#allocation7 + $0x30] sm:$0xff] %vm3523_vm12, %v3506_v6 }
 0x56a   : > { %v3586_v28 = vld [vmem:[#allocation6 + $0x98] sm:$0xff] }
 0x56b   : > { %v3537_v17 = vld [vmem:[#allocation6 + $0x97] sm:$0xff]  ;;  %3606 = vrot.lane.b32.xlu0 %v3586_v28, %s6528_s13  ;;  %3460 = vrot.lane.b32.xlu1 %v3586_v28, %s6522_s12 }
 0x56c   : > { %v3635_v34 = vld [vmem:[#allocation6 + $0x99] sm:$0xff]  ;;  %3557 = vrot.lane.b32.xlu2 %v3537_v17, %s6529_s16  ;;  %3285 = vst.msk [vmem:[#allocation7 + $0x60] sm:$0xff] %vm3149_vm6, %v3537_v17  ;;  %v3410_v31 = vpop.permute.xlu2 %3409 }
 0x56d   : > { %3643 = vst.msk [vmem:[#allocation7 + $0x48] sm:$0xff] %vm3149_vm6, %v3635_v34  ;;  %v3312_v14 = vpop.permute.xlu0 %3311 }
 0x56e   : > { %3332 = vst.msk [vmem:[#allocation7 + $0x40] sm:$0xff] %vm3327_vm8, %v3312_v14 }
 0x573   : > { %v3209_v62 = vpop.f32.mrf.mxu2  ;;  %3411 = vrot.lane.b32.xlu0 %v3537_v17, %s6521_s25 }
 0x574   : > { %v3656_v24 = vld [vmem:[#allocation7 + $0x48] sm:$0xff]  ;;  %v3210_v15 = vadd.f32 %v6154_v45, %v3209_v62  ;;  %3362 = vrot.lane.b32.xlu2 %v6248_v13, %s6524_s14 }
 0x575   : > { %4166 = vmatmul.msk.f32.gmra.mxu2 %vm3149_vm6, %v3656_v24 }
 0x576   : > { %v3221_v55 = vmul.f32 0.1, %v3210_v15 }
 0x578   : > { %v3229_v19 = vmax.f32 %v3210_v15, %v3221_v55 }
 0x57a   : > { %3269 = vst.msk [vmem:[#allocation6 + $0xb0] sm:$0xff] %vm3149_vm6, %v3229_v19  ;;  %4176 = vmatmul.msk.f32.gmra.mxu1 %vm3149_vm6, %v3229_v19 }
 0x57c   : > { %3509 = vrot.lane.b32.xlu2 %v3635_v34, %s6530_s22  ;;  %v3459_v18 = vpop.permute.xlu0 %3458 }
 0x57d   : > { %v3556_v32 = vpop.permute.xlu1 %3555 }
 0x57e   : > { %3577 = vst.msk [vmem:[#allocation7 + $0x30] sm:$0xff] %vm3573_vm13, %v3556_v32 }
 0x57f   : > { %3626 = vst.msk [vmem:[#allocation7 + $0x30] sm:$0xff] %vm3622_vm14, %v3605_v29 }
 0x581   : > { %v3538_v21 = vld [vmem:[#allocation6 + $0xaf] sm:$0xff] }
 0x582   : > { %v3587_v23 = vld [vmem:[#allocation6 + $0xb0] sm:$0xff]  ;;  %3559 = vrot.lane.b32.xlu0 %v3538_v21, %s6529_s16  ;;  %3286 = vst.msk [vmem:[#allocation7 + $0x70] sm:$0xff] %vm3149_vm6, %v3538_v21 }
 0x583   : > { %v3636_v42 = vld [vmem:[#allocation6 + $0xb1] sm:$0xff]  ;;  %3608 = vrot.lane.b32.xlu1 %v3587_v23, %s6528_s13 }
 0x584   : > { %3644 = vst.msk [vmem:[#allocation7 + $0x58] sm:$0xff] %vm3149_vm6, %v3636_v42  ;;  %3315 = vrot.lane.b32.xlu2 %v3586_v28, %s6514_s24 }
 0x585   : > { %v3361_v27 = vpop.permute.xlu1 %3360 }
 0x586   : > { %3381 = vst.msk [vmem:[#allocation7 + $0x40] sm:$0xff] %vm3376_vm9, %v3361_v27  ;;  %v3653_v30 = vld [vmem:[#allocation7 + $0x30] sm:$0xff] }
 0x587   : > { %3430 = vst.msk [vmem:[#allocation7 + $0x40] sm:$0xff] %vm3425_vm10, %v3410_v31  ;;  %3734 = vmatmul.f32.gmra.mxu3 %v3653_v30 }
 0x588   : > { %3479 = vst.msk [vmem:[#allocation7 + $0x40] sm:$0xff] %vm3474_vm11, %v3459_v18 }
 0x58a   : > { %3364 = vrot.lane.b32.xlu0 %v3635_v34, %s6524_s14 }
 0x58b   : > { %v3658_v46 = vld [vmem:[#allocation7 + $0x58] sm:$0xff]  ;;  %3413 = vrot.lane.b32.xlu1 %v3538_v21, %s6521_s25  ;;  %v3212_v13 = vpop.f32.mrf.mxu2 }
 0x58c   : > { %4167 = vmatmul.msk.f32.gmra.mxu2 %vm3149_vm6, %v3658_v46  ;;  %3462 = vrot.lane.b32.xlu2 %v3587_v23, %s6522_s12  ;;  %v3213_v48 = vadd.f32 %v6154_v45, %v3212_v13 }
 0x58d   : > { %v3508_v40 = vpop.permute.xlu1 %3507 }
 0x58e   : > { %3528 = vst.msk [vmem:[#allocation7 + $0x40] sm:$0xff] %vm3523_vm12, %v3508_v40  ;;  %v3222_v37 = vmul.f32 0.1, %v3213_v48 }
 0x590   : > { %v3230_v47 = vmax.f32 %v3213_v48, %v3222_v37 }
 0x592   : > { %3511 = vrot.lane.b32.xlu0 %v3636_v42, %s6530_s22  ;;  %3270 = vst.msk [vmem:[#allocation6 + $0xc8] sm:$0xff] %vm3149_vm6, %v3230_v47  ;;  %4177 = vmatmul.msk.f32.gmra.mxu1 %vm3149_vm6, %v3230_v47 }
 0x593   : > { %v3767_v6 = vpop.f32.mrf.mxu2 }
 0x595   : > { %v3314_v8 = vpop.permute.xlu1 %3313 }
 0x596   : > { %3333 = vst.msk [vmem:[#allocation7 + $0x50] sm:$0xff] %vm3327_vm8, %v3314_v8 }
 0x599   : > { %v3588_v12 = vld [vmem:[#allocation6 + $0xc8] sm:$0xff] }
 0x59a   : > { %3317 = vrot.lane.b32.xlu0 %v3587_v23, %s6514_s24  ;;  %v3539_v63 = vld [vmem:[#allocation6 + $0xc7] sm:$0xff]  ;;  %3610 = vrot.lane.b32.xlu2 %v3588_v12, %s6528_s13 }
 0x59b   : > { %v3637_v59 = vld [vmem:[#allocation6 + $0xc9] sm:$0xff]  ;;  %3561 = vrot.lane.b32.xlu1 %v3539_v63, %s6529_s16  ;;  %v3770_v62 = vpop.f32.mrf.mxu2 }
 0x59c   : > { %3645 = vst.msk [vmem:[#allocation7 + $0x68] sm:$0xff] %vm3149_vm6, %v3637_v59 }
 0x5a2   : > { %3464 = vrot.lane.b32.xlu0 %v3588_v12, %s6522_s12  ;;  %3415 = vrot.lane.b32.xlu2 %v3539_v63, %s6521_s25  ;;  %s4192_s25 = sshll.u32 %s4433_s21, 6 }
 0x5a3   : > { %v3660_v45 = vld [vmem:[#allocation7 + $0x68] sm:$0xff]  ;;  %3366 = vrot.lane.b32.xlu1 %v3636_v42, %s6524_s14  ;;  %v3773_v42 = vpop.f32.mrf.mxu2 }
 0x5a4   : > { %4168 = vmatmul.msk.f32.gmra.mxu2 %vm3149_vm6, %v3660_v45 }
 0x5aa   : > { %3612 = vrot.lane.b32.xlu0 %v3589_v49, %s6528_s13  ;;  %3563 = vrot.lane.b32.xlu2 %v3540_v39, %s6529_s16  ;;  %s3992_s13 = scalar_lea.hbm %s6477_s11, %s4192_s25 }
 0x5ab   : > { %3513 = vrot.lane.b32.xlu1 %v3637_v59, %s6530_s22  ;;  %v3776_v40 = vpop.f32.mrf.mxu2  ;;  %s4110_s22 = sshll.u32 %s377_s0, 6  ;;  %s3995_s30 = sshll.u32 %s3992_s13, 4  ;;  %s3996_s30 = int_to_ptr.hbm [resolvable:$true] %s3995_s30 }
 0x5ac   : > { %4169 = vmatmul.msk.f32.gmra.mxu2 %vm3149_vm6, %v3662_v57  ;;  %s6413_s24 = scalar_lea.vmem [#allocation8], %s4110_s22  ;;  %s4285_s21 = sshra.s32 %s3996_s30, 4  ;;  %s4286_s21 = int_to_ptr.hbm [resolvable:$true] %s4285_s21 }
 0x5ad   : > { %s3993_s16 = sshll.u32 %s6413_s24, 4  ;;  %s4287_s2 = scalar_lea.hbm %s4286_s21, 64  ;;  %s3994_s16 = int_to_ptr.vmem [resolvable:$true] %s3993_s16 }
 0x5ae   : > { %p4288_p11 = scmp.ne.s32.totalorder %s4286_s21, %s4287_s2  ;;  %p4292_p0 = scmp.lt.s32.totalorder %s4286_s21, %s6477_s11 }
 0x5af   : > { %p4293_p1 = scmp.lt.s32.totalorder %s4291_s1, %s4287_s2 }
 0x5b0   : > { %p4289_p12 = pnand %p4288_p11, %p4450_p5 }
 0x5b1   : > { %p4294_p2 = por %p4293_p1, %p4292_p0 }
 0x5b2   : > { %p4290_p13 = pneg %p4289_p12 }
 0x5b4   : > { %p4295_p3 = pnand %p4294_p2, %p4290_p13 }
 0x5ba   : > { %v3726_v28 = vpop.f32.mrf.mxu3 }
 0x5bb   : > { %v3727_v17 = vadd.f32 %v4267_v11, %v3726_v28 }
 0x5bd   : > { %v3768_v34 = vadd.f32 %v3767_v6, %v3727_v17 }
 0x5bf   : > { %v3791_v15 = vmul.f32 0.1, %v3768_v34 }
 0x5c1   : > { %v3799_v19 = vmax.f32 %v3768_v34, %v3791_v15 }
 0x5c6   : > { %v3558_v0 = vpop.permute.xlu2 %3557 }
 0x5c7   : > { %3578 = vst.msk [vmem:[#allocation7 + $0x40] sm:$0xff] %vm3573_vm13, %v3558_v0 }
 0x5cb   : > { %v3729_v14 = vpop.f32.mrf.mxu3 }
 0x5cc   : > { %v3730_v55 = vadd.f32 %v4267_v11, %v3729_v14 }
 0x5ce   : > { %v3363_v50 = vpop.permute.xlu2 %3362  ;;  %v3771_v29 = vadd.f32 %v3770_v62, %v3730_v55 }
 0x5cf   : > { %3382 = vst.msk [vmem:[#allocation7 + $0x50] sm:$0xff] %vm3376_vm9, %v3363_v50 }
 0x5d0   : > { %v3792_v21 = vmul.f32 0.1, %v3771_v29 }
 0x5d2   : > { %v3800_v31 = vmax.f32 %v3771_v29, %v3792_v21 }
 0x5d6   : > { %v3510_v41 = vpop.permute.xlu2 %3509 }
 0x5dd   : > { %v3607_v38 = vpop.permute.xlu0 %3606  ;;  %v3461_v16 = vpop.permute.xlu1 %3460 }
 0x5de   : > { %3627 = vst.msk [vmem:[#allocation7 + $0x40] sm:$0xff] %vm3622_vm14, %v3607_v38  ;;  %v3316_v3 = vpop.permute.xlu2 %3315 }
 0x5df   : > { %3334 = vst.msk [vmem:[#allocation7 + $0x60] sm:$0xff] %vm3327_vm8, %v3316_v3 }
 0x5e2   : > { %v3732_v32 = vpop.f32.mrf.mxu3 }
 0x5e3   : > { %v3733_v23 = vadd.f32 %v4267_v11, %v3732_v32 }
 0x5e5   : > { %v3412_v51 = vpop.permute.xlu0 %3411  ;;  %v3655_v5 = vld [vmem:[#allocation7 + $0x40] sm:$0xff]  ;;  %v3774_v27 = vadd.f32 %v3773_v42, %v3733_v23 }
 0x5e6   : > { %3431 = vst.msk [vmem:[#allocation7 + $0x50] sm:$0xff] %vm3425_vm10, %v3412_v51  ;;  %3737 = vmatmul.f32.gmra.mxu3 %v3655_v5  ;;  %v3463_v43 = vpop.permute.xlu2 %3462 }
 0x5e7   : > { %3480 = vst.msk [vmem:[#allocation7 + $0x50] sm:$0xff] %vm3474_vm11, %v3461_v16  ;;  %v3793_v18 = vmul.f32 0.1, %v3774_v27 }
 0x5e8   : > { %3529 = vst.msk [vmem:[#allocation7 + $0x50] sm:$0xff] %vm3523_vm12, %v3510_v41 }
 0x5e9   : > { %v3801_v48 = vmax.f32 %v3774_v27, %v3793_v18 }
 0x5f4   : > { %v3560_v44 = vpop.permute.xlu0 %3559  ;;  %v3611_v60 = vpop.permute.xlu2 %3610 }
 0x5f5   : > { %v3609_v9 = vpop.permute.xlu1 %3608  ;;  %3579 = vst.msk [vmem:[#allocation7 + $0x50] sm:$0xff] %vm3573_vm13, %v3560_v44 }
 0x5f6   : > { %3628 = vst.msk [vmem:[#allocation7 + $0x50] sm:$0xff] %vm3622_vm14, %v3609_v9 }
 0x5f8   : > { %v3779_v63 = vpop.f32.mrf.mxu2 }
 0x5fc   : > { %v3365_v20 = vpop.permute.xlu0 %3364  ;;  %v3416_v1 = vpop.permute.xlu2 %3415 }
 0x5fd   : > { %3383 = vst.msk [vmem:[#allocation7 + $0x60] sm:$0xff] %vm3376_vm9, %v3365_v20  ;;  %v3414_v33 = vpop.permute.xlu1 %3413  ;;  %v3657_v10 = vld [vmem:[#allocation7 + $0x50] sm:$0xff] }
 0x5fe   : > { %3432 = vst.msk [vmem:[#allocation7 + $0x60] sm:$0xff] %vm3425_vm10, %v3414_v33  ;;  %3740 = vmatmul.f32.gmra.mxu3 %v3657_v10 }
 0x5ff   : > { %3481 = vst.msk [vmem:[#allocation7 + $0x60] sm:$0xff] %vm3474_vm11, %v3463_v43 }
 0x604   : > { %v3512_v22 = vpop.permute.xlu0 %3511  ;;  %v3564_v35 = vpop.permute.xlu2 %3563 }
 0x605   : > { %3530 = vst.msk [vmem:[#allocation7 + $0x60] sm:$0xff] %vm3523_vm12, %v3512_v22 }
 0x60a   : > { %v3735_v30 = vpop.f32.mrf.mxu3 }
 0x60b   : > { %v3736_v46 = vadd.f32 %v4267_v11, %v3735_v30 }
 0x60c   : > { %v3318_v58 = vpop.permute.xlu0 %3317 }
 0x60d   : > { %3335 = vst.msk [vmem:[#allocation7 + $0x70] sm:$0xff] %vm3327_vm8, %v3318_v58  ;;  %v3562_v2 = vpop.permute.xlu1 %3561  ;;  %v3777_v13 = vadd.f32 %v3776_v40, %v3736_v46  ;;  %v3854_v58 = vpop.f32.mrf.mxu1 }
 0x60e   : > { %3580 = vst.msk [vmem:[#allocation7 + $0x60] sm:$0xff] %vm3573_vm13, %v3562_v2 }
 0x60f   : > { %3629 = vst.msk [vmem:[#allocation7 + $0x60] sm:$0xff] %vm3622_vm14, %v3611_v60  ;;  %v3794_v37 = vmul.f32 0.1, %v3777_v13  ;;  %v3782_v50 = vpop.f32.mrf.mxu2 }
 0x611   : > { %v3802_v47 = vmax.f32 %v3777_v13, %v3794_v37 }
 0x614   : > { %v3465_v25 = vpop.permute.xlu0 %3464 }
 0x615   : > { %v3367_v26 = vpop.permute.xlu1 %3366 }
 0x616   : > { %v3659_v36 = vld [vmem:[#allocation7 + $0x60] sm:$0xff]  ;;  %3384 = vst.msk [vmem:[#allocation7 + $0x70] sm:$0xff] %vm3376_vm9, %v3367_v26 }
 0x617   : > { %3743 = vmatmul.f32.gmra.mxu3 %v3659_v36  ;;  %3433 = vst.msk [vmem:[#allocation7 + $0x70] sm:$0xff] %vm3425_vm10, %v3416_v1  ;;  %v3857_v1 = vpop.f32.mrf.mxu1 }
 0x618   : > { %3482 = vst.msk [vmem:[#allocation7 + $0x70] sm:$0xff] %vm3474_vm11, %v3465_v25 }
 0x61c   : > { %v3613_v7 = vpop.permute.xlu0 %3612 }
 0x61d   : > { %v3514_v54 = vpop.permute.xlu1 %3513 }
 0x61e   : > { %3531 = vst.msk [vmem:[#allocation7 + $0x70] sm:$0xff] %vm3523_vm12, %v3514_v54 }
 0x61f   : > { %3581 = vst.msk [vmem:[#allocation7 + $0x70] sm:$0xff] %vm3573_vm13, %v3564_v35 }
 0x620   : > { %3630 = vst.msk [vmem:[#allocation7 + $0x70] sm:$0xff] %vm3622_vm14, %v3613_v7  ;;  %v3860_v7 = vpop.f32.mrf.mxu1 }
 0x627   : > { %v3661_v24 = vld [vmem:[#allocation7 + $0x70] sm:$0xff]  ;;  %v3785_v16 = vpop.f32.mrf.mxu2 }
 0x628   : > { %3746 = vmatmul.f32.gmra.mxu3 %v3661_v24  ;;  %v3863_v14 = vpop.f32.mrf.mxu1 }
 0x62f   : > { %v3788_v10 = vpop.f32.mrf.mxu2 }
 0x630   : > { %4178 = vmatmul.msk.f32.vlgmr.msra.gmra.mxu3 %vm3878_vm15, %v3799_v19  ;;  %v3866_v29 = vpop.f32.mrf.mxu1 }
 0x638   : > { %4179 = vmatmul.msk.f32.gmra.mxu3 %vm3878_vm15, %v3800_v31  ;;  %v3869_v31 = vpop.f32.mrf.mxu1 }
 0x640   : > { %4180 = vmatmul.msk.f32.gmra.mxu3 %vm3878_vm15, %v3801_v48  ;;  %v3872_v48 = vpop.f32.mrf.mxu1 }
 0x648   : > { %4181 = vmatmul.msk.f32.gmra.mxu3 %vm3878_vm15, %v3802_v47 }
 0x669   : > { %v3738_v8 = vpop.f32.mrf.mxu3 }
 0x66a   : > { %v3739_v12 = vadd.f32 %v4267_v11, %v3738_v8 }
 0x66c   : > { %v3780_v59 = vadd.f32 %v3779_v63, %v3739_v12 }
 0x66e   : > { %v3795_v45 = vmul.f32 0.1, %v3780_v59 }
 0x670   : > { %v3803_v49 = vmax.f32 %v3780_v59, %v3795_v45  ;;  %v3875_v59 = vpop.f32.mrf.mxu1 }
 0x672   : > { %4182 = vmatmul.msk.f32.gmra.mxu3 %vm3878_vm15, %v3803_v49 }
 0x681   : > { %v3741_v39 = vpop.f32.mrf.mxu3 }
 0x682   : > { %v3742_v0 = vadd.f32 %v4267_v11, %v3741_v39 }
 0x684   : > { %v3783_v41 = vadd.f32 %v3782_v50, %v3742_v0 }
 0x686   : > { %v3796_v38 = vmul.f32 0.1, %v3783_v41 }
 0x688   : > { %v3804_v3 = vmax.f32 %v3783_v41, %v3796_v38 }
 0x68a   : > { %4183 = vmatmul.msk.f32.gmra.mxu3 %vm3878_vm15, %v3804_v3 }
 0x69a   : > { %v3744_v51 = vpop.f32.mrf.mxu3 }
 0x69b   : > { %v3745_v5 = vadd.f32 %v4267_v11, %v3744_v51 }
 0x69d   : > { %v3786_v44 = vadd.f32 %v3785_v16, %v3745_v5 }
 0x69f   : > { %v3797_v9 = vmul.f32 0.1, %v3786_v44 }
 0x6a1   : > { %v3805_v20 = vmax.f32 %v3786_v44, %v3797_v9 }
 0x6a3   : > { %4184 = vmatmul.msk.f32.gmra.mxu3 %vm3878_vm15, %v3805_v20 }
 0x6ab   : > { %v3747_v33 = vpop.f32.mrf.mxu3 }
 0x6ac   : > { %v3748_v43 = vadd.f32 %v4267_v11, %v3747_v33 }
 0x6ae   : > { %v3789_v22 = vadd.f32 %v3788_v10, %v3748_v43 }
 0x6b0   : > { %v3798_v53 = vmul.f32 0.1, %v3789_v22 }
 0x6b2   : > { %v3806_v52 = vmax.f32 %v3789_v22, %v3798_v53 }
 0x6b3   : > { %v3920_v60 = vpop.f32.mrf.mxu3 }
 0x6b4   : > { %v3921_v61 = vadd.f32 %v3920_v60, %v3854_v58  ;;  %4185 = vmatmul.msk.f32.gmra.mxu3 %vm3878_vm15, %v3806_v52 }
 0x6b6   : > { %v3948_v2 = vadd.f32 %v4268_v56, %v3921_v61 }
 0x6b8   : > { %v3956_v4 = vmul.f32 0.1, %v3948_v2 }
 0x6ba   : > { %v3964_v57 = vmax.f32 %v3948_v2, %v3956_v4 }
 0x6bb   : > { %v3923_v25 = vpop.f32.mrf.mxu3 }
 0x6bc   : > { %3972 = vst.msk [vmem:[%s6413_s24] sm:$0xff] %vm3878_vm15, %v3964_v57  ;;  %v3924_v26 = vadd.f32 %v3923_v25, %v3857_v1 }
 0x6be   : > { %v3949_v36 = vadd.f32 %v4268_v56, %v3924_v26 }
 0x6c0   : > { %v3957_v35 = vmul.f32 0.1, %v3949_v36 }
 0x6c2   : > { %v3965_v54 = vmax.f32 %v3949_v36, %v3957_v35 }
 0x6c3   : > { %v3926_v11 = vpop.f32.mrf.mxu3 }
 0x6c4   : > { %3973 = vst.msk [vmem:[%s6413_s24 + $0x8] sm:$0xff] %vm3878_vm15, %v3965_v54  ;;  %v3927_v6 = vadd.f32 %v3926_v11, %v3860_v7 }
 0x6c6   : > { %v3950_v28 = vadd.f32 %v4268_v56, %v3927_v6 }
 0x6c8   : > { %v3958_v17 = vmul.f32 0.1, %v3950_v28 }
 0x6ca   : > { %v3966_v34 = vmax.f32 %v3950_v28, %v3958_v17 }
 0x6cb   : > { %v3929_v24 = vpop.f32.mrf.mxu3 }
 0x6cc   : > { %3974 = vst.msk [vmem:[%s6413_s24 + $0x10] sm:$0xff] %vm3878_vm15, %v3966_v34  ;;  %v3930_v62 = vadd.f32 %v3929_v24, %v3863_v14 }
 0x6ce   : > { %v3951_v15 = vadd.f32 %v4268_v56, %v3930_v62 }
 0x6d0   : > { %v3959_v55 = vmul.f32 0.1, %v3951_v15 }
 0x6d2   : > { %v3967_v19 = vmax.f32 %v3951_v15, %v3959_v55 }
 0x6d4   : > { %3975 = vst.msk [vmem:[%s6413_s24 + $0x18] sm:$0xff] %vm3878_vm15, %v3967_v19 }
 0x6f5   : > { %v3932_v32 = vpop.f32.mrf.mxu3 }
 0x6f6   : > { %v3933_v21 = vadd.f32 %v3932_v32, %v3866_v29 }
 0x6f8   : > { %v3952_v23 = vadd.f32 %v4268_v56, %v3933_v21 }
 0x6fa   : > { %v3960_v42 = vmul.f32 0.1, %v3952_v23 }
 0x6fc   : > { %v3968_v27 = vmax.f32 %v3952_v23, %v3960_v42 }
 0x6fe   : > { %3976 = vst.msk [vmem:[%s6413_s24 + $0x20] sm:$0xff] %vm3878_vm15, %v3968_v27 }
 0x70d   : > { %v3935_v30 = vpop.f32.mrf.mxu3 }
 0x70e   : > { %v3936_v18 = vadd.f32 %v3935_v30, %v3869_v31 }
 0x710   : > { %v3953_v46 = vadd.f32 %v4268_v56, %v3936_v18 }
 0x712   : > { %v3961_v40 = vmul.f32 0.1, %v3953_v46 }
 0x714   : > { %v3969_v13 = vmax.f32 %v3953_v46, %v3961_v40 }
 0x716   : > { %3977 = vst.msk [vmem:[%s6413_s24 + $0x28] sm:$0xff] %vm3878_vm15, %v3969_v13 }
 0x726   : > { %v3938_v37 = vpop.f32.mrf.mxu3 }
 0x727   : > { %v3939_v47 = vadd.f32 %v3938_v37, %v3872_v48 }
 0x729   : > { %v3954_v8 = vadd.f32 %v4268_v56, %v3939_v47 }
 0x72b   : > { %v3962_v12 = vmul.f32 0.1, %v3954_v8 }
 0x72d   : > { %v3970_v63 = vmax.f32 %v3954_v8, %v3962_v12 }
 0x72f   : > { %3978 = vst.msk [vmem:[%s6413_s24 + $0x30] sm:$0xff] %vm3878_vm15, %v3970_v63 }
 0x737   : > { %v3941_v45 = vpop.f32.mrf.mxu3 }
 0x738   : > { %v3942_v49 = vadd.f32 %v3941_v45, %v3875_v59 }
 0x73a   : > { %v3955_v39 = vadd.f32 %v4268_v56, %v3942_v49 }
 0x73c   : > { %v3963_v0 = vmul.f32 0.1, %v3955_v39 }
 0x73e   : > { %v3971_v50 = vmax.f32 %v3955_v39, %v3963_v0 }
 0x740   : > { %3979 = vst.msk [vmem:[%s6413_s24 + $0x38] sm:$0xff] %vm3878_vm15, %v3971_v50 }
 0x741   : > { %4298 = shalt.err (!%p4295_p3)
}
 0x742   : > { %s4351_s0 = smov 128  }
 0x743   : > { %4208 = dma.vmem_to_hbm [thread:$0]  (%p4450_p5), %s3994_s16, 1024, %s3996_s30, %s3981_s15, %s4351_s0, %s4351_s0, %s6516_s29  }
 0x744 PF: > { %p4214_p4 = scmp.ge.s32.totalorder %s4333_s20, 2  ;;  %s4010_s24 = sand.u32 1, %s4321_s17  }
 0x745   : > { %s4011_s12 = scalar_lea.sflag [#allocation9], %s4010_s24 }
 0x746   : > { %p4211_p7 = pnand %p4214_p4, %p4454_p6 }
 0x748   : > { %p4212_p8 = pneg %p4211_p7 }
 0x74a   : > { %4316 = dma.done.wait (%p4212_p8), %s4011_s12, 1024  }
 0x74b   : > { %4318 = vsyncadd (%p4212_p8), %s4011_s12, 4294966272  ;;  %p21_p9 = scmp.ge.s32.totalorder %s4437_s23, 4   ;;  %s6531_s17 = smov %s4325_s18 }
 0x74c   : > { %s6532_s18 = smov %s4329_s19  ;;  %s6533_s19 = smov %s4448_s26 }
 0x74d   : > { %s6534_s20 = smov %s4437_s23  ;;  %23 = sbr.rel (!%p21_p9) target bundleno = 9 (0x9), region = 177 }
 0x752   :  { %4017 = vsyncpa [#allocation9], 1 }
 0x753   :  { %4019 = vsyncpa [#allocation9 + $0x1], 1 }

</bundles_post_ra>
